<compile_context>
chip_gen: v7x
topology: tpu7x:2x2x1
jax: 0.10.0
libtpu: 0.0.40
codegen_flags: <defaults>
</compile_context>

<pallas_src>
import math
from functools import partial

import jax
import jax.numpy as jnp
from jax.experimental import pallas as pl
from jax.experimental.pallas import tpu as pltpu

# ----- small, self-consistent "BertConfig" -----
VOCAB = 100
HIDDEN = 32
LAYERS = 2
HEADS = 2
INTER = 64
MAX_POS = 32
TYPE_VOCAB = 2
BATCH = 2
SEQ = 8
DHEAD = HIDDEN // HEADS
GPAD = 128                       # per-gate lane padding for the LSTM (full tile)

# Row offsets inside the f32 embedding slab (word | pos | type | ln_g | ln_b).
POS_OFF = VOCAB
TYPE_OFF = VOCAB + MAX_POS
LNG_ROW = TYPE_OFF + TYPE_VOCAB
LNB_ROW = LNG_ROW + 1
EMB_ROWS = LNB_ROW + 1

# Block indices inside the bf16 encoder weight slab: shape (L, 8, H, H).
WQ, WK, WV, WO, W1A, W1B, W2A, W2B = range(8)
# Row indices inside the f32 encoder bias/LN slab: shape (L, 11, H).
BQ, BK, BV, BO, LN1G, LN1B, B1A, B1B, B2, LN2G, LN2B = range(11)


# --------------------------------------------------------------------------
# In-kernel helpers (bf16 MXU operands, f32 accumulation / elementwise)
# --------------------------------------------------------------------------
def _mm(a, b):
    """MXU matmul: bf16 operands (no-op cast if already bf16), f32 accumulate."""
    return jnp.dot(a.astype(jnp.bfloat16), b.astype(jnp.bfloat16),
                   preferred_element_type=jnp.float32)


def _layernorm(x, g, b, eps=1e-12):  # BERT layer_norm_eps = 1e-12
    mu = jnp.mean(x, axis=-1, keepdims=True)
    var = jnp.mean((x - mu) ** 2, axis=-1, keepdims=True)
    return (x - mu) * jax.lax.rsqrt(var + eps) * g + b


# --------------------------------------------------------------------------
# Single fused Pallas kernel:
#   embedding gather + LN -> 2 encoder layers -> LSTM -> regressor
# --------------------------------------------------------------------------
def _fused_model_kernel(ids_ref, tids_ref,           # SMEM scalar-prefetch
                        emb_ref, mask_ref,           # f32 VMEM
                        wenc_ref, benc_ref,          # bf16 / f32 encoder slabs
                        lstmw_ref, lstmb_ref,        # bf16 / f32 LSTM slabs
                        regw_ref, regb_ref,          # bf16 / f32 regressor
                        out_ref, *, B, S, H, nH, dH, L):
    scale = 1.0 / math.sqrt(dH)

    # ---- in-kernel embedding gather: word[id] + pos[s] + type[tid] ----
    rows = []
    for b in range(B):
        for s in range(S):
            r = b * S + s
            wid = ids_ref[r]                              # SMEM scalar
            tid = tids_ref[r]
            rows.append(emb_ref[pl.ds(wid, 1), :]                      # dynamic
                        + emb_ref[POS_OFF + s:POS_OFF + s + 1, :]      # static
                        + emb_ref[pl.ds(TYPE_OFF + tid, 1), :])        # dynamic
    emb = jnp.concatenate(rows, axis=0)                   # (B*S, H) f32

    # ---- BERT embedding LayerNorm ----
    x = _layernorm(emb,
                   emb_ref[LNG_ROW:LNG_ROW + 1, :],
                   emb_ref[LNB_ROW:LNB_ROW + 1, :])       # (B*S, H)
    mask_add = (1.0 - mask_ref[...]) * -10000.0           # (B, S) additive mask

    # ---- encoder layers (statically unrolled; all data stays in VMEM) ----
    for l in range(L):
        bl = benc_ref[l]                                  # (11, H) f32
        # three separate (H,H) matmuls — no in-lane QKV split of the activation
        q = _mm(x, wenc_ref[l, WQ]) + bl[BQ:BQ + 1, :]
        k = _mm(x, wenc_ref[l, WK]) + bl[BK:BK + 1, :]
        v = _mm(x, wenc_ref[l, WV]) + bl[BV:BV + 1, :]

        ctx_rows = []
        for b in range(B):
            neg = mask_add[b:b + 1, :]                    # (1, S)
            qb = q[b * S:(b + 1) * S, :]
            kb = k[b * S:(b + 1) * S, :]
            vb = v[b * S:(b + 1) * S, :]
            heads = []
            for h in range(nH):
                qh = qb[:, h * dH:(h + 1) * dH]
                kh = kb[:, h * dH:(h + 1) * dH]
                vh = vb[:, h * dH:(h + 1) * dH]
                sc = _mm(qh, kh.T) * scale + neg          # (S, S)
                sc = sc - jnp.max(sc, axis=-1, keepdims=True)
                p = jnp.exp(sc)
                p = p * pl.reciprocal(
                    jnp.sum(p, axis=-1, keepdims=True), approx=True)
                heads.append(_mm(p, vh))                  # (S, dH)
            ctx_rows.append(jnp.concatenate(heads, axis=-1))
        ctx = jnp.concatenate(ctx_rows, axis=0)           # (B*S, H)

        attn_out = _mm(ctx, wenc_ref[l, WO]) + bl[BO:BO + 1, :]
        x = _layernorm(attn_out + x, bl[LN1G:LN1G + 1, :], bl[LN1B:LN1B + 1, :])

        # FFN: w1 / w2 stored as uniform (H,H) blocks -> no activation lane concat
        # TODO(synk): HF BERT uses exact erf-GELU; tanh approximation used here.
        i1 = jax.nn.gelu(_mm(x, wenc_ref[l, W1A]) + bl[B1A:B1A + 1, :],
                         approximate=True)
        i2 = jax.nn.gelu(_mm(x, wenc_ref[l, W1B]) + bl[B1B:B1B + 1, :],
                         approximate=True)
        ffn = _mm(i1, wenc_ref[l, W2A]) + _mm(i2, wenc_ref[l, W2B]) + bl[B2:B2 + 1, :]
        x = _layernorm(ffn + x, bl[LN2G:LN2G + 1, :], bl[LN2B:LN2B + 1, :])

    # ---- single-layer LSTM (zero init state, keep last h) ----
    # One-time reorder to time-major so each step reads a contiguous 2-row slice.
    x_tm = jnp.concatenate(
        [x[b * S + t:b * S + t + 1, :] for t in range(S) for b in range(B)],
        axis=0)                                           # (S*B, H), row = t*B + b

    wih = lstmw_ref[0:H, :]                               # (H, 4*GPAD) bf16
    whh = lstmw_ref[H:H + GPAD, :]                        # (GPAD, 4*GPAD) bf16
    # input projection hoisted out of the recurrence; bias = b_ih + b_hh
    gates_x = _mm(x_tm, wih) + lstmb_ref[...]             # (S*B, 4*GPAD) f32

    h_t = jnp.zeros((B, GPAD), jnp.float32)
    c_t = jnp.zeros((B, GPAD), jnp.float32)
    for t in range(S):                                    # small static unroll
        g = gates_x[t * B:(t + 1) * B, :] + _mm(h_t, whh)  # (B, 4*GPAD)
        # torch.nn.LSTM gate order i, f, g, o — each gate owns a full 128-lane tile
        i_g = jax.nn.sigmoid(g[:, 0:GPAD])
        f_g = jax.nn.sigmoid(g[:, GPAD:2 * GPAD])
        g_g = jnp.tanh(g[:, 2 * GPAD:3 * GPAD])
        o_g = jax.nn.sigmoid(g[:, 3 * GPAD:4 * GPAD])
        c_t = f_g * c_t + i_g * g_g                       # pad lanes stay exactly 0
        h_t = o_g * jnp.tanh(c_t)

    # ---- regressor fused into the same kernel ----
    logits = _mm(h_t, regw_ref[...]) + regb_ref[...]      # (B, 2)
    out_ref[...] = logits.astype(out_ref.dtype)


# --------------------------------------------------------------------------
# Forward: everything in one pallas_call; only reshapes/casts outside.
# --------------------------------------------------------------------------
def forward(params, input_ids, attention_mask=None, token_type_ids=None):
    B, S = input_ids.shape
    H = HIDDEN
    if attention_mask is None:
        attention_mask = jnp.ones((B, S), jnp.float32)
    if token_type_ids is None:
        token_type_ids = jnp.zeros((B, S), jnp.int32)

    ids = input_ids.reshape(B * S).astype(jnp.int32)
    tids = token_type_ids.reshape(B * S).astype(jnp.int32)
    mask = attention_mask.astype(jnp.float32)

    kernel = partial(_fused_model_kernel, B=B, S=S, H=H,
                     nH=HEADS, dH=DHEAD, L=LAYERS)

    idx2 = lambda i, *_: (0, 0)
    idx3 = lambda i, *_: (0, 0, 0)
    idx4 = lambda i, *_: (0, 0, 0, 0)

    grid_spec = pltpu.PrefetchScalarGridSpec(
        num_scalar_prefetch=2,                 # ids, tids -> SMEM
        grid=(1,),                             # single fused invocation
        in_specs=[
            pl.BlockSpec(params["emb_slab"].shape, idx2),   # f32 embedding slab
            pl.BlockSpec((B, S), idx2),                     # f32 attention mask
            pl.BlockSpec(params["wenc"].shape, idx4),       # bf16 encoder weights
            pl.BlockSpec(params["benc"].shape, idx3),       # f32 encoder bias/LN
            pl.BlockSpec(params["lstm_w"].shape, idx2),     # bf16 LSTM weights
            pl.BlockSpec(params["lstm_b"].shape, idx2),     # f32 LSTM bias
            pl.BlockSpec(params["reg_w"].shape, idx2),      # bf16 regressor W
            pl.BlockSpec(params["reg_b"].shape, idx2),      # f32 regressor b
        ],
        out_specs=pl.BlockSpec((B, 2), idx2),
    )

    return pl.pallas_call(
        kernel,
        out_shape=jax.ShapeDtypeStruct((B, 2), jnp.float32),
        grid_spec=grid_spec,
        compiler_params=pltpu.CompilerParams(dimension_semantics=("arbitrary",)),
    )(ids, tids,
      params["emb_slab"], mask,
      params["wenc"], params["benc"],
      params["lstm_w"], params["lstm_b"],
      params["reg_w"], params["reg_b"])


# --------------------------------------------------------------------------
# Deterministic synthetic parameters, pre-packed into a few slabs
# --------------------------------------------------------------------------
def init_params(key):
    H, I, L = HIDDEN, INTER, LAYERS
    keys = iter(jax.random.split(key, 64))

    def w(shape, scale=0.02):
        return (scale * jax.random.normal(next(keys), shape)).astype(jnp.float32)

    # f32 embedding slab: word | pos | type | LN gamma | LN beta
    emb_slab = jnp.concatenate(
        [w((VOCAB, H)), w((MAX_POS, H)), w((TYPE_VOCAB, H)),
         jnp.ones((1, H), jnp.float32), jnp.zeros((1, H), jnp.float32)], axis=0)
    assert emb_slab.shape == (EMB_ROWS, H)

    # bf16 encoder weight slab: (L, 8, H, H) uniform blocks
    #   [wq, wk, wv, wo, w1[:, :H], w1[:, H:], w2[:H, :], w2[H:, :]]
    blocks = []
    for _ in range(L):
        wq, wk, wv, wo = w((H, H)), w((H, H)), w((H, H)), w((H, H))
        w1, w2 = w((H, I)), w((I, H))
        blocks.append(jnp.stack([wq, wk, wv, wo,
                                 w1[:, :H], w1[:, H:],
                                 w2[:H, :], w2[H:, :]], axis=0))
    wenc = jnp.stack(blocks, axis=0).astype(jnp.bfloat16)

    # f32 encoder bias / LN slab: (L, 11, H)
    ones, zeros = jnp.ones((H,), jnp.float32), jnp.zeros((H,), jnp.float32)
    layer_rows = jnp.stack([zeros, zeros, zeros, zeros,      # bq, bk, bv, bo
                            ones, zeros,                     # ln1 gamma/beta
                            zeros, zeros, zeros,             # b1a, b1b, b2
                            ones, zeros], axis=0)            # ln2 gamma/beta
    benc = jnp.tile(layer_rows[None], (L, 1, 1)).astype(jnp.float32)

    # LSTM: gate-padded layout — each gate (i,f,g,o) owns a full 128-lane tile,
    # true weights in lanes [0:H] of its tile, zeros elsewhere.
    def pad_gates(m):                                     # (rows, 4H) -> (rows, 4*GPAD)
        out = jnp.zeros((m.shape[0], 4 * GPAD), jnp.float32)
        for gi in range(4):
            out = out.at[:, gi * GPAD:gi * GPAD + H].set(m[:, gi * H:(gi + 1) * H])
        return out

    wih = pad_gates(w((H, 4 * H)))                                  # (H, 512)
    whh = jnp.zeros((GPAD, 4 * GPAD), jnp.float32).at[:H, :].set(
        pad_gates(w((H, 4 * H))))                                   # (128, 512)
    lstm_w = jnp.concatenate([wih, whh], axis=0).astype(jnp.bfloat16)  # (160, 512)
    lstm_b = jnp.zeros((1, 4 * GPAD), jnp.float32)                  # b_ih + b_hh

    reg_w = (jnp.zeros((GPAD, 2), jnp.float32)
             .at[:H, :].set(w((H, 2)))).astype(jnp.bfloat16)        # (128, 2)
    reg_b = jnp.zeros((1, 2), jnp.float32)

    return {"emb_slab": emb_slab, "wenc": wenc, "benc": benc,
            "lstm_w": lstm_w, "lstm_b": lstm_b, "reg_w": reg_w, "reg_b": reg_b}


if __name__ == "__main__":
    key = jax.random.PRNGKey(0)
    pkey, ikey = jax.random.split(key)
    params = init_params(pkey)

    input_ids = jax.random.randint(ikey, (BATCH, SEQ), 0, VOCAB, dtype=jnp.int32)
    attention_mask = jnp.ones((BATCH, SEQ), jnp.float32)
    token_type_ids = jnp.zeros((BATCH, SEQ), jnp.int32)

    logits = jax.jit(forward)(params, input_ids, attention_mask, token_type_ids)
    logits = jax.block_until_ready(logits)
    assert logits.shape == (BATCH, 2) and logits.dtype == jnp.float32
    print("KERNEL_OK")
</pallas_src>

<mosaic_0001>
module attributes {stable_mosaic.version = 11 : i64} {
  func.func @_fused_model_kernel(%arg0: i32, %arg1: memref<16xi32, #tpu.memory_space<smem>>, %arg2: memref<16xi32, #tpu.memory_space<smem>>, %arg3: memref<136x32xf32, #tpu.memory_space<vmem>>, %arg4: memref<2x8xf32, #tpu.memory_space<vmem>>, %arg5: memref<2x8x32x32xbf16, #tpu.memory_space<vmem>>, %arg6: memref<2x11x32xf32, #tpu.memory_space<vmem>>, %arg7: memref<160x512xbf16, #tpu.memory_space<vmem>>, %arg8: memref<1x512xf32, #tpu.memory_space<vmem>>, %arg9: memref<128x2xbf16, #tpu.memory_space<vmem>>, %arg10: memref<1x2xf32, #tpu.memory_space<vmem>>, %arg11: memref<2x2xf32, #tpu.memory_space<vmem>>) attributes {dimension_semantics = [#tpu.dimension_semantics<arbitrary>], iteration_bounds = array<i64: 1>, scalar_prefetch = 2 : i64, scratch_operands = 0 : i64, tpu.core_type = #tpu.core_type<tc>, window_params = [{pipeline_mode = #tpu.pipeline_mode<synchronous>, transform_indices = @transform_0, window_bounds = array<i64: 136, 32>}, {pipeline_mode = #tpu.pipeline_mode<synchronous>, transform_indices = @transform_1, window_bounds = array<i64: 2, 8>}, {pipeline_mode = #tpu.pipeline_mode<synchronous>, transform_indices = @transform_2, window_bounds = array<i64: 2, 8, 32, 32>}, {pipeline_mode = #tpu.pipeline_mode<synchronous>, transform_indices = @transform_3, window_bounds = array<i64: 2, 11, 32>}, {pipeline_mode = #tpu.pipeline_mode<synchronous>, transform_indices = @transform_4, window_bounds = array<i64: 160, 512>}, {pipeline_mode = #tpu.pipeline_mode<synchronous>, transform_indices = @transform_5, window_bounds = array<i64: 1, 512>}, {pipeline_mode = #tpu.pipeline_mode<synchronous>, transform_indices = @transform_6, window_bounds = array<i64: 128, 2>}, {pipeline_mode = #tpu.pipeline_mode<synchronous>, transform_indices = @transform_7, window_bounds = array<i64: 1, 2>}, {pipeline_mode = #tpu.pipeline_mode<synchronous>, transform_indices = @transform_8, window_bounds = array<i64: 2, 2>}]} {
    %c0 = arith.constant 0 : index
    %0 = memref.load %arg1[%c0] : memref<16xi32, #tpu.memory_space<smem>>
    %c0_0 = arith.constant 0 : index
    %1 = memref.load %arg2[%c0_0] : memref<16xi32, #tpu.memory_space<smem>>
    %2 = arith.index_cast %0 : i32 to index
    %c0_1 = arith.constant 0 : index
    %3 = vector.load %arg3[%2, %c0_1] : memref<136x32xf32, #tpu.memory_space<vmem>>, vector<1x32xf32>
    %c100 = arith.constant 100 : index
    %c0_2 = arith.constant 0 : index
    %4 = vector.load %arg3[%c100, %c0_2] : memref<136x32xf32, #tpu.memory_space<vmem>>, vector<1x32xf32>
    %5 = arith.addf %3, %4 : vector<1x32xf32>
    %c132_i32 = arith.constant 132 : i32
    %6 = arith.addi %c132_i32, %1 : i32
    %7 = arith.index_cast %6 : i32 to index
    %c0_3 = arith.constant 0 : index
    %8 = vector.load %arg3[%7, %c0_3] : memref<136x32xf32, #tpu.memory_space<vmem>>, vector<1x32xf32>
    %9 = arith.addf %5, %8 : vector<1x32xf32>
    %c1 = arith.constant 1 : index
    %10 = memref.load %arg1[%c1] : memref<16xi32, #tpu.memory_space<smem>>
    %c1_4 = arith.constant 1 : index
    %11 = memref.load %arg2[%c1_4] : memref<16xi32, #tpu.memory_space<smem>>
    %12 = arith.index_cast %10 : i32 to index
    %c0_5 = arith.constant 0 : index
    %13 = vector.load %arg3[%12, %c0_5] : memref<136x32xf32, #tpu.memory_space<vmem>>, vector<1x32xf32>
    %c101 = arith.constant 101 : index
    %c0_6 = arith.constant 0 : index
    %14 = vector.load %arg3[%c101, %c0_6] : memref<136x32xf32, #tpu.memory_space<vmem>>, vector<1x32xf32>
    %15 = arith.addf %13, %14 : vector<1x32xf32>
    %c132_i32_7 = arith.constant 132 : i32
    %16 = arith.addi %c132_i32_7, %11 : i32
    %17 = arith.index_cast %16 : i32 to index
    %c0_8 = arith.constant 0 : index
    %18 = vector.load %arg3[%17, %c0_8] : memref<136x32xf32, #tpu.memory_space<vmem>>, vector<1x32xf32>
    %19 = arith.addf %15, %18 : vector<1x32xf32>
    %c2 = arith.constant 2 : index
    %20 = memref.load %arg1[%c2] : memref<16xi32, #tpu.memory_space<smem>>
    %c2_9 = arith.constant 2 : index
    %21 = memref.load %arg2[%c2_9] : memref<16xi32, #tpu.memory_space<smem>>
    %22 = arith.index_cast %20 : i32 to index
    %c0_10 = arith.constant 0 : index
    %23 = vector.load %arg3[%22, %c0_10] : memref<136x32xf32, #tpu.memory_space<vmem>>, vector<1x32xf32>
    %c102 = arith.constant 102 : index
    %c0_11 = arith.constant 0 : index
    %24 = vector.load %arg3[%c102, %c0_11] : memref<136x32xf32, #tpu.memory_space<vmem>>, vector<1x32xf32>
    %25 = arith.addf %23, %24 : vector<1x32xf32>
    %c132_i32_12 = arith.constant 132 : i32
    %26 = arith.addi %c132_i32_12, %21 : i32
    %27 = arith.index_cast %26 : i32 to index
    %c0_13 = arith.constant 0 : index
    %28 = vector.load %arg3[%27, %c0_13] : memref<136x32xf32, #tpu.memory_space<vmem>>, vector<1x32xf32>
    %29 = arith.addf %25, %28 : vector<1x32xf32>
    %c3 = arith.constant 3 : index
    %30 = memref.load %arg1[%c3] : memref<16xi32, #tpu.memory_space<smem>>
    %c3_14 = arith.constant 3 : index
    %31 = memref.load %arg2[%c3_14] : memref<16xi32, #tpu.memory_space<smem>>
    %32 = arith.index_cast %30 : i32 to index
    %c0_15 = arith.constant 0 : index
    %33 = vector.load %arg3[%32, %c0_15] : memref<136x32xf32, #tpu.memory_space<vmem>>, vector<1x32xf32>
    %c103 = arith.constant 103 : index
    %c0_16 = arith.constant 0 : index
    %34 = vector.load %arg3[%c103, %c0_16] : memref<136x32xf32, #tpu.memory_space<vmem>>, vector<1x32xf32>
    %35 = arith.addf %33, %34 : vector<1x32xf32>
    %c132_i32_17 = arith.constant 132 : i32
    %36 = arith.addi %c132_i32_17, %31 : i32
    %37 = arith.index_cast %36 : i32 to index
    %c0_18 = arith.constant 0 : index
    %38 = vector.load %arg3[%37, %c0_18] : memref<136x32xf32, #tpu.memory_space<vmem>>, vector<1x32xf32>
    %39 = arith.addf %35, %38 : vector<1x32xf32>
    %c4 = arith.constant 4 : index
    %40 = memref.load %arg1[%c4] : memref<16xi32, #tpu.memory_space<smem>>
    %c4_19 = arith.constant 4 : index
    %41 = memref.load %arg2[%c4_19] : memref<16xi32, #tpu.memory_space<smem>>
    %42 = arith.index_cast %40 : i32 to index
    %c0_20 = arith.constant 0 : index
    %43 = vector.load %arg3[%42, %c0_20] : memref<136x32xf32, #tpu.memory_space<vmem>>, vector<1x32xf32>
    %c104 = arith.constant 104 : index
    %c0_21 = arith.constant 0 : index
    %44 = vector.load %arg3[%c104, %c0_21] : memref<136x32xf32, #tpu.memory_space<vmem>>, vector<1x32xf32>
    %45 = arith.addf %43, %44 : vector<1x32xf32>
    %c132_i32_22 = arith.constant 132 : i32
    %46 = arith.addi %c132_i32_22, %41 : i32
    %47 = arith.index_cast %46 : i32 to index
    %c0_23 = arith.constant 0 : index
    %48 = vector.load %arg3[%47, %c0_23] : memref<136x32xf32, #tpu.memory_space<vmem>>, vector<1x32xf32>
    %49 = arith.addf %45, %48 : vector<1x32xf32>
    %c5 = arith.constant 5 : index
    %50 = memref.load %arg1[%c5] : memref<16xi32, #tpu.memory_space<smem>>
    %c5_24 = arith.constant 5 : index
    %51 = memref.load %arg2[%c5_24] : memref<16xi32, #tpu.memory_space<smem>>
    %52 = arith.index_cast %50 : i32 to index
    %c0_25 = arith.constant 0 : index
    %53 = vector.load %arg3[%52, %c0_25] : memref<136x32xf32, #tpu.memory_space<vmem>>, vector<1x32xf32>
    %c105 = arith.constant 105 : index
    %c0_26 = arith.constant 0 : index
    %54 = vector.load %arg3[%c105, %c0_26] : memref<136x32xf32, #tpu.memory_space<vmem>>, vector<1x32xf32>
    %55 = arith.addf %53, %54 : vector<1x32xf32>
    %c132_i32_27 = arith.constant 132 : i32
    %56 = arith.addi %c132_i32_27, %51 : i32
    %57 = arith.index_cast %56 : i32 to index
    %c0_28 = arith.constant 0 : index
    %58 = vector.load %arg3[%57, %c0_28] : memref<136x32xf32, #tpu.memory_space<vmem>>, vector<1x32xf32>
    %59 = arith.addf %55, %58 : vector<1x32xf32>
    %c6 = arith.constant 6 : index
    %60 = memref.load %arg1[%c6] : memref<16xi32, #tpu.memory_space<smem>>
    %c6_29 = arith.constant 6 : index
    %61 = memref.load %arg2[%c6_29] : memref<16xi32, #tpu.memory_space<smem>>
    %62 = arith.index_cast %60 : i32 to index
    %c0_30 = arith.constant 0 : index
    %63 = vector.load %arg3[%62, %c0_30] : memref<136x32xf32, #tpu.memory_space<vmem>>, vector<1x32xf32>
    %c106 = arith.constant 106 : index
    %c0_31 = arith.constant 0 : index
    %64 = vector.load %arg3[%c106, %c0_31] : memref<136x32xf32, #tpu.memory_space<vmem>>, vector<1x32xf32>
    %65 = arith.addf %63, %64 : vector<1x32xf32>
    %c132_i32_32 = arith.constant 132 : i32
    %66 = arith.addi %c132_i32_32, %61 : i32
    %67 = arith.index_cast %66 : i32 to index
    %c0_33 = arith.constant 0 : index
    %68 = vector.load %arg3[%67, %c0_33] : memref<136x32xf32, #tpu.memory_space<vmem>>, vector<1x32xf32>
    %69 = arith.addf %65, %68 : vector<1x32xf32>
    %c7 = arith.constant 7 : index
    %70 = memref.load %arg1[%c7] : memref<16xi32, #tpu.memory_space<smem>>
    %c7_34 = arith.constant 7 : index
    %71 = memref.load %arg2[%c7_34] : memref<16xi32, #tpu.memory_space<smem>>
    %72 = arith.index_cast %70 : i32 to index
    %c0_35 = arith.constant 0 : index
    %73 = vector.load %arg3[%72, %c0_35] : memref<136x32xf32, #tpu.memory_space<vmem>>, vector<1x32xf32>
    %c107 = arith.constant 107 : index
    %c0_36 = arith.constant 0 : index
    %74 = vector.load %arg3[%c107, %c0_36] : memref<136x32xf32, #tpu.memory_space<vmem>>, vector<1x32xf32>
    %75 = arith.addf %73, %74 : vector<1x32xf32>
    %c132_i32_37 = arith.constant 132 : i32
    %76 = arith.addi %c132_i32_37, %71 : i32
    %77 = arith.index_cast %76 : i32 to index
    %c0_38 = arith.constant 0 : index
    %78 = vector.load %arg3[%77, %c0_38] : memref<136x32xf32, #tpu.memory_space<vmem>>, vector<1x32xf32>
    %79 = arith.addf %75, %78 : vector<1x32xf32>
    %c8 = arith.constant 8 : index
    %80 = memref.load %arg1[%c8] : memref<16xi32, #tpu.memory_space<smem>>
    %c8_39 = arith.constant 8 : index
    %81 = memref.load %arg2[%c8_39] : memref<16xi32, #tpu.memory_space<smem>>
    %82 = arith.index_cast %80 : i32 to index
    %c0_40 = arith.constant 0 : index
    %83 = vector.load %arg3[%82, %c0_40] : memref<136x32xf32, #tpu.memory_space<vmem>>, vector<1x32xf32>
    %c100_41 = arith.constant 100 : index
    %c0_42 = arith.constant 0 : index
    %84 = vector.load %arg3[%c100_41, %c0_42] : memref<136x32xf32, #tpu.memory_space<vmem>>, vector<1x32xf32>
    %85 = arith.addf %83, %84 : vector<1x32xf32>
    %c132_i32_43 = arith.constant 132 : i32
    %86 = arith.addi %c132_i32_43, %81 : i32
    %87 = arith.index_cast %86 : i32 to index
    %c0_44 = arith.constant 0 : index
    %88 = vector.load %arg3[%87, %c0_44] : memref<136x32xf32, #tpu.memory_space<vmem>>, vector<1x32xf32>
    %89 = arith.addf %85, %88 : vector<1x32xf32>
    %c9 = arith.constant 9 : index
    %90 = memref.load %arg1[%c9] : memref<16xi32, #tpu.memory_space<smem>>
    %c9_45 = arith.constant 9 : index
    %91 = memref.load %arg2[%c9_45] : memref<16xi32, #tpu.memory_space<smem>>
    %92 = arith.index_cast %90 : i32 to index
    %c0_46 = arith.constant 0 : index
    %93 = vector.load %arg3[%92, %c0_46] : memref<136x32xf32, #tpu.memory_space<vmem>>, vector<1x32xf32>
    %c101_47 = arith.constant 101 : index
    %c0_48 = arith.constant 0 : index
    %94 = vector.load %arg3[%c101_47, %c0_48] : memref<136x32xf32, #tpu.memory_space<vmem>>, vector<1x32xf32>
    %95 = arith.addf %93, %94 : vector<1x32xf32>
    %c132_i32_49 = arith.constant 132 : i32
    %96 = arith.addi %c132_i32_49, %91 : i32
    %97 = arith.index_cast %96 : i32 to index
    %c0_50 = arith.constant 0 : index
    %98 = vector.load %arg3[%97, %c0_50] : memref<136x32xf32, #tpu.memory_space<vmem>>, vector<1x32xf32>
    %99 = arith.addf %95, %98 : vector<1x32xf32>
    %c10 = arith.constant 10 : index
    %100 = memref.load %arg1[%c10] : memref<16xi32, #tpu.memory_space<smem>>
    %c10_51 = arith.constant 10 : index
    %101 = memref.load %arg2[%c10_51] : memref<16xi32, #tpu.memory_space<smem>>
    %102 = arith.index_cast %100 : i32 to index
    %c0_52 = arith.constant 0 : index
    %103 = vector.load %arg3[%102, %c0_52] : memref<136x32xf32, #tpu.memory_space<vmem>>, vector<1x32xf32>
    %c102_53 = arith.constant 102 : index
    %c0_54 = arith.constant 0 : index
    %104 = vector.load %arg3[%c102_53, %c0_54] : memref<136x32xf32, #tpu.memory_space<vmem>>, vector<1x32xf32>
    %105 = arith.addf %103, %104 : vector<1x32xf32>
    %c132_i32_55 = arith.constant 132 : i32
    %106 = arith.addi %c132_i32_55, %101 : i32
    %107 = arith.index_cast %106 : i32 to index
    %c0_56 = arith.constant 0 : index
    %108 = vector.load %arg3[%107, %c0_56] : memref<136x32xf32, #tpu.memory_space<vmem>>, vector<1x32xf32>
    %109 = arith.addf %105, %108 : vector<1x32xf32>
    %c11 = arith.constant 11 : index
    %110 = memref.load %arg1[%c11] : memref<16xi32, #tpu.memory_space<smem>>
    %c11_57 = arith.constant 11 : index
    %111 = memref.load %arg2[%c11_57] : memref<16xi32, #tpu.memory_space<smem>>
    %112 = arith.index_cast %110 : i32 to index
    %c0_58 = arith.constant 0 : index
    %113 = vector.load %arg3[%112, %c0_58] : memref<136x32xf32, #tpu.memory_space<vmem>>, vector<1x32xf32>
    %c103_59 = arith.constant 103 : index
    %c0_60 = arith.constant 0 : index
    %114 = vector.load %arg3[%c103_59, %c0_60] : memref<136x32xf32, #tpu.memory_space<vmem>>, vector<1x32xf32>
    %115 = arith.addf %113, %114 : vector<1x32xf32>
    %c132_i32_61 = arith.constant 132 : i32
    %116 = arith.addi %c132_i32_61, %111 : i32
    %117 = arith.index_cast %116 : i32 to index
    %c0_62 = arith.constant 0 : index
    %118 = vector.load %arg3[%117, %c0_62] : memref<136x32xf32, #tpu.memory_space<vmem>>, vector<1x32xf32>
    %119 = arith.addf %115, %118 : vector<1x32xf32>
    %c12 = arith.constant 12 : index
    %120 = memref.load %arg1[%c12] : memref<16xi32, #tpu.memory_space<smem>>
    %c12_63 = arith.constant 12 : index
    %121 = memref.load %arg2[%c12_63] : memref<16xi32, #tpu.memory_space<smem>>
    %122 = arith.index_cast %120 : i32 to index
    %c0_64 = arith.constant 0 : index
    %123 = vector.load %arg3[%122, %c0_64] : memref<136x32xf32, #tpu.memory_space<vmem>>, vector<1x32xf32>
    %c104_65 = arith.constant 104 : index
    %c0_66 = arith.constant 0 : index
    %124 = vector.load %arg3[%c104_65, %c0_66] : memref<136x32xf32, #tpu.memory_space<vmem>>, vector<1x32xf32>
    %125 = arith.addf %123, %124 : vector<1x32xf32>
    %c132_i32_67 = arith.constant 132 : i32
    %126 = arith.addi %c132_i32_67, %121 : i32
    %127 = arith.index_cast %126 : i32 to index
    %c0_68 = arith.constant 0 : index
    %128 = vector.load %arg3[%127, %c0_68] : memref<136x32xf32, #tpu.memory_space<vmem>>, vector<1x32xf32>
    %129 = arith.addf %125, %128 : vector<1x32xf32>
    %c13 = arith.constant 13 : index
    %130 = memref.load %arg1[%c13] : memref<16xi32, #tpu.memory_space<smem>>
    %c13_69 = arith.constant 13 : index
    %131 = memref.load %arg2[%c13_69] : memref<16xi32, #tpu.memory_space<smem>>
    %132 = arith.index_cast %130 : i32 to index
    %c0_70 = arith.constant 0 : index
    %133 = vector.load %arg3[%132, %c0_70] : memref<136x32xf32, #tpu.memory_space<vmem>>, vector<1x32xf32>
    %c105_71 = arith.constant 105 : index
    %c0_72 = arith.constant 0 : index
    %134 = vector.load %arg3[%c105_71, %c0_72] : memref<136x32xf32, #tpu.memory_space<vmem>>, vector<1x32xf32>
    %135 = arith.addf %133, %134 : vector<1x32xf32>
    %c132_i32_73 = arith.constant 132 : i32
    %136 = arith.addi %c132_i32_73, %131 : i32
    %137 = arith.index_cast %136 : i32 to index
    %c0_74 = arith.constant 0 : index
    %138 = vector.load %arg3[%137, %c0_74] : memref<136x32xf32, #tpu.memory_space<vmem>>, vector<1x32xf32>
    %139 = arith.addf %135, %138 : vector<1x32xf32>
    %c14 = arith.constant 14 : index
    %140 = memref.load %arg1[%c14] : memref<16xi32, #tpu.memory_space<smem>>
    %c14_75 = arith.constant 14 : index
    %141 = memref.load %arg2[%c14_75] : memref<16xi32, #tpu.memory_space<smem>>
    %142 = arith.index_cast %140 : i32 to index
    %c0_76 = arith.constant 0 : index
    %143 = vector.load %arg3[%142, %c0_76] : memref<136x32xf32, #tpu.memory_space<vmem>>, vector<1x32xf32>
    %c106_77 = arith.constant 106 : index
    %c0_78 = arith.constant 0 : index
    %144 = vector.load %arg3[%c106_77, %c0_78] : memref<136x32xf32, #tpu.memory_space<vmem>>, vector<1x32xf32>
    %145 = arith.addf %143, %144 : vector<1x32xf32>
    %c132_i32_79 = arith.constant 132 : i32
    %146 = arith.addi %c132_i32_79, %141 : i32
    %147 = arith.index_cast %146 : i32 to index
    %c0_80 = arith.constant 0 : index
    %148 = vector.load %arg3[%147, %c0_80] : memref<136x32xf32, #tpu.memory_space<vmem>>, vector<1x32xf32>
    %149 = arith.addf %145, %148 : vector<1x32xf32>
    %c15 = arith.constant 15 : index
    %150 = memref.load %arg1[%c15] : memref<16xi32, #tpu.memory_space<smem>>
    %c15_81 = arith.constant 15 : index
    %151 = memref.load %arg2[%c15_81] : memref<16xi32, #tpu.memory_space<smem>>
    %152 = arith.index_cast %150 : i32 to index
    %c0_82 = arith.constant 0 : index
    %153 = vector.load %arg3[%152, %c0_82] : memref<136x32xf32, #tpu.memory_space<vmem>>, vector<1x32xf32>
    %c107_83 = arith.constant 107 : index
    %c0_84 = arith.constant 0 : index
    %154 = vector.load %arg3[%c107_83, %c0_84] : memref<136x32xf32, #tpu.memory_space<vmem>>, vector<1x32xf32>
    %155 = arith.addf %153, %154 : vector<1x32xf32>
    %c132_i32_85 = arith.constant 132 : i32
    %156 = arith.addi %c132_i32_85, %151 : i32
    %157 = arith.index_cast %156 : i32 to index
    %c0_86 = arith.constant 0 : index
    %158 = vector.load %arg3[%157, %c0_86] : memref<136x32xf32, #tpu.memory_space<vmem>>, vector<1x32xf32>
    %159 = arith.addf %155, %158 : vector<1x32xf32>
    %160 = tpu.concatenate %9, %19, %29, %39, %49, %59, %69, %79, %89, %99, %109, %119, %129, %139, %149, %159 in 0 : vector<1x32xf32>, vector<1x32xf32>, vector<1x32xf32>, vector<1x32xf32>, vector<1x32xf32>, vector<1x32xf32>, vector<1x32xf32>, vector<1x32xf32>, vector<1x32xf32>, vector<1x32xf32>, vector<1x32xf32>, vector<1x32xf32>, vector<1x32xf32>, vector<1x32xf32>, vector<1x32xf32>, vector<1x32xf32> -> vector<16x32xf32>
    %c134 = arith.constant 134 : index
    %c0_87 = arith.constant 0 : index
    %161 = vector.load %arg3[%c134, %c0_87] : memref<136x32xf32, #tpu.memory_space<vmem>>, vector<1x32xf32>
    %c135 = arith.constant 135 : index
    %c0_88 = arith.constant 0 : index
    %162 = vector.load %arg3[%c135, %c0_88] : memref<136x32xf32, #tpu.memory_space<vmem>>, vector<1x32xf32>
    %cst = arith.constant dense<0.000000e+00> : vector<16xf32>
    %163 = vector.multi_reduction <add>, %160, %cst [1] : vector<16x32xf32> to vector<16xf32>
    %164 = vector.shape_cast %163 : vector<16xf32> to vector<16x1xf32>
    %cst_89 = arith.constant 3.200000e+01 : f32
    %165 = vector.broadcast %cst_89 : f32 to vector<16x1xf32>
    %166 = arith.divf %164, %165 : vector<16x1xf32>
    %167 = vector.broadcast %166 : vector<16x1xf32> to vector<16x32xf32>
    %168 = arith.subf %160, %167 : vector<16x32xf32>
    %169 = arith.mulf %168, %168 : vector<16x32xf32>
    %cst_90 = arith.constant dense<0.000000e+00> : vector<16xf32>
    %170 = vector.multi_reduction <add>, %169, %cst_90 [1] : vector<16x32xf32> to vector<16xf32>
    %171 = vector.shape_cast %170 : vector<16xf32> to vector<16x1xf32>
    %cst_91 = arith.constant 3.200000e+01 : f32
    %172 = vector.broadcast %cst_91 : f32 to vector<16x1xf32>
    %173 = arith.divf %171, %172 : vector<16x1xf32>
    %174 = vector.broadcast %166 : vector<16x1xf32> to vector<16x32xf32>
    %175 = arith.subf %160, %174 : vector<16x32xf32>
    %cst_92 = arith.constant 9.99999996E-13 : f32
    %176 = vector.broadcast %cst_92 : f32 to vector<16x1xf32>
    %177 = arith.addf %173, %176 : vector<16x1xf32>
    %178 = math.rsqrt %177 : vector<16x1xf32>
    %179 = vector.broadcast %178 : vector<16x1xf32> to vector<16x32xf32>
    %180 = arith.mulf %175, %179 : vector<16x32xf32>
    %181 = vector.broadcast %161 : vector<1x32xf32> to vector<16x32xf32>
    %182 = arith.mulf %180, %181 : vector<16x32xf32>
    %183 = vector.broadcast %162 : vector<1x32xf32> to vector<16x32xf32>
    %184 = arith.addf %182, %183 : vector<16x32xf32>
    %c0_93 = arith.constant 0 : index
    %c0_94 = arith.constant 0 : index
    %185 = vector.load %arg4[%c0_93, %c0_94] : memref<2x8xf32, #tpu.memory_space<vmem>>, vector<2x8xf32>
    %cst_95 = arith.constant 1.000000e+00 : f32
    %186 = vector.broadcast %cst_95 : f32 to vector<2x8xf32>
    %187 = arith.subf %186, %185 : vector<2x8xf32>
    %cst_96 = arith.constant -1.000000e+04 : f32
    %188 = vector.broadcast %cst_96 : f32 to vector<2x8xf32>
    %189 = arith.mulf %187, %188 : vector<2x8xf32>
    %c0_97 = arith.constant 0 : index
    %c0_98 = arith.constant 0 : index
    %c0_99 = arith.constant 0 : index
    %190 = vector.load %arg6[%c0_97, %c0_98, %c0_99] : memref<2x11x32xf32, #tpu.memory_space<vmem>>, vector<1x11x32xf32>
    %191 = vector.shape_cast %190 : vector<1x11x32xf32> to vector<11x32xf32>
    %c0_100 = arith.constant 0 : index
    %c0_101 = arith.constant 0 : index
    %c0_102 = arith.constant 0 : index
    %c0_103 = arith.constant 0 : index
    %192 = vector.load %arg5[%c0_100, %c0_101, %c0_102, %c0_103] : memref<2x8x32x32xbf16, #tpu.memory_space<vmem>>, vector<1x1x32x32xbf16>
    %193 = vector.shape_cast %192 : vector<1x1x32x32xbf16> to vector<32x32xbf16>
    %194 = arith.truncf %184 : vector<16x32xf32> to vector<16x32xbf16>
    %cst_104 = arith.constant dense<0.000000e+00> : vector<16x32xf32>
    %195 = tpu.matmul %194, %193, %cst_104 {dimension_numbers = #tpu.dot_dimension_numbers<[1], [0], [0], [1], [0, 0, 1, 1], [], []>} : vector<16x32xbf16>, vector<32x32xbf16>, vector<16x32xf32> -> vector<16x32xf32>
    %196 = vector.extract_strided_slice %191 {offsets = [0, 0], sizes = [1, 32], strides = [1, 1]} : vector<11x32xf32> to vector<1x32xf32>
    %197 = vector.broadcast %196 : vector<1x32xf32> to vector<16x32xf32>
    %198 = arith.addf %195, %197 : vector<16x32xf32>
    %c0_105 = arith.constant 0 : index
    %c1_106 = arith.constant 1 : index
    %c0_107 = arith.constant 0 : index
    %c0_108 = arith.constant 0 : index
    %199 = vector.load %arg5[%c0_105, %c1_106, %c0_107, %c0_108] : memref<2x8x32x32xbf16, #tpu.memory_space<vmem>>, vector<1x1x32x32xbf16>
    %200 = vector.shape_cast %199 : vector<1x1x32x32xbf16> to vector<32x32xbf16>
    %201 = arith.truncf %184 : vector<16x32xf32> to vector<16x32xbf16>
    %cst_109 = arith.constant dense<0.000000e+00> : vector<16x32xf32>
    %202 = tpu.matmul %201, %200, %cst_109 {dimension_numbers = #tpu.dot_dimension_numbers<[1], [0], [0], [1], [0, 0, 1, 1], [], []>} : vector<16x32xbf16>, vector<32x32xbf16>, vector<16x32xf32> -> vector<16x32xf32>
    %203 = vector.extract_strided_slice %191 {offsets = [1, 0], sizes = [1, 32], strides = [1, 1]} : vector<11x32xf32> to vector<1x32xf32>
    %204 = vector.broadcast %203 : vector<1x32xf32> to vector<16x32xf32>
    %205 = arith.addf %202, %204 : vector<16x32xf32>
    %c0_110 = arith.constant 0 : index
    %c2_111 = arith.constant 2 : index
    %c0_112 = arith.constant 0 : index
    %c0_113 = arith.constant 0 : index
    %206 = vector.load %arg5[%c0_110, %c2_111, %c0_112, %c0_113] : memref<2x8x32x32xbf16, #tpu.memory_space<vmem>>, vector<1x1x32x32xbf16>
    %207 = vector.shape_cast %206 : vector<1x1x32x32xbf16> to vector<32x32xbf16>
    %208 = arith.truncf %184 : vector<16x32xf32> to vector<16x32xbf16>
    %cst_114 = arith.constant dense<0.000000e+00> : vector<16x32xf32>
    %209 = tpu.matmul %208, %207, %cst_114 {dimension_numbers = #tpu.dot_dimension_numbers<[1], [0], [0], [1], [0, 0, 1, 1], [], []>} : vector<16x32xbf16>, vector<32x32xbf16>, vector<16x32xf32> -> vector<16x32xf32>
    %210 = vector.extract_strided_slice %191 {offsets = [2, 0], sizes = [1, 32], strides = [1, 1]} : vector<11x32xf32> to vector<1x32xf32>
    %211 = vector.broadcast %210 : vector<1x32xf32> to vector<16x32xf32>
    %212 = arith.addf %209, %211 : vector<16x32xf32>
    %213 = vector.extract_strided_slice %189 {offsets = [0, 0], sizes = [1, 8], strides = [1, 1]} : vector<2x8xf32> to vector<1x8xf32>
    %214 = vector.extract_strided_slice %198 {offsets = [0, 0], sizes = [8, 32], strides = [1, 1]} : vector<16x32xf32> to vector<8x32xf32>
    %215 = vector.extract_strided_slice %205 {offsets = [0, 0], sizes = [8, 32], strides = [1, 1]} : vector<16x32xf32> to vector<8x32xf32>
    %216 = vector.extract_strided_slice %212 {offsets = [0, 0], sizes = [8, 32], strides = [1, 1]} : vector<16x32xf32> to vector<8x32xf32>
    %217 = vector.extract_strided_slice %214 {offsets = [0, 0], sizes = [8, 16], strides = [1, 1]} : vector<8x32xf32> to vector<8x16xf32>
    %218 = vector.extract_strided_slice %215 {offsets = [0, 0], sizes = [8, 16], strides = [1, 1]} : vector<8x32xf32> to vector<8x16xf32>
    %219 = vector.extract_strided_slice %216 {offsets = [0, 0], sizes = [8, 16], strides = [1, 1]} : vector<8x32xf32> to vector<8x16xf32>
    %220 = tpu.transpose %218, [1, 0] : vector<8x16xf32> -> vector<16x8xf32>
    %221 = arith.truncf %217 : vector<8x16xf32> to vector<8x16xbf16>
    %222 = arith.truncf %220 : vector<16x8xf32> to vector<16x8xbf16>
    %cst_115 = arith.constant dense<0.000000e+00> : vector<8x8xf32>
    %223 = tpu.matmul %221, %222, %cst_115 {dimension_numbers = #tpu.dot_dimension_numbers<[1], [0], [0], [1], [0, 0, 1, 1], [], []>} : vector<8x16xbf16>, vector<16x8xbf16>, vector<8x8xf32> -> vector<8x8xf32>
    %cst_116 = arith.constant 2.500000e-01 : f32
    %224 = vector.broadcast %cst_116 : f32 to vector<8x8xf32>
    %225 = arith.mulf %223, %224 : vector<8x8xf32>
    %226 = vector.broadcast %213 : vector<1x8xf32> to vector<8x8xf32>
    %227 = arith.addf %225, %226 : vector<8x8xf32>
    %cst_117 = arith.constant dense<0xFF800000> : vector<8xf32>
    %228 = vector.multi_reduction <maximumf>, %227, %cst_117 [1] : vector<8x8xf32> to vector<8xf32>
    %229 = vector.shape_cast %228 : vector<8xf32> to vector<8x1xf32>
    %230 = vector.broadcast %229 : vector<8x1xf32> to vector<8x8xf32>
    %231 = arith.subf %227, %230 : vector<8x8xf32>
    %232 = math.exp %231 : vector<8x8xf32>
    %cst_118 = arith.constant dense<0.000000e+00> : vector<8xf32>
    %233 = vector.multi_reduction <add>, %232, %cst_118 [1] : vector<8x8xf32> to vector<8xf32>
    %234 = vector.shape_cast %233 : vector<8xf32> to vector<8x1xf32>
    %235 = tpu.reciprocal %234 {approx = true} : vector<8x1xf32> -> vector<8x1xf32>
    %236 = vector.broadcast %235 : vector<8x1xf32> to vector<8x8xf32>
    %237 = arith.mulf %232, %236 : vector<8x8xf32>
    %238 = arith.truncf %237 : vector<8x8xf32> to vector<8x8xbf16>
    %239 = arith.truncf %219 : vector<8x16xf32> to vector<8x16xbf16>
    %cst_119 = arith.constant dense<0.000000e+00> : vector<8x16xf32>
    %240 = tpu.matmul %238, %239, %cst_119 {dimension_numbers = #tpu.dot_dimension_numbers<[1], [0], [0], [1], [0, 0, 1, 1], [], []>} : vector<8x8xbf16>, vector<8x16xbf16>, vector<8x16xf32> -> vector<8x16xf32>
    %241 = vector.extract_strided_slice %214 {offsets = [0, 16], sizes = [8, 16], strides = [1, 1]} : vector<8x32xf32> to vector<8x16xf32>
    %242 = vector.extract_strided_slice %215 {offsets = [0, 16], sizes = [8, 16], strides = [1, 1]} : vector<8x32xf32> to vector<8x16xf32>
    %243 = vector.extract_strided_slice %216 {offsets = [0, 16], sizes = [8, 16], strides = [1, 1]} : vector<8x32xf32> to vector<8x16xf32>
    %244 = tpu.transpose %242, [1, 0] : vector<8x16xf32> -> vector<16x8xf32>
    %245 = arith.truncf %241 : vector<8x16xf32> to vector<8x16xbf16>
    %246 = arith.truncf %244 : vector<16x8xf32> to vector<16x8xbf16>
    %cst_120 = arith.constant dense<0.000000e+00> : vector<8x8xf32>
    %247 = tpu.matmul %245, %246, %cst_120 {dimension_numbers = #tpu.dot_dimension_numbers<[1], [0], [0], [1], [0, 0, 1, 1], [], []>} : vector<8x16xbf16>, vector<16x8xbf16>, vector<8x8xf32> -> vector<8x8xf32>
    %cst_121 = arith.constant 2.500000e-01 : f32
    %248 = vector.broadcast %cst_121 : f32 to vector<8x8xf32>
    %249 = arith.mulf %247, %248 : vector<8x8xf32>
    %250 = vector.broadcast %213 : vector<1x8xf32> to vector<8x8xf32>
    %251 = arith.addf %249, %250 : vector<8x8xf32>
    %cst_122 = arith.constant dense<0xFF800000> : vector<8xf32>
    %252 = vector.multi_reduction <maximumf>, %251, %cst_122 [1] : vector<8x8xf32> to vector<8xf32>
    %253 = vector.shape_cast %252 : vector<8xf32> to vector<8x1xf32>
    %254 = vector.broadcast %253 : vector<8x1xf32> to vector<8x8xf32>
    %255 = arith.subf %251, %254 : vector<8x8xf32>
    %256 = math.exp %255 : vector<8x8xf32>
    %cst_123 = arith.constant dense<0.000000e+00> : vector<8xf32>
    %257 = vector.multi_reduction <add>, %256, %cst_123 [1] : vector<8x8xf32> to vector<8xf32>
    %258 = vector.shape_cast %257 : vector<8xf32> to vector<8x1xf32>
    %259 = tpu.reciprocal %258 {approx = true} : vector<8x1xf32> -> vector<8x1xf32>
    %260 = vector.broadcast %259 : vector<8x1xf32> to vector<8x8xf32>
    %261 = arith.mulf %256, %260 : vector<8x8xf32>
    %262 = arith.truncf %261 : vector<8x8xf32> to vector<8x8xbf16>
    %263 = arith.truncf %243 : vector<8x16xf32> to vector<8x16xbf16>
    %cst_124 = arith.constant dense<0.000000e+00> : vector<8x16xf32>
    %264 = tpu.matmul %262, %263, %cst_124 {dimension_numbers = #tpu.dot_dimension_numbers<[1], [0], [0], [1], [0, 0, 1, 1], [], []>} : vector<8x8xbf16>, vector<8x16xbf16>, vector<8x16xf32> -> vector<8x16xf32>
    %265 = tpu.concatenate %240, %264 in 1 : vector<8x16xf32>, vector<8x16xf32> -> vector<8x32xf32>
    %266 = vector.extract_strided_slice %189 {offsets = [1, 0], sizes = [1, 8], strides = [1, 1]} : vector<2x8xf32> to vector<1x8xf32>
    %267 = vector.extract_strided_slice %198 {offsets = [8, 0], sizes = [8, 32], strides = [1, 1]} : vector<16x32xf32> to vector<8x32xf32>
    %268 = vector.extract_strided_slice %205 {offsets = [8, 0], sizes = [8, 32], strides = [1, 1]} : vector<16x32xf32> to vector<8x32xf32>
    %269 = vector.extract_strided_slice %212 {offsets = [8, 0], sizes = [8, 32], strides = [1, 1]} : vector<16x32xf32> to vector<8x32xf32>
    %270 = vector.extract_strided_slice %267 {offsets = [0, 0], sizes = [8, 16], strides = [1, 1]} : vector<8x32xf32> to vector<8x16xf32>
    %271 = vector.extract_strided_slice %268 {offsets = [0, 0], sizes = [8, 16], strides = [1, 1]} : vector<8x32xf32> to vector<8x16xf32>
    %272 = vector.extract_strided_slice %269 {offsets = [0, 0], sizes = [8, 16], strides = [1, 1]} : vector<8x32xf32> to vector<8x16xf32>
    %273 = tpu.transpose %271, [1, 0] : vector<8x16xf32> -> vector<16x8xf32>
    %274 = arith.truncf %270 : vector<8x16xf32> to vector<8x16xbf16>
    %275 = arith.truncf %273 : vector<16x8xf32> to vector<16x8xbf16>
    %cst_125 = arith.constant dense<0.000000e+00> : vector<8x8xf32>
    %276 = tpu.matmul %274, %275, %cst_125 {dimension_numbers = #tpu.dot_dimension_numbers<[1], [0], [0], [1], [0, 0, 1, 1], [], []>} : vector<8x16xbf16>, vector<16x8xbf16>, vector<8x8xf32> -> vector<8x8xf32>
    %cst_126 = arith.constant 2.500000e-01 : f32
    %277 = vector.broadcast %cst_126 : f32 to vector<8x8xf32>
    %278 = arith.mulf %276, %277 : vector<8x8xf32>
    %279 = vector.broadcast %266 : vector<1x8xf32> to vector<8x8xf32>
    %280 = arith.addf %278, %279 : vector<8x8xf32>
    %cst_127 = arith.constant dense<0xFF800000> : vector<8xf32>
    %281 = vector.multi_reduction <maximumf>, %280, %cst_127 [1] : vector<8x8xf32> to vector<8xf32>
    %282 = vector.shape_cast %281 : vector<8xf32> to vector<8x1xf32>
    %283 = vector.broadcast %282 : vector<8x1xf32> to vector<8x8xf32>
    %284 = arith.subf %280, %283 : vector<8x8xf32>
    %285 = math.exp %284 : vector<8x8xf32>
    %cst_128 = arith.constant dense<0.000000e+00> : vector<8xf32>
    %286 = vector.multi_reduction <add>, %285, %cst_128 [1] : vector<8x8xf32> to vector<8xf32>
    %287 = vector.shape_cast %286 : vector<8xf32> to vector<8x1xf32>
    %288 = tpu.reciprocal %287 {approx = true} : vector<8x1xf32> -> vector<8x1xf32>
    %289 = vector.broadcast %288 : vector<8x1xf32> to vector<8x8xf32>
    %290 = arith.mulf %285, %289 : vector<8x8xf32>
    %291 = arith.truncf %290 : vector<8x8xf32> to vector<8x8xbf16>
    %292 = arith.truncf %272 : vector<8x16xf32> to vector<8x16xbf16>
    %cst_129 = arith.constant dense<0.000000e+00> : vector<8x16xf32>
    %293 = tpu.matmul %291, %292, %cst_129 {dimension_numbers = #tpu.dot_dimension_numbers<[1], [0], [0], [1], [0, 0, 1, 1], [], []>} : vector<8x8xbf16>, vector<8x16xbf16>, vector<8x16xf32> -> vector<8x16xf32>
    %294 = vector.extract_strided_slice %267 {offsets = [0, 16], sizes = [8, 16], strides = [1, 1]} : vector<8x32xf32> to vector<8x16xf32>
    %295 = vector.extract_strided_slice %268 {offsets = [0, 16], sizes = [8, 16], strides = [1, 1]} : vector<8x32xf32> to vector<8x16xf32>
    %296 = vector.extract_strided_slice %269 {offsets = [0, 16], sizes = [8, 16], strides = [1, 1]} : vector<8x32xf32> to vector<8x16xf32>
    %297 = tpu.transpose %295, [1, 0] : vector<8x16xf32> -> vector<16x8xf32>
    %298 = arith.truncf %294 : vector<8x16xf32> to vector<8x16xbf16>
    %299 = arith.truncf %297 : vector<16x8xf32> to vector<16x8xbf16>
    %cst_130 = arith.constant dense<0.000000e+00> : vector<8x8xf32>
    %300 = tpu.matmul %298, %299, %cst_130 {dimension_numbers = #tpu.dot_dimension_numbers<[1], [0], [0], [1], [0, 0, 1, 1], [], []>} : vector<8x16xbf16>, vector<16x8xbf16>, vector<8x8xf32> -> vector<8x8xf32>
    %cst_131 = arith.constant 2.500000e-01 : f32
    %301 = vector.broadcast %cst_131 : f32 to vector<8x8xf32>
    %302 = arith.mulf %300, %301 : vector<8x8xf32>
    %303 = vector.broadcast %266 : vector<1x8xf32> to vector<8x8xf32>
    %304 = arith.addf %302, %303 : vector<8x8xf32>
    %cst_132 = arith.constant dense<0xFF800000> : vector<8xf32>
    %305 = vector.multi_reduction <maximumf>, %304, %cst_132 [1] : vector<8x8xf32> to vector<8xf32>
    %306 = vector.shape_cast %305 : vector<8xf32> to vector<8x1xf32>
    %307 = vector.broadcast %306 : vector<8x1xf32> to vector<8x8xf32>
    %308 = arith.subf %304, %307 : vector<8x8xf32>
    %309 = math.exp %308 : vector<8x8xf32>
    %cst_133 = arith.constant dense<0.000000e+00> : vector<8xf32>
    %310 = vector.multi_reduction <add>, %309, %cst_133 [1] : vector<8x8xf32> to vector<8xf32>
    %311 = vector.shape_cast %310 : vector<8xf32> to vector<8x1xf32>
    %312 = tpu.reciprocal %311 {approx = true} : vector<8x1xf32> -> vector<8x1xf32>
    %313 = vector.broadcast %312 : vector<8x1xf32> to vector<8x8xf32>
    %314 = arith.mulf %309, %313 : vector<8x8xf32>
    %315 = arith.truncf %314 : vector<8x8xf32> to vector<8x8xbf16>
    %316 = arith.truncf %296 : vector<8x16xf32> to vector<8x16xbf16>
    %cst_134 = arith.constant dense<0.000000e+00> : vector<8x16xf32>
    %317 = tpu.matmul %315, %316, %cst_134 {dimension_numbers = #tpu.dot_dimension_numbers<[1], [0], [0], [1], [0, 0, 1, 1], [], []>} : vector<8x8xbf16>, vector<8x16xbf16>, vector<8x16xf32> -> vector<8x16xf32>
    %318 = tpu.concatenate %293, %317 in 1 : vector<8x16xf32>, vector<8x16xf32> -> vector<8x32xf32>
    %319 = tpu.concatenate %265, %318 in 0 : vector<8x32xf32>, vector<8x32xf32> -> vector<16x32xf32>
    %c0_135 = arith.constant 0 : index
    %c3_136 = arith.constant 3 : index
    %c0_137 = arith.constant 0 : index
    %c0_138 = arith.constant 0 : index
    %320 = vector.load %arg5[%c0_135, %c3_136, %c0_137, %c0_138] : memref<2x8x32x32xbf16, #tpu.memory_space<vmem>>, vector<1x1x32x32xbf16>
    %321 = vector.shape_cast %320 : vector<1x1x32x32xbf16> to vector<32x32xbf16>
    %322 = arith.truncf %319 : vector<16x32xf32> to vector<16x32xbf16>
    %cst_139 = arith.constant dense<0.000000e+00> : vector<16x32xf32>
    %323 = tpu.matmul %322, %321, %cst_139 {dimension_numbers = #tpu.dot_dimension_numbers<[1], [0], [0], [1], [0, 0, 1, 1], [], []>} : vector<16x32xbf16>, vector<32x32xbf16>, vector<16x32xf32> -> vector<16x32xf32>
    %324 = vector.extract_strided_slice %191 {offsets = [3, 0], sizes = [1, 32], strides = [1, 1]} : vector<11x32xf32> to vector<1x32xf32>
    %325 = vector.broadcast %324 : vector<1x32xf32> to vector<16x32xf32>
    %326 = arith.addf %323, %325 : vector<16x32xf32>
    %327 = arith.addf %326, %184 : vector<16x32xf32>
    %328 = vector.extract_strided_slice %191 {offsets = [4, 0], sizes = [1, 32], strides = [1, 1]} : vector<11x32xf32> to vector<1x32xf32>
    %329 = vector.extract_strided_slice %191 {offsets = [5, 0], sizes = [1, 32], strides = [1, 1]} : vector<11x32xf32> to vector<1x32xf32>
    %cst_140 = arith.constant dense<0.000000e+00> : vector<16xf32>
    %330 = vector.multi_reduction <add>, %327, %cst_140 [1] : vector<16x32xf32> to vector<16xf32>
    %331 = vector.shape_cast %330 : vector<16xf32> to vector<16x1xf32>
    %cst_141 = arith.constant 3.200000e+01 : f32
    %332 = vector.broadcast %cst_141 : f32 to vector<16x1xf32>
    %333 = arith.divf %331, %332 : vector<16x1xf32>
    %334 = vector.broadcast %333 : vector<16x1xf32> to vector<16x32xf32>
    %335 = arith.subf %327, %334 : vector<16x32xf32>
    %336 = arith.mulf %335, %335 : vector<16x32xf32>
    %cst_142 = arith.constant dense<0.000000e+00> : vector<16xf32>
    %337 = vector.multi_reduction <add>, %336, %cst_142 [1] : vector<16x32xf32> to vector<16xf32>
    %338 = vector.shape_cast %337 : vector<16xf32> to vector<16x1xf32>
    %cst_143 = arith.constant 3.200000e+01 : f32
    %339 = vector.broadcast %cst_143 : f32 to vector<16x1xf32>
    %340 = arith.divf %338, %339 : vector<16x1xf32>
    %341 = vector.broadcast %333 : vector<16x1xf32> to vector<16x32xf32>
    %342 = arith.subf %327, %341 : vector<16x32xf32>
    %cst_144 = arith.constant 9.99999996E-13 : f32
    %343 = vector.broadcast %cst_144 : f32 to vector<16x1xf32>
    %344 = arith.addf %340, %343 : vector<16x1xf32>
    %345 = math.rsqrt %344 : vector<16x1xf32>
    %346 = vector.broadcast %345 : vector<16x1xf32> to vector<16x32xf32>
    %347 = arith.mulf %342, %346 : vector<16x32xf32>
    %348 = vector.broadcast %328 : vector<1x32xf32> to vector<16x32xf32>
    %349 = arith.mulf %347, %348 : vector<16x32xf32>
    %350 = vector.broadcast %329 : vector<1x32xf32> to vector<16x32xf32>
    %351 = arith.addf %349, %350 : vector<16x32xf32>
    %c0_145 = arith.constant 0 : index
    %c4_146 = arith.constant 4 : index
    %c0_147 = arith.constant 0 : index
    %c0_148 = arith.constant 0 : index
    %352 = vector.load %arg5[%c0_145, %c4_146, %c0_147, %c0_148] : memref<2x8x32x32xbf16, #tpu.memory_space<vmem>>, vector<1x1x32x32xbf16>
    %353 = vector.shape_cast %352 : vector<1x1x32x32xbf16> to vector<32x32xbf16>
    %354 = arith.truncf %351 : vector<16x32xf32> to vector<16x32xbf16>
    %cst_149 = arith.constant dense<0.000000e+00> : vector<16x32xf32>
    %355 = tpu.matmul %354, %353, %cst_149 {dimension_numbers = #tpu.dot_dimension_numbers<[1], [0], [0], [1], [0, 0, 1, 1], [], []>} : vector<16x32xbf16>, vector<32x32xbf16>, vector<16x32xf32> -> vector<16x32xf32>
    %356 = vector.extract_strided_slice %191 {offsets = [6, 0], sizes = [1, 32], strides = [1, 1]} : vector<11x32xf32> to vector<1x32xf32>
    %357 = vector.broadcast %356 : vector<1x32xf32> to vector<16x32xf32>
    %358 = arith.addf %355, %357 : vector<16x32xf32>
    %359 = arith.mulf %358, %358 : vector<16x32xf32>
    %360 = arith.mulf %358, %359 : vector<16x32xf32>
    %cst_150 = arith.constant 4.471500e-02 : f32
    %361 = vector.broadcast %cst_150 : f32 to vector<16x32xf32>
    %362 = arith.mulf %361, %360 : vector<16x32xf32>
    %363 = arith.addf %358, %362 : vector<16x32xf32>
    %cst_151 = arith.constant 0.797884583 : f32
    %364 = vector.broadcast %cst_151 : f32 to vector<16x32xf32>
    %365 = arith.mulf %364, %363 : vector<16x32xf32>
    %366 = math.tanh %365 : vector<16x32xf32>
    %cst_152 = arith.constant 1.000000e+00 : f32
    %367 = vector.broadcast %cst_152 : f32 to vector<16x32xf32>
    %368 = arith.addf %367, %366 : vector<16x32xf32>
    %cst_153 = arith.constant 5.000000e-01 : f32
    %369 = vector.broadcast %cst_153 : f32 to vector<16x32xf32>
    %370 = arith.mulf %369, %368 : vector<16x32xf32>
    %371 = arith.mulf %358, %370 : vector<16x32xf32>
    %c0_154 = arith.constant 0 : index
    %c5_155 = arith.constant 5 : index
    %c0_156 = arith.constant 0 : index
    %c0_157 = arith.constant 0 : index
    %372 = vector.load %arg5[%c0_154, %c5_155, %c0_156, %c0_157] : memref<2x8x32x32xbf16, #tpu.memory_space<vmem>>, vector<1x1x32x32xbf16>
    %373 = vector.shape_cast %372 : vector<1x1x32x32xbf16> to vector<32x32xbf16>
    %374 = arith.truncf %351 : vector<16x32xf32> to vector<16x32xbf16>
    %cst_158 = arith.constant dense<0.000000e+00> : vector<16x32xf32>
    %375 = tpu.matmul %374, %373, %cst_158 {dimension_numbers = #tpu.dot_dimension_numbers<[1], [0], [0], [1], [0, 0, 1, 1], [], []>} : vector<16x32xbf16>, vector<32x32xbf16>, vector<16x32xf32> -> vector<16x32xf32>
    %376 = vector.extract_strided_slice %191 {offsets = [7, 0], sizes = [1, 32], strides = [1, 1]} : vector<11x32xf32> to vector<1x32xf32>
    %377 = vector.broadcast %376 : vector<1x32xf32> to vector<16x32xf32>
    %378 = arith.addf %375, %377 : vector<16x32xf32>
    %379 = arith.mulf %378, %378 : vector<16x32xf32>
    %380 = arith.mulf %378, %379 : vector<16x32xf32>
    %cst_159 = arith.constant 4.471500e-02 : f32
    %381 = vector.broadcast %cst_159 : f32 to vector<16x32xf32>
    %382 = arith.mulf %381, %380 : vector<16x32xf32>
    %383 = arith.addf %378, %382 : vector<16x32xf32>
    %cst_160 = arith.constant 0.797884583 : f32
    %384 = vector.broadcast %cst_160 : f32 to vector<16x32xf32>
    %385 = arith.mulf %384, %383 : vector<16x32xf32>
    %386 = math.tanh %385 : vector<16x32xf32>
    %cst_161 = arith.constant 1.000000e+00 : f32
    %387 = vector.broadcast %cst_161 : f32 to vector<16x32xf32>
    %388 = arith.addf %387, %386 : vector<16x32xf32>
    %cst_162 = arith.constant 5.000000e-01 : f32
    %389 = vector.broadcast %cst_162 : f32 to vector<16x32xf32>
    %390 = arith.mulf %389, %388 : vector<16x32xf32>
    %391 = arith.mulf %378, %390 : vector<16x32xf32>
    %c0_163 = arith.constant 0 : index
    %c6_164 = arith.constant 6 : index
    %c0_165 = arith.constant 0 : index
    %c0_166 = arith.constant 0 : index
    %392 = vector.load %arg5[%c0_163, %c6_164, %c0_165, %c0_166] : memref<2x8x32x32xbf16, #tpu.memory_space<vmem>>, vector<1x1x32x32xbf16>
    %393 = vector.shape_cast %392 : vector<1x1x32x32xbf16> to vector<32x32xbf16>
    %394 = arith.truncf %371 : vector<16x32xf32> to vector<16x32xbf16>
    %cst_167 = arith.constant dense<0.000000e+00> : vector<16x32xf32>
    %395 = tpu.matmul %394, %393, %cst_167 {dimension_numbers = #tpu.dot_dimension_numbers<[1], [0], [0], [1], [0, 0, 1, 1], [], []>} : vector<16x32xbf16>, vector<32x32xbf16>, vector<16x32xf32> -> vector<16x32xf32>
    %c0_168 = arith.constant 0 : index
    %c7_169 = arith.constant 7 : index
    %c0_170 = arith.constant 0 : index
    %c0_171 = arith.constant 0 : index
    %396 = vector.load %arg5[%c0_168, %c7_169, %c0_170, %c0_171] : memref<2x8x32x32xbf16, #tpu.memory_space<vmem>>, vector<1x1x32x32xbf16>
    %397 = vector.shape_cast %396 : vector<1x1x32x32xbf16> to vector<32x32xbf16>
    %398 = arith.truncf %391 : vector<16x32xf32> to vector<16x32xbf16>
    %cst_172 = arith.constant dense<0.000000e+00> : vector<16x32xf32>
    %399 = tpu.matmul %398, %397, %cst_172 {dimension_numbers = #tpu.dot_dimension_numbers<[1], [0], [0], [1], [0, 0, 1, 1], [], []>} : vector<16x32xbf16>, vector<32x32xbf16>, vector<16x32xf32> -> vector<16x32xf32>
    %400 = arith.addf %395, %399 : vector<16x32xf32>
    %401 = vector.extract_strided_slice %191 {offsets = [8, 0], sizes = [1, 32], strides = [1, 1]} : vector<11x32xf32> to vector<1x32xf32>
    %402 = vector.broadcast %401 : vector<1x32xf32> to vector<16x32xf32>
    %403 = arith.addf %400, %402 : vector<16x32xf32>
    %404 = arith.addf %403, %351 : vector<16x32xf32>
    %405 = vector.extract_strided_slice %191 {offsets = [9, 0], sizes = [1, 32], strides = [1, 1]} : vector<11x32xf32> to vector<1x32xf32>
    %406 = vector.extract_strided_slice %191 {offsets = [10, 0], sizes = [1, 32], strides = [1, 1]} : vector<11x32xf32> to vector<1x32xf32>
    %cst_173 = arith.constant dense<0.000000e+00> : vector<16xf32>
    %407 = vector.multi_reduction <add>, %404, %cst_173 [1] : vector<16x32xf32> to vector<16xf32>
    %408 = vector.shape_cast %407 : vector<16xf32> to vector<16x1xf32>
    %cst_174 = arith.constant 3.200000e+01 : f32
    %409 = vector.broadcast %cst_174 : f32 to vector<16x1xf32>
    %410 = arith.divf %408, %409 : vector<16x1xf32>
    %411 = vector.broadcast %410 : vector<16x1xf32> to vector<16x32xf32>
    %412 = arith.subf %404, %411 : vector<16x32xf32>
    %413 = arith.mulf %412, %412 : vector<16x32xf32>
    %cst_175 = arith.constant dense<0.000000e+00> : vector<16xf32>
    %414 = vector.multi_reduction <add>, %413, %cst_175 [1] : vector<16x32xf32> to vector<16xf32>
    %415 = vector.shape_cast %414 : vector<16xf32> to vector<16x1xf32>
    %cst_176 = arith.constant 3.200000e+01 : f32
    %416 = vector.broadcast %cst_176 : f32 to vector<16x1xf32>
    %417 = arith.divf %415, %416 : vector<16x1xf32>
    %418 = vector.broadcast %410 : vector<16x1xf32> to vector<16x32xf32>
    %419 = arith.subf %404, %418 : vector<16x32xf32>
    %cst_177 = arith.constant 9.99999996E-13 : f32
    %420 = vector.broadcast %cst_177 : f32 to vector<16x1xf32>
    %421 = arith.addf %417, %420 : vector<16x1xf32>
    %422 = math.rsqrt %421 : vector<16x1xf32>
    %423 = vector.broadcast %422 : vector<16x1xf32> to vector<16x32xf32>
    %424 = arith.mulf %419, %423 : vector<16x32xf32>
    %425 = vector.broadcast %405 : vector<1x32xf32> to vector<16x32xf32>
    %426 = arith.mulf %424, %425 : vector<16x32xf32>
    %427 = vector.broadcast %406 : vector<1x32xf32> to vector<16x32xf32>
    %428 = arith.addf %426, %427 : vector<16x32xf32>
    %c1_178 = arith.constant 1 : index
    %c0_179 = arith.constant 0 : index
    %c0_180 = arith.constant 0 : index
    %429 = vector.load %arg6[%c1_178, %c0_179, %c0_180] : memref<2x11x32xf32, #tpu.memory_space<vmem>>, vector<1x11x32xf32>
    %430 = vector.shape_cast %429 : vector<1x11x32xf32> to vector<11x32xf32>
    %c1_181 = arith.constant 1 : index
    %c0_182 = arith.constant 0 : index
    %c0_183 = arith.constant 0 : index
    %c0_184 = arith.constant 0 : index
    %431 = vector.load %arg5[%c1_181, %c0_182, %c0_183, %c0_184] : memref<2x8x32x32xbf16, #tpu.memory_space<vmem>>, vector<1x1x32x32xbf16>
    %432 = vector.shape_cast %431 : vector<1x1x32x32xbf16> to vector<32x32xbf16>
    %433 = arith.truncf %428 : vector<16x32xf32> to vector<16x32xbf16>
    %cst_185 = arith.constant dense<0.000000e+00> : vector<16x32xf32>
    %434 = tpu.matmul %433, %432, %cst_185 {dimension_numbers = #tpu.dot_dimension_numbers<[1], [0], [0], [1], [0, 0, 1, 1], [], []>} : vector<16x32xbf16>, vector<32x32xbf16>, vector<16x32xf32> -> vector<16x32xf32>
    %435 = vector.extract_strided_slice %430 {offsets = [0, 0], sizes = [1, 32], strides = [1, 1]} : vector<11x32xf32> to vector<1x32xf32>
    %436 = vector.broadcast %435 : vector<1x32xf32> to vector<16x32xf32>
    %437 = arith.addf %434, %436 : vector<16x32xf32>
    %c1_186 = arith.constant 1 : index
    %c1_187 = arith.constant 1 : index
    %c0_188 = arith.constant 0 : index
    %c0_189 = arith.constant 0 : index
    %438 = vector.load %arg5[%c1_186, %c1_187, %c0_188, %c0_189] : memref<2x8x32x32xbf16, #tpu.memory_space<vmem>>, vector<1x1x32x32xbf16>
    %439 = vector.shape_cast %438 : vector<1x1x32x32xbf16> to vector<32x32xbf16>
    %440 = arith.truncf %428 : vector<16x32xf32> to vector<16x32xbf16>
    %cst_190 = arith.constant dense<0.000000e+00> : vector<16x32xf32>
    %441 = tpu.matmul %440, %439, %cst_190 {dimension_numbers = #tpu.dot_dimension_numbers<[1], [0], [0], [1], [0, 0, 1, 1], [], []>} : vector<16x32xbf16>, vector<32x32xbf16>, vector<16x32xf32> -> vector<16x32xf32>
    %442 = vector.extract_strided_slice %430 {offsets = [1, 0], sizes = [1, 32], strides = [1, 1]} : vector<11x32xf32> to vector<1x32xf32>
    %443 = vector.broadcast %442 : vector<1x32xf32> to vector<16x32xf32>
    %444 = arith.addf %441, %443 : vector<16x32xf32>
    %c1_191 = arith.constant 1 : index
    %c2_192 = arith.constant 2 : index
    %c0_193 = arith.constant 0 : index
    %c0_194 = arith.constant 0 : index
    %445 = vector.load %arg5[%c1_191, %c2_192, %c0_193, %c0_194] : memref<2x8x32x32xbf16, #tpu.memory_space<vmem>>, vector<1x1x32x32xbf16>
    %446 = vector.shape_cast %445 : vector<1x1x32x32xbf16> to vector<32x32xbf16>
    %447 = arith.truncf %428 : vector<16x32xf32> to vector<16x32xbf16>
    %cst_195 = arith.constant dense<0.000000e+00> : vector<16x32xf32>
    %448 = tpu.matmul %447, %446, %cst_195 {dimension_numbers = #tpu.dot_dimension_numbers<[1], [0], [0], [1], [0, 0, 1, 1], [], []>} : vector<16x32xbf16>, vector<32x32xbf16>, vector<16x32xf32> -> vector<16x32xf32>
    %449 = vector.extract_strided_slice %430 {offsets = [2, 0], sizes = [1, 32], strides = [1, 1]} : vector<11x32xf32> to vector<1x32xf32>
    %450 = vector.broadcast %449 : vector<1x32xf32> to vector<16x32xf32>
    %451 = arith.addf %448, %450 : vector<16x32xf32>
    %452 = vector.extract_strided_slice %189 {offsets = [0, 0], sizes = [1, 8], strides = [1, 1]} : vector<2x8xf32> to vector<1x8xf32>
    %453 = vector.extract_strided_slice %437 {offsets = [0, 0], sizes = [8, 32], strides = [1, 1]} : vector<16x32xf32> to vector<8x32xf32>
    %454 = vector.extract_strided_slice %444 {offsets = [0, 0], sizes = [8, 32], strides = [1, 1]} : vector<16x32xf32> to vector<8x32xf32>
    %455 = vector.extract_strided_slice %451 {offsets = [0, 0], sizes = [8, 32], strides = [1, 1]} : vector<16x32xf32> to vector<8x32xf32>
    %456 = vector.extract_strided_slice %453 {offsets = [0, 0], sizes = [8, 16], strides = [1, 1]} : vector<8x32xf32> to vector<8x16xf32>
    %457 = vector.extract_strided_slice %454 {offsets = [0, 0], sizes = [8, 16], strides = [1, 1]} : vector<8x32xf32> to vector<8x16xf32>
    %458 = vector.extract_strided_slice %455 {offsets = [0, 0], sizes = [8, 16], strides = [1, 1]} : vector<8x32xf32> to vector<8x16xf32>
    %459 = tpu.transpose %457, [1, 0] : vector<8x16xf32> -> vector<16x8xf32>
    %460 = arith.truncf %456 : vector<8x16xf32> to vector<8x16xbf16>
    %461 = arith.truncf %459 : vector<16x8xf32> to vector<16x8xbf16>
    %cst_196 = arith.constant dense<0.000000e+00> : vector<8x8xf32>
    %462 = tpu.matmul %460, %461, %cst_196 {dimension_numbers = #tpu.dot_dimension_numbers<[1], [0], [0], [1], [0, 0, 1, 1], [], []>} : vector<8x16xbf16>, vector<16x8xbf16>, vector<8x8xf32> -> vector<8x8xf32>
    %cst_197 = arith.constant 2.500000e-01 : f32
    %463 = vector.broadcast %cst_197 : f32 to vector<8x8xf32>
    %464 = arith.mulf %462, %463 : vector<8x8xf32>
    %465 = vector.broadcast %452 : vector<1x8xf32> to vector<8x8xf32>
    %466 = arith.addf %464, %465 : vector<8x8xf32>
    %cst_198 = arith.constant dense<0xFF800000> : vector<8xf32>
    %467 = vector.multi_reduction <maximumf>, %466, %cst_198 [1] : vector<8x8xf32> to vector<8xf32>
    %468 = vector.shape_cast %467 : vector<8xf32> to vector<8x1xf32>
    %469 = vector.broadcast %468 : vector<8x1xf32> to vector<8x8xf32>
    %470 = arith.subf %466, %469 : vector<8x8xf32>
    %471 = math.exp %470 : vector<8x8xf32>
    %cst_199 = arith.constant dense<0.000000e+00> : vector<8xf32>
    %472 = vector.multi_reduction <add>, %471, %cst_199 [1] : vector<8x8xf32> to vector<8xf32>
    %473 = vector.shape_cast %472 : vector<8xf32> to vector<8x1xf32>
    %474 = tpu.reciprocal %473 {approx = true} : vector<8x1xf32> -> vector<8x1xf32>
    %475 = vector.broadcast %474 : vector<8x1xf32> to vector<8x8xf32>
    %476 = arith.mulf %471, %475 : vector<8x8xf32>
    %477 = arith.truncf %476 : vector<8x8xf32> to vector<8x8xbf16>
    %478 = arith.truncf %458 : vector<8x16xf32> to vector<8x16xbf16>
    %cst_200 = arith.constant dense<0.000000e+00> : vector<8x16xf32>
    %479 = tpu.matmul %477, %478, %cst_200 {dimension_numbers = #tpu.dot_dimension_numbers<[1], [0], [0], [1], [0, 0, 1, 1], [], []>} : vector<8x8xbf16>, vector<8x16xbf16>, vector<8x16xf32> -> vector<8x16xf32>
    %480 = vector.extract_strided_slice %453 {offsets = [0, 16], sizes = [8, 16], strides = [1, 1]} : vector<8x32xf32> to vector<8x16xf32>
    %481 = vector.extract_strided_slice %454 {offsets = [0, 16], sizes = [8, 16], strides = [1, 1]} : vector<8x32xf32> to vector<8x16xf32>
    %482 = vector.extract_strided_slice %455 {offsets = [0, 16], sizes = [8, 16], strides = [1, 1]} : vector<8x32xf32> to vector<8x16xf32>
    %483 = tpu.transpose %481, [1, 0] : vector<8x16xf32> -> vector<16x8xf32>
    %484 = arith.truncf %480 : vector<8x16xf32> to vector<8x16xbf16>
    %485 = arith.truncf %483 : vector<16x8xf32> to vector<16x8xbf16>
    %cst_201 = arith.constant dense<0.000000e+00> : vector<8x8xf32>
    %486 = tpu.matmul %484, %485, %cst_201 {dimension_numbers = #tpu.dot_dimension_numbers<[1], [0], [0], [1], [0, 0, 1, 1], [], []>} : vector<8x16xbf16>, vector<16x8xbf16>, vector<8x8xf32> -> vector<8x8xf32>
    %cst_202 = arith.constant 2.500000e-01 : f32
    %487 = vector.broadcast %cst_202 : f32 to vector<8x8xf32>
    %488 = arith.mulf %486, %487 : vector<8x8xf32>
    %489 = vector.broadcast %452 : vector<1x8xf32> to vector<8x8xf32>
    %490 = arith.addf %488, %489 : vector<8x8xf32>
    %cst_203 = arith.constant dense<0xFF800000> : vector<8xf32>
    %491 = vector.multi_reduction <maximumf>, %490, %cst_203 [1] : vector<8x8xf32> to vector<8xf32>
    %492 = vector.shape_cast %491 : vector<8xf32> to vector<8x1xf32>
    %493 = vector.broadcast %492 : vector<8x1xf32> to vector<8x8xf32>
    %494 = arith.subf %490, %493 : vector<8x8xf32>
    %495 = math.exp %494 : vector<8x8xf32>
    %cst_204 = arith.constant dense<0.000000e+00> : vector<8xf32>
    %496 = vector.multi_reduction <add>, %495, %cst_204 [1] : vector<8x8xf32> to vector<8xf32>
    %497 = vector.shape_cast %496 : vector<8xf32> to vector<8x1xf32>
    %498 = tpu.reciprocal %497 {approx = true} : vector<8x1xf32> -> vector<8x1xf32>
    %499 = vector.broadcast %498 : vector<8x1xf32> to vector<8x8xf32>
    %500 = arith.mulf %495, %499 : vector<8x8xf32>
    %501 = arith.truncf %500 : vector<8x8xf32> to vector<8x8xbf16>
    %502 = arith.truncf %482 : vector<8x16xf32> to vector<8x16xbf16>
    %cst_205 = arith.constant dense<0.000000e+00> : vector<8x16xf32>
    %503 = tpu.matmul %501, %502, %cst_205 {dimension_numbers = #tpu.dot_dimension_numbers<[1], [0], [0], [1], [0, 0, 1, 1], [], []>} : vector<8x8xbf16>, vector<8x16xbf16>, vector<8x16xf32> -> vector<8x16xf32>
    %504 = tpu.concatenate %479, %503 in 1 : vector<8x16xf32>, vector<8x16xf32> -> vector<8x32xf32>
    %505 = vector.extract_strided_slice %189 {offsets = [1, 0], sizes = [1, 8], strides = [1, 1]} : vector<2x8xf32> to vector<1x8xf32>
    %506 = vector.extract_strided_slice %437 {offsets = [8, 0], sizes = [8, 32], strides = [1, 1]} : vector<16x32xf32> to vector<8x32xf32>
    %507 = vector.extract_strided_slice %444 {offsets = [8, 0], sizes = [8, 32], strides = [1, 1]} : vector<16x32xf32> to vector<8x32xf32>
    %508 = vector.extract_strided_slice %451 {offsets = [8, 0], sizes = [8, 32], strides = [1, 1]} : vector<16x32xf32> to vector<8x32xf32>
    %509 = vector.extract_strided_slice %506 {offsets = [0, 0], sizes = [8, 16], strides = [1, 1]} : vector<8x32xf32> to vector<8x16xf32>
    %510 = vector.extract_strided_slice %507 {offsets = [0, 0], sizes = [8, 16], strides = [1, 1]} : vector<8x32xf32> to vector<8x16xf32>
    %511 = vector.extract_strided_slice %508 {offsets = [0, 0], sizes = [8, 16], strides = [1, 1]} : vector<8x32xf32> to vector<8x16xf32>
    %512 = tpu.transpose %510, [1, 0] : vector<8x16xf32> -> vector<16x8xf32>
    %513 = arith.truncf %509 : vector<8x16xf32> to vector<8x16xbf16>
    %514 = arith.truncf %512 : vector<16x8xf32> to vector<16x8xbf16>
    %cst_206 = arith.constant dense<0.000000e+00> : vector<8x8xf32>
    %515 = tpu.matmul %513, %514, %cst_206 {dimension_numbers = #tpu.dot_dimension_numbers<[1], [0], [0], [1], [0, 0, 1, 1], [], []>} : vector<8x16xbf16>, vector<16x8xbf16>, vector<8x8xf32> -> vector<8x8xf32>
    %cst_207 = arith.constant 2.500000e-01 : f32
    %516 = vector.broadcast %cst_207 : f32 to vector<8x8xf32>
    %517 = arith.mulf %515, %516 : vector<8x8xf32>
    %518 = vector.broadcast %505 : vector<1x8xf32> to vector<8x8xf32>
    %519 = arith.addf %517, %518 : vector<8x8xf32>
    %cst_208 = arith.constant dense<0xFF800000> : vector<8xf32>
    %520 = vector.multi_reduction <maximumf>, %519, %cst_208 [1] : vector<8x8xf32> to vector<8xf32>
    %521 = vector.shape_cast %520 : vector<8xf32> to vector<8x1xf32>
    %522 = vector.broadcast %521 : vector<8x1xf32> to vector<8x8xf32>
    %523 = arith.subf %519, %522 : vector<8x8xf32>
    %524 = math.exp %523 : vector<8x8xf32>
    %cst_209 = arith.constant dense<0.000000e+00> : vector<8xf32>
    %525 = vector.multi_reduction <add>, %524, %cst_209 [1] : vector<8x8xf32> to vector<8xf32>
    %526 = vector.shape_cast %525 : vector<8xf32> to vector<8x1xf32>
    %527 = tpu.reciprocal %526 {approx = true} : vector<8x1xf32> -> vector<8x1xf32>
    %528 = vector.broadcast %527 : vector<8x1xf32> to vector<8x8xf32>
    %529 = arith.mulf %524, %528 : vector<8x8xf32>
    %530 = arith.truncf %529 : vector<8x8xf32> to vector<8x8xbf16>
    %531 = arith.truncf %511 : vector<8x16xf32> to vector<8x16xbf16>
    %cst_210 = arith.constant dense<0.000000e+00> : vector<8x16xf32>
    %532 = tpu.matmul %530, %531, %cst_210 {dimension_numbers = #tpu.dot_dimension_numbers<[1], [0], [0], [1], [0, 0, 1, 1], [], []>} : vector<8x8xbf16>, vector<8x16xbf16>, vector<8x16xf32> -> vector<8x16xf32>
    %533 = vector.extract_strided_slice %506 {offsets = [0, 16], sizes = [8, 16], strides = [1, 1]} : vector<8x32xf32> to vector<8x16xf32>
    %534 = vector.extract_strided_slice %507 {offsets = [0, 16], sizes = [8, 16], strides = [1, 1]} : vector<8x32xf32> to vector<8x16xf32>
    %535 = vector.extract_strided_slice %508 {offsets = [0, 16], sizes = [8, 16], strides = [1, 1]} : vector<8x32xf32> to vector<8x16xf32>
    %536 = tpu.transpose %534, [1, 0] : vector<8x16xf32> -> vector<16x8xf32>
    %537 = arith.truncf %533 : vector<8x16xf32> to vector<8x16xbf16>
    %538 = arith.truncf %536 : vector<16x8xf32> to vector<16x8xbf16>
    %cst_211 = arith.constant dense<0.000000e+00> : vector<8x8xf32>
    %539 = tpu.matmul %537, %538, %cst_211 {dimension_numbers = #tpu.dot_dimension_numbers<[1], [0], [0], [1], [0, 0, 1, 1], [], []>} : vector<8x16xbf16>, vector<16x8xbf16>, vector<8x8xf32> -> vector<8x8xf32>
    %cst_212 = arith.constant 2.500000e-01 : f32
    %540 = vector.broadcast %cst_212 : f32 to vector<8x8xf32>
    %541 = arith.mulf %539, %540 : vector<8x8xf32>
    %542 = vector.broadcast %505 : vector<1x8xf32> to vector<8x8xf32>
    %543 = arith.addf %541, %542 : vector<8x8xf32>
    %cst_213 = arith.constant dense<0xFF800000> : vector<8xf32>
    %544 = vector.multi_reduction <maximumf>, %543, %cst_213 [1] : vector<8x8xf32> to vector<8xf32>
    %545 = vector.shape_cast %544 : vector<8xf32> to vector<8x1xf32>
    %546 = vector.broadcast %545 : vector<8x1xf32> to vector<8x8xf32>
    %547 = arith.subf %543, %546 : vector<8x8xf32>
    %548 = math.exp %547 : vector<8x8xf32>
    %cst_214 = arith.constant dense<0.000000e+00> : vector<8xf32>
    %549 = vector.multi_reduction <add>, %548, %cst_214 [1] : vector<8x8xf32> to vector<8xf32>
    %550 = vector.shape_cast %549 : vector<8xf32> to vector<8x1xf32>
    %551 = tpu.reciprocal %550 {approx = true} : vector<8x1xf32> -> vector<8x1xf32>
    %552 = vector.broadcast %551 : vector<8x1xf32> to vector<8x8xf32>
    %553 = arith.mulf %548, %552 : vector<8x8xf32>
    %554 = arith.truncf %553 : vector<8x8xf32> to vector<8x8xbf16>
    %555 = arith.truncf %535 : vector<8x16xf32> to vector<8x16xbf16>
    %cst_215 = arith.constant dense<0.000000e+00> : vector<8x16xf32>
    %556 = tpu.matmul %554, %555, %cst_215 {dimension_numbers = #tpu.dot_dimension_numbers<[1], [0], [0], [1], [0, 0, 1, 1], [], []>} : vector<8x8xbf16>, vector<8x16xbf16>, vector<8x16xf32> -> vector<8x16xf32>
    %557 = tpu.concatenate %532, %556 in 1 : vector<8x16xf32>, vector<8x16xf32> -> vector<8x32xf32>
    %558 = tpu.concatenate %504, %557 in 0 : vector<8x32xf32>, vector<8x32xf32> -> vector<16x32xf32>
    %c1_216 = arith.constant 1 : index
    %c3_217 = arith.constant 3 : index
    %c0_218 = arith.constant 0 : index
    %c0_219 = arith.constant 0 : index
    %559 = vector.load %arg5[%c1_216, %c3_217, %c0_218, %c0_219] : memref<2x8x32x32xbf16, #tpu.memory_space<vmem>>, vector<1x1x32x32xbf16>
    %560 = vector.shape_cast %559 : vector<1x1x32x32xbf16> to vector<32x32xbf16>
    %561 = arith.truncf %558 : vector<16x32xf32> to vector<16x32xbf16>
    %cst_220 = arith.constant dense<0.000000e+00> : vector<16x32xf32>
    %562 = tpu.matmul %561, %560, %cst_220 {dimension_numbers = #tpu.dot_dimension_numbers<[1], [0], [0], [1], [0, 0, 1, 1], [], []>} : vector<16x32xbf16>, vector<32x32xbf16>, vector<16x32xf32> -> vector<16x32xf32>
    %563 = vector.extract_strided_slice %430 {offsets = [3, 0], sizes = [1, 32], strides = [1, 1]} : vector<11x32xf32> to vector<1x32xf32>
    %564 = vector.broadcast %563 : vector<1x32xf32> to vector<16x32xf32>
    %565 = arith.addf %562, %564 : vector<16x32xf32>
    %566 = arith.addf %565, %428 : vector<16x32xf32>
    %567 = vector.extract_strided_slice %430 {offsets = [4, 0], sizes = [1, 32], strides = [1, 1]} : vector<11x32xf32> to vector<1x32xf32>
    %568 = vector.extract_strided_slice %430 {offsets = [5, 0], sizes = [1, 32], strides = [1, 1]} : vector<11x32xf32> to vector<1x32xf32>
    %cst_221 = arith.constant dense<0.000000e+00> : vector<16xf32>
    %569 = vector.multi_reduction <add>, %566, %cst_221 [1] : vector<16x32xf32> to vector<16xf32>
    %570 = vector.shape_cast %569 : vector<16xf32> to vector<16x1xf32>
    %cst_222 = arith.constant 3.200000e+01 : f32
    %571 = vector.broadcast %cst_222 : f32 to vector<16x1xf32>
    %572 = arith.divf %570, %571 : vector<16x1xf32>
    %573 = vector.broadcast %572 : vector<16x1xf32> to vector<16x32xf32>
    %574 = arith.subf %566, %573 : vector<16x32xf32>
    %575 = arith.mulf %574, %574 : vector<16x32xf32>
    %cst_223 = arith.constant dense<0.000000e+00> : vector<16xf32>
    %576 = vector.multi_reduction <add>, %575, %cst_223 [1] : vector<16x32xf32> to vector<16xf32>
    %577 = vector.shape_cast %576 : vector<16xf32> to vector<16x1xf32>
    %cst_224 = arith.constant 3.200000e+01 : f32
    %578 = vector.broadcast %cst_224 : f32 to vector<16x1xf32>
    %579 = arith.divf %577, %578 : vector<16x1xf32>
    %580 = vector.broadcast %572 : vector<16x1xf32> to vector<16x32xf32>
    %581 = arith.subf %566, %580 : vector<16x32xf32>
    %cst_225 = arith.constant 9.99999996E-13 : f32
    %582 = vector.broadcast %cst_225 : f32 to vector<16x1xf32>
    %583 = arith.addf %579, %582 : vector<16x1xf32>
    %584 = math.rsqrt %583 : vector<16x1xf32>
    %585 = vector.broadcast %584 : vector<16x1xf32> to vector<16x32xf32>
    %586 = arith.mulf %581, %585 : vector<16x32xf32>
    %587 = vector.broadcast %567 : vector<1x32xf32> to vector<16x32xf32>
    %588 = arith.mulf %586, %587 : vector<16x32xf32>
    %589 = vector.broadcast %568 : vector<1x32xf32> to vector<16x32xf32>
    %590 = arith.addf %588, %589 : vector<16x32xf32>
    %c1_226 = arith.constant 1 : index
    %c4_227 = arith.constant 4 : index
    %c0_228 = arith.constant 0 : index
    %c0_229 = arith.constant 0 : index
    %591 = vector.load %arg5[%c1_226, %c4_227, %c0_228, %c0_229] : memref<2x8x32x32xbf16, #tpu.memory_space<vmem>>, vector<1x1x32x32xbf16>
    %592 = vector.shape_cast %591 : vector<1x1x32x32xbf16> to vector<32x32xbf16>
    %593 = arith.truncf %590 : vector<16x32xf32> to vector<16x32xbf16>
    %cst_230 = arith.constant dense<0.000000e+00> : vector<16x32xf32>
    %594 = tpu.matmul %593, %592, %cst_230 {dimension_numbers = #tpu.dot_dimension_numbers<[1], [0], [0], [1], [0, 0, 1, 1], [], []>} : vector<16x32xbf16>, vector<32x32xbf16>, vector<16x32xf32> -> vector<16x32xf32>
    %595 = vector.extract_strided_slice %430 {offsets = [6, 0], sizes = [1, 32], strides = [1, 1]} : vector<11x32xf32> to vector<1x32xf32>
    %596 = vector.broadcast %595 : vector<1x32xf32> to vector<16x32xf32>
    %597 = arith.addf %594, %596 : vector<16x32xf32>
    %598 = arith.mulf %597, %597 : vector<16x32xf32>
    %599 = arith.mulf %597, %598 : vector<16x32xf32>
    %cst_231 = arith.constant 4.471500e-02 : f32
    %600 = vector.broadcast %cst_231 : f32 to vector<16x32xf32>
    %601 = arith.mulf %600, %599 : vector<16x32xf32>
    %602 = arith.addf %597, %601 : vector<16x32xf32>
    %cst_232 = arith.constant 0.797884583 : f32
    %603 = vector.broadcast %cst_232 : f32 to vector<16x32xf32>
    %604 = arith.mulf %603, %602 : vector<16x32xf32>
    %605 = math.tanh %604 : vector<16x32xf32>
    %cst_233 = arith.constant 1.000000e+00 : f32
    %606 = vector.broadcast %cst_233 : f32 to vector<16x32xf32>
    %607 = arith.addf %606, %605 : vector<16x32xf32>
    %cst_234 = arith.constant 5.000000e-01 : f32
    %608 = vector.broadcast %cst_234 : f32 to vector<16x32xf32>
    %609 = arith.mulf %608, %607 : vector<16x32xf32>
    %610 = arith.mulf %597, %609 : vector<16x32xf32>
    %c1_235 = arith.constant 1 : index
    %c5_236 = arith.constant 5 : index
    %c0_237 = arith.constant 0 : index
    %c0_238 = arith.constant 0 : index
    %611 = vector.load %arg5[%c1_235, %c5_236, %c0_237, %c0_238] : memref<2x8x32x32xbf16, #tpu.memory_space<vmem>>, vector<1x1x32x32xbf16>
    %612 = vector.shape_cast %611 : vector<1x1x32x32xbf16> to vector<32x32xbf16>
    %613 = arith.truncf %590 : vector<16x32xf32> to vector<16x32xbf16>
    %cst_239 = arith.constant dense<0.000000e+00> : vector<16x32xf32>
    %614 = tpu.matmul %613, %612, %cst_239 {dimension_numbers = #tpu.dot_dimension_numbers<[1], [0], [0], [1], [0, 0, 1, 1], [], []>} : vector<16x32xbf16>, vector<32x32xbf16>, vector<16x32xf32> -> vector<16x32xf32>
    %615 = vector.extract_strided_slice %430 {offsets = [7, 0], sizes = [1, 32], strides = [1, 1]} : vector<11x32xf32> to vector<1x32xf32>
    %616 = vector.broadcast %615 : vector<1x32xf32> to vector<16x32xf32>
    %617 = arith.addf %614, %616 : vector<16x32xf32>
    %618 = arith.mulf %617, %617 : vector<16x32xf32>
    %619 = arith.mulf %617, %618 : vector<16x32xf32>
    %cst_240 = arith.constant 4.471500e-02 : f32
    %620 = vector.broadcast %cst_240 : f32 to vector<16x32xf32>
    %621 = arith.mulf %620, %619 : vector<16x32xf32>
    %622 = arith.addf %617, %621 : vector<16x32xf32>
    %cst_241 = arith.constant 0.797884583 : f32
    %623 = vector.broadcast %cst_241 : f32 to vector<16x32xf32>
    %624 = arith.mulf %623, %622 : vector<16x32xf32>
    %625 = math.tanh %624 : vector<16x32xf32>
    %cst_242 = arith.constant 1.000000e+00 : f32
    %626 = vector.broadcast %cst_242 : f32 to vector<16x32xf32>
    %627 = arith.addf %626, %625 : vector<16x32xf32>
    %cst_243 = arith.constant 5.000000e-01 : f32
    %628 = vector.broadcast %cst_243 : f32 to vector<16x32xf32>
    %629 = arith.mulf %628, %627 : vector<16x32xf32>
    %630 = arith.mulf %617, %629 : vector<16x32xf32>
    %c1_244 = arith.constant 1 : index
    %c6_245 = arith.constant 6 : index
    %c0_246 = arith.constant 0 : index
    %c0_247 = arith.constant 0 : index
    %631 = vector.load %arg5[%c1_244, %c6_245, %c0_246, %c0_247] : memref<2x8x32x32xbf16, #tpu.memory_space<vmem>>, vector<1x1x32x32xbf16>
    %632 = vector.shape_cast %631 : vector<1x1x32x32xbf16> to vector<32x32xbf16>
    %633 = arith.truncf %610 : vector<16x32xf32> to vector<16x32xbf16>
    %cst_248 = arith.constant dense<0.000000e+00> : vector<16x32xf32>
    %634 = tpu.matmul %633, %632, %cst_248 {dimension_numbers = #tpu.dot_dimension_numbers<[1], [0], [0], [1], [0, 0, 1, 1], [], []>} : vector<16x32xbf16>, vector<32x32xbf16>, vector<16x32xf32> -> vector<16x32xf32>
    %c1_249 = arith.constant 1 : index
    %c7_250 = arith.constant 7 : index
    %c0_251 = arith.constant 0 : index
    %c0_252 = arith.constant 0 : index
    %635 = vector.load %arg5[%c1_249, %c7_250, %c0_251, %c0_252] : memref<2x8x32x32xbf16, #tpu.memory_space<vmem>>, vector<1x1x32x32xbf16>
    %636 = vector.shape_cast %635 : vector<1x1x32x32xbf16> to vector<32x32xbf16>
    %637 = arith.truncf %630 : vector<16x32xf32> to vector<16x32xbf16>
    %cst_253 = arith.constant dense<0.000000e+00> : vector<16x32xf32>
    %638 = tpu.matmul %637, %636, %cst_253 {dimension_numbers = #tpu.dot_dimension_numbers<[1], [0], [0], [1], [0, 0, 1, 1], [], []>} : vector<16x32xbf16>, vector<32x32xbf16>, vector<16x32xf32> -> vector<16x32xf32>
    %639 = arith.addf %634, %638 : vector<16x32xf32>
    %640 = vector.extract_strided_slice %430 {offsets = [8, 0], sizes = [1, 32], strides = [1, 1]} : vector<11x32xf32> to vector<1x32xf32>
    %641 = vector.broadcast %640 : vector<1x32xf32> to vector<16x32xf32>
    %642 = arith.addf %639, %641 : vector<16x32xf32>
    %643 = arith.addf %642, %590 : vector<16x32xf32>
    %644 = vector.extract_strided_slice %430 {offsets = [9, 0], sizes = [1, 32], strides = [1, 1]} : vector<11x32xf32> to vector<1x32xf32>
    %645 = vector.extract_strided_slice %430 {offsets = [10, 0], sizes = [1, 32], strides = [1, 1]} : vector<11x32xf32> to vector<1x32xf32>
    %cst_254 = arith.constant dense<0.000000e+00> : vector<16xf32>
    %646 = vector.multi_reduction <add>, %643, %cst_254 [1] : vector<16x32xf32> to vector<16xf32>
    %647 = vector.shape_cast %646 : vector<16xf32> to vector<16x1xf32>
    %cst_255 = arith.constant 3.200000e+01 : f32
    %648 = vector.broadcast %cst_255 : f32 to vector<16x1xf32>
    %649 = arith.divf %647, %648 : vector<16x1xf32>
    %650 = vector.broadcast %649 : vector<16x1xf32> to vector<16x32xf32>
    %651 = arith.subf %643, %650 : vector<16x32xf32>
    %652 = arith.mulf %651, %651 : vector<16x32xf32>
    %cst_256 = arith.constant dense<0.000000e+00> : vector<16xf32>
    %653 = vector.multi_reduction <add>, %652, %cst_256 [1] : vector<16x32xf32> to vector<16xf32>
    %654 = vector.shape_cast %653 : vector<16xf32> to vector<16x1xf32>
    %cst_257 = arith.constant 3.200000e+01 : f32
    %655 = vector.broadcast %cst_257 : f32 to vector<16x1xf32>
    %656 = arith.divf %654, %655 : vector<16x1xf32>
    %657 = vector.broadcast %649 : vector<16x1xf32> to vector<16x32xf32>
    %658 = arith.subf %643, %657 : vector<16x32xf32>
    %cst_258 = arith.constant 9.99999996E-13 : f32
    %659 = vector.broadcast %cst_258 : f32 to vector<16x1xf32>
    %660 = arith.addf %656, %659 : vector<16x1xf32>
    %661 = math.rsqrt %660 : vector<16x1xf32>
    %662 = vector.broadcast %661 : vector<16x1xf32> to vector<16x32xf32>
    %663 = arith.mulf %658, %662 : vector<16x32xf32>
    %664 = vector.broadcast %644 : vector<1x32xf32> to vector<16x32xf32>
    %665 = arith.mulf %663, %664 : vector<16x32xf32>
    %666 = vector.broadcast %645 : vector<1x32xf32> to vector<16x32xf32>
    %667 = arith.addf %665, %666 : vector<16x32xf32>
    %668 = vector.extract_strided_slice %667 {offsets = [0, 0], sizes = [1, 32], strides = [1, 1]} : vector<16x32xf32> to vector<1x32xf32>
    %669 = vector.extract_strided_slice %667 {offsets = [8, 0], sizes = [1, 32], strides = [1, 1]} : vector<16x32xf32> to vector<1x32xf32>
    %670 = vector.extract_strided_slice %667 {offsets = [1, 0], sizes = [1, 32], strides = [1, 1]} : vector<16x32xf32> to vector<1x32xf32>
    %671 = vector.extract_strided_slice %667 {offsets = [9, 0], sizes = [1, 32], strides = [1, 1]} : vector<16x32xf32> to vector<1x32xf32>
    %672 = vector.extract_strided_slice %667 {offsets = [2, 0], sizes = [1, 32], strides = [1, 1]} : vector<16x32xf32> to vector<1x32xf32>
    %673 = vector.extract_strided_slice %667 {offsets = [10, 0], sizes = [1, 32], strides = [1, 1]} : vector<16x32xf32> to vector<1x32xf32>
    %674 = vector.extract_strided_slice %667 {offsets = [3, 0], sizes = [1, 32], strides = [1, 1]} : vector<16x32xf32> to vector<1x32xf32>
    %675 = vector.extract_strided_slice %667 {offsets = [11, 0], sizes = [1, 32], strides = [1, 1]} : vector<16x32xf32> to vector<1x32xf32>
    %676 = vector.extract_strided_slice %667 {offsets = [4, 0], sizes = [1, 32], strides = [1, 1]} : vector<16x32xf32> to vector<1x32xf32>
    %677 = vector.extract_strided_slice %667 {offsets = [12, 0], sizes = [1, 32], strides = [1, 1]} : vector<16x32xf32> to vector<1x32xf32>
    %678 = vector.extract_strided_slice %667 {offsets = [5, 0], sizes = [1, 32], strides = [1, 1]} : vector<16x32xf32> to vector<1x32xf32>
    %679 = vector.extract_strided_slice %667 {offsets = [13, 0], sizes = [1, 32], strides = [1, 1]} : vector<16x32xf32> to vector<1x32xf32>
    %680 = vector.extract_strided_slice %667 {offsets = [6, 0], sizes = [1, 32], strides = [1, 1]} : vector<16x32xf32> to vector<1x32xf32>
    %681 = vector.extract_strided_slice %667 {offsets = [14, 0], sizes = [1, 32], strides = [1, 1]} : vector<16x32xf32> to vector<1x32xf32>
    %682 = vector.extract_strided_slice %667 {offsets = [7, 0], sizes = [1, 32], strides = [1, 1]} : vector<16x32xf32> to vector<1x32xf32>
    %683 = vector.extract_strided_slice %667 {offsets = [15, 0], sizes = [1, 32], strides = [1, 1]} : vector<16x32xf32> to vector<1x32xf32>
    %684 = tpu.concatenate %668, %669, %670, %671, %672, %673, %674, %675, %676, %677, %678, %679, %680, %681, %682, %683 in 0 : vector<1x32xf32>, vector<1x32xf32>, vector<1x32xf32>, vector<1x32xf32>, vector<1x32xf32>, vector<1x32xf32>, vector<1x32xf32>, vector<1x32xf32>, vector<1x32xf32>, vector<1x32xf32>, vector<1x32xf32>, vector<1x32xf32>, vector<1x32xf32>, vector<1x32xf32>, vector<1x32xf32>, vector<1x32xf32> -> vector<16x32xf32>
    %c0_259 = arith.constant 0 : index
    %c0_260 = arith.constant 0 : index
    %685 = vector.load %arg7[%c0_259, %c0_260] : memref<160x512xbf16, #tpu.memory_space<vmem>>, vector<32x512xbf16>
    %c32 = arith.constant 32 : index
    %c0_261 = arith.constant 0 : index
    %686 = vector.load %arg7[%c32, %c0_261] : memref<160x512xbf16, #tpu.memory_space<vmem>>, vector<128x512xbf16>
    %687 = arith.truncf %684 : vector<16x32xf32> to vector<16x32xbf16>
    %cst_262 = arith.constant dense<0.000000e+00> : vector<16x512xf32>
    %688 = tpu.matmul %687, %685, %cst_262 {dimension_numbers = #tpu.dot_dimension_numbers<[1], [0], [0], [1], [0, 0, 1, 1], [], []>} : vector<16x32xbf16>, vector<32x512xbf16>, vector<16x512xf32> -> vector<16x512xf32>
    %c0_263 = arith.constant 0 : index
    %c0_264 = arith.constant 0 : index
    %689 = vector.load %arg8[%c0_263, %c0_264] : memref<1x512xf32, #tpu.memory_space<vmem>>, vector<1x512xf32>
    %690 = vector.broadcast %689 : vector<1x512xf32> to vector<16x512xf32>
    %691 = arith.addf %688, %690 : vector<16x512xf32>
    %cst_265 = arith.constant 0.000000e+00 : f32
    %692 = vector.broadcast %cst_265 : f32 to vector<2x128xf32>
    %cst_266 = arith.constant 0.000000e+00 : f32
    %693 = vector.broadcast %cst_266 : f32 to vector<2x128xf32>
    %694 = vector.extract_strided_slice %691 {offsets = [0, 0], sizes = [2, 512], strides = [1, 1]} : vector<16x512xf32> to vector<2x512xf32>
    %695 = arith.truncf %692 : vector<2x128xf32> to vector<2x128xbf16>
    %cst_267 = arith.constant dense<0.000000e+00> : vector<2x512xf32>
    %696 = tpu.matmul %695, %686, %cst_267 {dimension_numbers = #tpu.dot_dimension_numbers<[1], [0], [0], [1], [0, 0, 1, 1], [], []>} : vector<2x128xbf16>, vector<128x512xbf16>, vector<2x512xf32> -> vector<2x512xf32>
    %697 = arith.addf %694, %696 : vector<2x512xf32>
    %698 = vector.extract_strided_slice %697 {offsets = [0, 0], sizes = [2, 128], strides = [1, 1]} : vector<2x512xf32> to vector<2x128xf32>
    %699 = arith.negf %698 : vector<2x128xf32>
    %700 = math.exp %699 : vector<2x128xf32>
    %cst_268 = arith.constant 1.000000e+00 : f32
    %701 = vector.broadcast %cst_268 : f32 to vector<2x128xf32>
    %702 = arith.addf %701, %700 : vector<2x128xf32>
    %703 = arith.divf %701, %702 : vector<2x128xf32>
    %704 = vector.extract_strided_slice %697 {offsets = [0, 128], sizes = [2, 128], strides = [1, 1]} : vector<2x512xf32> to vector<2x128xf32>
    %705 = arith.negf %704 : vector<2x128xf32>
    %706 = math.exp %705 : vector<2x128xf32>
    %cst_269 = arith.constant 1.000000e+00 : f32
    %707 = vector.broadcast %cst_269 : f32 to vector<2x128xf32>
    %708 = arith.addf %707, %706 : vector<2x128xf32>
    %709 = arith.divf %707, %708 : vector<2x128xf32>
    %710 = vector.extract_strided_slice %697 {offsets = [0, 256], sizes = [2, 128], strides = [1, 1]} : vector<2x512xf32> to vector<2x128xf32>
    %711 = math.tanh %710 : vector<2x128xf32>
    %712 = vector.extract_strided_slice %697 {offsets = [0, 384], sizes = [2, 128], strides = [1, 1]} : vector<2x512xf32> to vector<2x128xf32>
    %713 = arith.negf %712 : vector<2x128xf32>
    %714 = math.exp %713 : vector<2x128xf32>
    %cst_270 = arith.constant 1.000000e+00 : f32
    %715 = vector.broadcast %cst_270 : f32 to vector<2x128xf32>
    %716 = arith.addf %715, %714 : vector<2x128xf32>
    %717 = arith.divf %715, %716 : vector<2x128xf32>
    %718 = arith.mulf %709, %693 : vector<2x128xf32>
    %719 = arith.mulf %703, %711 : vector<2x128xf32>
    %720 = arith.addf %718, %719 : vector<2x128xf32>
    %721 = math.tanh %720 : vector<2x128xf32>
    %722 = arith.mulf %717, %721 : vector<2x128xf32>
    %723 = vector.extract_strided_slice %691 {offsets = [2, 0], sizes = [2, 512], strides = [1, 1]} : vector<16x512xf32> to vector<2x512xf32>
    %724 = arith.truncf %722 : vector<2x128xf32> to vector<2x128xbf16>
    %cst_271 = arith.constant dense<0.000000e+00> : vector<2x512xf32>
    %725 = tpu.matmul %724, %686, %cst_271 {dimension_numbers = #tpu.dot_dimension_numbers<[1], [0], [0], [1], [0, 0, 1, 1], [], []>} : vector<2x128xbf16>, vector<128x512xbf16>, vector<2x512xf32> -> vector<2x512xf32>
    %726 = arith.addf %723, %725 : vector<2x512xf32>
    %727 = vector.extract_strided_slice %726 {offsets = [0, 0], sizes = [2, 128], strides = [1, 1]} : vector<2x512xf32> to vector<2x128xf32>
    %728 = arith.negf %727 : vector<2x128xf32>
    %729 = math.exp %728 : vector<2x128xf32>
    %cst_272 = arith.constant 1.000000e+00 : f32
    %730 = vector.broadcast %cst_272 : f32 to vector<2x128xf32>
    %731 = arith.addf %730, %729 : vector<2x128xf32>
    %732 = arith.divf %730, %731 : vector<2x128xf32>
    %733 = vector.extract_strided_slice %726 {offsets = [0, 128], sizes = [2, 128], strides = [1, 1]} : vector<2x512xf32> to vector<2x128xf32>
    %734 = arith.negf %733 : vector<2x128xf32>
    %735 = math.exp %734 : vector<2x128xf32>
    %cst_273 = arith.constant 1.000000e+00 : f32
    %736 = vector.broadcast %cst_273 : f32 to vector<2x128xf32>
    %737 = arith.addf %736, %735 : vector<2x128xf32>
    %738 = arith.divf %736, %737 : vector<2x128xf32>
    %739 = vector.extract_strided_slice %726 {offsets = [0, 256], sizes = [2, 128], strides = [1, 1]} : vector<2x512xf32> to vector<2x128xf32>
    %740 = math.tanh %739 : vector<2x128xf32>
    %741 = vector.extract_strided_slice %726 {offsets = [0, 384], sizes = [2, 128], strides = [1, 1]} : vector<2x512xf32> to vector<2x128xf32>
    %742 = arith.negf %741 : vector<2x128xf32>
    %743 = math.exp %742 : vector<2x128xf32>
    %cst_274 = arith.constant 1.000000e+00 : f32
    %744 = vector.broadcast %cst_274 : f32 to vector<2x128xf32>
    %745 = arith.addf %744, %743 : vector<2x128xf32>
    %746 = arith.divf %744, %745 : vector<2x128xf32>
    %747 = arith.mulf %738, %720 : vector<2x128xf32>
    %748 = arith.mulf %732, %740 : vector<2x128xf32>
    %749 = arith.addf %747, %748 : vector<2x128xf32>
    %750 = math.tanh %749 : vector<2x128xf32>
    %751 = arith.mulf %746, %750 : vector<2x128xf32>
    %752 = vector.extract_strided_slice %691 {offsets = [4, 0], sizes = [2, 512], strides = [1, 1]} : vector<16x512xf32> to vector<2x512xf32>
    %753 = arith.truncf %751 : vector<2x128xf32> to vector<2x128xbf16>
    %cst_275 = arith.constant dense<0.000000e+00> : vector<2x512xf32>
    %754 = tpu.matmul %753, %686, %cst_275 {dimension_numbers = #tpu.dot_dimension_numbers<[1], [0], [0], [1], [0, 0, 1, 1], [], []>} : vector<2x128xbf16>, vector<128x512xbf16>, vector<2x512xf32> -> vector<2x512xf32>
    %755 = arith.addf %752, %754 : vector<2x512xf32>
    %756 = vector.extract_strided_slice %755 {offsets = [0, 0], sizes = [2, 128], strides = [1, 1]} : vector<2x512xf32> to vector<2x128xf32>
    %757 = arith.negf %756 : vector<2x128xf32>
    %758 = math.exp %757 : vector<2x128xf32>
    %cst_276 = arith.constant 1.000000e+00 : f32
    %759 = vector.broadcast %cst_276 : f32 to vector<2x128xf32>
    %760 = arith.addf %759, %758 : vector<2x128xf32>
    %761 = arith.divf %759, %760 : vector<2x128xf32>
    %762 = vector.extract_strided_slice %755 {offsets = [0, 128], sizes = [2, 128], strides = [1, 1]} : vector<2x512xf32> to vector<2x128xf32>
    %763 = arith.negf %762 : vector<2x128xf32>
    %764 = math.exp %763 : vector<2x128xf32>
    %cst_277 = arith.constant 1.000000e+00 : f32
    %765 = vector.broadcast %cst_277 : f32 to vector<2x128xf32>
    %766 = arith.addf %765, %764 : vector<2x128xf32>
    %767 = arith.divf %765, %766 : vector<2x128xf32>
    %768 = vector.extract_strided_slice %755 {offsets = [0, 256], sizes = [2, 128], strides = [1, 1]} : vector<2x512xf32> to vector<2x128xf32>
    %769 = math.tanh %768 : vector<2x128xf32>
    %770 = vector.extract_strided_slice %755 {offsets = [0, 384], sizes = [2, 128], strides = [1, 1]} : vector<2x512xf32> to vector<2x128xf32>
    %771 = arith.negf %770 : vector<2x128xf32>
    %772 = math.exp %771 : vector<2x128xf32>
    %cst_278 = arith.constant 1.000000e+00 : f32
    %773 = vector.broadcast %cst_278 : f32 to vector<2x128xf32>
    %774 = arith.addf %773, %772 : vector<2x128xf32>
    %775 = arith.divf %773, %774 : vector<2x128xf32>
    %776 = arith.mulf %767, %749 : vector<2x128xf32>
    %777 = arith.mulf %761, %769 : vector<2x128xf32>
    %778 = arith.addf %776, %777 : vector<2x128xf32>
    %779 = math.tanh %778 : vector<2x128xf32>
    %780 = arith.mulf %775, %779 : vector<2x128xf32>
    %781 = vector.extract_strided_slice %691 {offsets = [6, 0], sizes = [2, 512], strides = [1, 1]} : vector<16x512xf32> to vector<2x512xf32>
    %782 = arith.truncf %780 : vector<2x128xf32> to vector<2x128xbf16>
    %cst_279 = arith.constant dense<0.000000e+00> : vector<2x512xf32>
    %783 = tpu.matmul %782, %686, %cst_279 {dimension_numbers = #tpu.dot_dimension_numbers<[1], [0], [0], [1], [0, 0, 1, 1], [], []>} : vector<2x128xbf16>, vector<128x512xbf16>, vector<2x512xf32> -> vector<2x512xf32>
    %784 = arith.addf %781, %783 : vector<2x512xf32>
    %785 = vector.extract_strided_slice %784 {offsets = [0, 0], sizes = [2, 128], strides = [1, 1]} : vector<2x512xf32> to vector<2x128xf32>
    %786 = arith.negf %785 : vector<2x128xf32>
    %787 = math.exp %786 : vector<2x128xf32>
    %cst_280 = arith.constant 1.000000e+00 : f32
    %788 = vector.broadcast %cst_280 : f32 to vector<2x128xf32>
    %789 = arith.addf %788, %787 : vector<2x128xf32>
    %790 = arith.divf %788, %789 : vector<2x128xf32>
    %791 = vector.extract_strided_slice %784 {offsets = [0, 128], sizes = [2, 128], strides = [1, 1]} : vector<2x512xf32> to vector<2x128xf32>
    %792 = arith.negf %791 : vector<2x128xf32>
    %793 = math.exp %792 : vector<2x128xf32>
    %cst_281 = arith.constant 1.000000e+00 : f32
    %794 = vector.broadcast %cst_281 : f32 to vector<2x128xf32>
    %795 = arith.addf %794, %793 : vector<2x128xf32>
    %796 = arith.divf %794, %795 : vector<2x128xf32>
    %797 = vector.extract_strided_slice %784 {offsets = [0, 256], sizes = [2, 128], strides = [1, 1]} : vector<2x512xf32> to vector<2x128xf32>
    %798 = math.tanh %797 : vector<2x128xf32>
    %799 = vector.extract_strided_slice %784 {offsets = [0, 384], sizes = [2, 128], strides = [1, 1]} : vector<2x512xf32> to vector<2x128xf32>
    %800 = arith.negf %799 : vector<2x128xf32>
    %801 = math.exp %800 : vector<2x128xf32>
    %cst_282 = arith.constant 1.000000e+00 : f32
    %802 = vector.broadcast %cst_282 : f32 to vector<2x128xf32>
    %803 = arith.addf %802, %801 : vector<2x128xf32>
    %804 = arith.divf %802, %803 : vector<2x128xf32>
    %805 = arith.mulf %796, %778 : vector<2x128xf32>
    %806 = arith.mulf %790, %798 : vector<2x128xf32>
    %807 = arith.addf %805, %806 : vector<2x128xf32>
    %808 = math.tanh %807 : vector<2x128xf32>
    %809 = arith.mulf %804, %808 : vector<2x128xf32>
    %810 = vector.extract_strided_slice %691 {offsets = [8, 0], sizes = [2, 512], strides = [1, 1]} : vector<16x512xf32> to vector<2x512xf32>
    %811 = arith.truncf %809 : vector<2x128xf32> to vector<2x128xbf16>
    %cst_283 = arith.constant dense<0.000000e+00> : vector<2x512xf32>
    %812 = tpu.matmul %811, %686, %cst_283 {dimension_numbers = #tpu.dot_dimension_numbers<[1], [0], [0], [1], [0, 0, 1, 1], [], []>} : vector<2x128xbf16>, vector<128x512xbf16>, vector<2x512xf32> -> vector<2x512xf32>
    %813 = arith.addf %810, %812 : vector<2x512xf32>
    %814 = vector.extract_strided_slice %813 {offsets = [0, 0], sizes = [2, 128], strides = [1, 1]} : vector<2x512xf32> to vector<2x128xf32>
    %815 = arith.negf %814 : vector<2x128xf32>
    %816 = math.exp %815 : vector<2x128xf32>
    %cst_284 = arith.constant 1.000000e+00 : f32
    %817 = vector.broadcast %cst_284 : f32 to vector<2x128xf32>
    %818 = arith.addf %817, %816 : vector<2x128xf32>
    %819 = arith.divf %817, %818 : vector<2x128xf32>
    %820 = vector.extract_strided_slice %813 {offsets = [0, 128], sizes = [2, 128], strides = [1, 1]} : vector<2x512xf32> to vector<2x128xf32>
    %821 = arith.negf %820 : vector<2x128xf32>
    %822 = math.exp %821 : vector<2x128xf32>
    %cst_285 = arith.constant 1.000000e+00 : f32
    %823 = vector.broadcast %cst_285 : f32 to vector<2x128xf32>
    %824 = arith.addf %823, %822 : vector<2x128xf32>
    %825 = arith.divf %823, %824 : vector<2x128xf32>
    %826 = vector.extract_strided_slice %813 {offsets = [0, 256], sizes = [2, 128], strides = [1, 1]} : vector<2x512xf32> to vector<2x128xf32>
    %827 = math.tanh %826 : vector<2x128xf32>
    %828 = vector.extract_strided_slice %813 {offsets = [0, 384], sizes = [2, 128], strides = [1, 1]} : vector<2x512xf32> to vector<2x128xf32>
    %829 = arith.negf %828 : vector<2x128xf32>
    %830 = math.exp %829 : vector<2x128xf32>
    %cst_286 = arith.constant 1.000000e+00 : f32
    %831 = vector.broadcast %cst_286 : f32 to vector<2x128xf32>
    %832 = arith.addf %831, %830 : vector<2x128xf32>
    %833 = arith.divf %831, %832 : vector<2x128xf32>
    %834 = arith.mulf %825, %807 : vector<2x128xf32>
    %835 = arith.mulf %819, %827 : vector<2x128xf32>
    %836 = arith.addf %834, %835 : vector<2x128xf32>
    %837 = math.tanh %836 : vector<2x128xf32>
    %838 = arith.mulf %833, %837 : vector<2x128xf32>
    %839 = vector.extract_strided_slice %691 {offsets = [10, 0], sizes = [2, 512], strides = [1, 1]} : vector<16x512xf32> to vector<2x512xf32>
    %840 = arith.truncf %838 : vector<2x128xf32> to vector<2x128xbf16>
    %cst_287 = arith.constant dense<0.000000e+00> : vector<2x512xf32>
    %841 = tpu.matmul %840, %686, %cst_287 {dimension_numbers = #tpu.dot_dimension_numbers<[1], [0], [0], [1], [0, 0, 1, 1], [], []>} : vector<2x128xbf16>, vector<128x512xbf16>, vector<2x512xf32> -> vector<2x512xf32>
    %842 = arith.addf %839, %841 : vector<2x512xf32>
    %843 = vector.extract_strided_slice %842 {offsets = [0, 0], sizes = [2, 128], strides = [1, 1]} : vector<2x512xf32> to vector<2x128xf32>
    %844 = arith.negf %843 : vector<2x128xf32>
    %845 = math.exp %844 : vector<2x128xf32>
    %cst_288 = arith.constant 1.000000e+00 : f32
    %846 = vector.broadcast %cst_288 : f32 to vector<2x128xf32>
    %847 = arith.addf %846, %845 : vector<2x128xf32>
    %848 = arith.divf %846, %847 : vector<2x128xf32>
    %849 = vector.extract_strided_slice %842 {offsets = [0, 128], sizes = [2, 128], strides = [1, 1]} : vector<2x512xf32> to vector<2x128xf32>
    %850 = arith.negf %849 : vector<2x128xf32>
    %851 = math.exp %850 : vector<2x128xf32>
    %cst_289 = arith.constant 1.000000e+00 : f32
    %852 = vector.broadcast %cst_289 : f32 to vector<2x128xf32>
    %853 = arith.addf %852, %851 : vector<2x128xf32>
    %854 = arith.divf %852, %853 : vector<2x128xf32>
    %855 = vector.extract_strided_slice %842 {offsets = [0, 256], sizes = [2, 128], strides = [1, 1]} : vector<2x512xf32> to vector<2x128xf32>
    %856 = math.tanh %855 : vector<2x128xf32>
    %857 = vector.extract_strided_slice %842 {offsets = [0, 384], sizes = [2, 128], strides = [1, 1]} : vector<2x512xf32> to vector<2x128xf32>
    %858 = arith.negf %857 : vector<2x128xf32>
    %859 = math.exp %858 : vector<2x128xf32>
    %cst_290 = arith.constant 1.000000e+00 : f32
    %860 = vector.broadcast %cst_290 : f32 to vector<2x128xf32>
    %861 = arith.addf %860, %859 : vector<2x128xf32>
    %862 = arith.divf %860, %861 : vector<2x128xf32>
    %863 = arith.mulf %854, %836 : vector<2x128xf32>
    %864 = arith.mulf %848, %856 : vector<2x128xf32>
    %865 = arith.addf %863, %864 : vector<2x128xf32>
    %866 = math.tanh %865 : vector<2x128xf32>
    %867 = arith.mulf %862, %866 : vector<2x128xf32>
    %868 = vector.extract_strided_slice %691 {offsets = [12, 0], sizes = [2, 512], strides = [1, 1]} : vector<16x512xf32> to vector<2x512xf32>
    %869 = arith.truncf %867 : vector<2x128xf32> to vector<2x128xbf16>
    %cst_291 = arith.constant dense<0.000000e+00> : vector<2x512xf32>
    %870 = tpu.matmul %869, %686, %cst_291 {dimension_numbers = #tpu.dot_dimension_numbers<[1], [0], [0], [1], [0, 0, 1, 1], [], []>} : vector<2x128xbf16>, vector<128x512xbf16>, vector<2x512xf32> -> vector<2x512xf32>
    %871 = arith.addf %868, %870 : vector<2x512xf32>
    %872 = vector.extract_strided_slice %871 {offsets = [0, 0], sizes = [2, 128], strides = [1, 1]} : vector<2x512xf32> to vector<2x128xf32>
    %873 = arith.negf %872 : vector<2x128xf32>
    %874 = math.exp %873 : vector<2x128xf32>
    %cst_292 = arith.constant 1.000000e+00 : f32
    %875 = vector.broadcast %cst_292 : f32 to vector<2x128xf32>
    %876 = arith.addf %875, %874 : vector<2x128xf32>
    %877 = arith.divf %875, %876 : vector<2x128xf32>
    %878 = vector.extract_strided_slice %871 {offsets = [0, 128], sizes = [2, 128], strides = [1, 1]} : vector<2x512xf32> to vector<2x128xf32>
    %879 = arith.negf %878 : vector<2x128xf32>
    %880 = math.exp %879 : vector<2x128xf32>
    %cst_293 = arith.constant 1.000000e+00 : f32
    %881 = vector.broadcast %cst_293 : f32 to vector<2x128xf32>
    %882 = arith.addf %881, %880 : vector<2x128xf32>
    %883 = arith.divf %881, %882 : vector<2x128xf32>
    %884 = vector.extract_strided_slice %871 {offsets = [0, 256], sizes = [2, 128], strides = [1, 1]} : vector<2x512xf32> to vector<2x128xf32>
    %885 = math.tanh %884 : vector<2x128xf32>
    %886 = vector.extract_strided_slice %871 {offsets = [0, 384], sizes = [2, 128], strides = [1, 1]} : vector<2x512xf32> to vector<2x128xf32>
    %887 = arith.negf %886 : vector<2x128xf32>
    %888 = math.exp %887 : vector<2x128xf32>
    %cst_294 = arith.constant 1.000000e+00 : f32
    %889 = vector.broadcast %cst_294 : f32 to vector<2x128xf32>
    %890 = arith.addf %889, %888 : vector<2x128xf32>
    %891 = arith.divf %889, %890 : vector<2x128xf32>
    %892 = arith.mulf %883, %865 : vector<2x128xf32>
    %893 = arith.mulf %877, %885 : vector<2x128xf32>
    %894 = arith.addf %892, %893 : vector<2x128xf32>
    %895 = math.tanh %894 : vector<2x128xf32>
    %896 = arith.mulf %891, %895 : vector<2x128xf32>
    %897 = vector.extract_strided_slice %691 {offsets = [14, 0], sizes = [2, 512], strides = [1, 1]} : vector<16x512xf32> to vector<2x512xf32>
    %898 = arith.truncf %896 : vector<2x128xf32> to vector<2x128xbf16>
    %cst_295 = arith.constant dense<0.000000e+00> : vector<2x512xf32>
    %899 = tpu.matmul %898, %686, %cst_295 {dimension_numbers = #tpu.dot_dimension_numbers<[1], [0], [0], [1], [0, 0, 1, 1], [], []>} : vector<2x128xbf16>, vector<128x512xbf16>, vector<2x512xf32> -> vector<2x512xf32>
    %900 = arith.addf %897, %899 : vector<2x512xf32>
    %901 = vector.extract_strided_slice %900 {offsets = [0, 0], sizes = [2, 128], strides = [1, 1]} : vector<2x512xf32> to vector<2x128xf32>
    %902 = arith.negf %901 : vector<2x128xf32>
    %903 = math.exp %902 : vector<2x128xf32>
    %cst_296 = arith.constant 1.000000e+00 : f32
    %904 = vector.broadcast %cst_296 : f32 to vector<2x128xf32>
    %905 = arith.addf %904, %903 : vector<2x128xf32>
    %906 = arith.divf %904, %905 : vector<2x128xf32>
    %907 = vector.extract_strided_slice %900 {offsets = [0, 128], sizes = [2, 128], strides = [1, 1]} : vector<2x512xf32> to vector<2x128xf32>
    %908 = arith.negf %907 : vector<2x128xf32>
    %909 = math.exp %908 : vector<2x128xf32>
    %cst_297 = arith.constant 1.000000e+00 : f32
    %910 = vector.broadcast %cst_297 : f32 to vector<2x128xf32>
    %911 = arith.addf %910, %909 : vector<2x128xf32>
    %912 = arith.divf %910, %911 : vector<2x128xf32>
    %913 = vector.extract_strided_slice %900 {offsets = [0, 256], sizes = [2, 128], strides = [1, 1]} : vector<2x512xf32> to vector<2x128xf32>
    %914 = math.tanh %913 : vector<2x128xf32>
    %915 = vector.extract_strided_slice %900 {offsets = [0, 384], sizes = [2, 128], strides = [1, 1]} : vector<2x512xf32> to vector<2x128xf32>
    %916 = arith.negf %915 : vector<2x128xf32>
    %917 = math.exp %916 : vector<2x128xf32>
    %cst_298 = arith.constant 1.000000e+00 : f32
    %918 = vector.broadcast %cst_298 : f32 to vector<2x128xf32>
    %919 = arith.addf %918, %917 : vector<2x128xf32>
    %920 = arith.divf %918, %919 : vector<2x128xf32>
    %921 = arith.mulf %912, %894 : vector<2x128xf32>
    %922 = arith.mulf %906, %914 : vector<2x128xf32>
    %923 = arith.addf %921, %922 : vector<2x128xf32>
    %924 = math.tanh %923 : vector<2x128xf32>
    %925 = arith.mulf %920, %924 : vector<2x128xf32>
    %c0_299 = arith.constant 0 : index
    %c0_300 = arith.constant 0 : index
    %926 = vector.load %arg9[%c0_299, %c0_300] : memref<128x2xbf16, #tpu.memory_space<vmem>>, vector<128x2xbf16>
    %927 = arith.truncf %925 : vector<2x128xf32> to vector<2x128xbf16>
    %cst_301 = arith.constant dense<0.000000e+00> : vector<2x2xf32>
    %928 = tpu.matmul %927, %926, %cst_301 {dimension_numbers = #tpu.dot_dimension_numbers<[1], [0], [0], [1], [0, 0, 1, 1], [], []>} : vector<2x128xbf16>, vector<128x2xbf16>, vector<2x2xf32> -> vector<2x2xf32>
    %c0_302 = arith.constant 0 : index
    %c0_303 = arith.constant 0 : index
    %929 = vector.load %arg10[%c0_302, %c0_303] : memref<1x2xf32, #tpu.memory_space<vmem>>, vector<1x2xf32>
    %930 = vector.broadcast %929 : vector<1x2xf32> to vector<2x2xf32>
    %931 = arith.addf %928, %930 : vector<2x2xf32>
    %c0_304 = arith.constant 0 : index
    %c0_305 = arith.constant 0 : index
    %932 = vector.load %arg11[%c0_304, %c0_305] : memref<2x2xf32, #tpu.memory_space<vmem>>, vector<2x2xf32>
    tpu.vector_store %arg11[%c0_304, %c0_305], %931 {strides = array<i32>} : memref<2x2xf32, #tpu.memory_space<vmem>>, vector<2x2xf32>,
    return
  }
  func.func @transform_0(%arg0: i32, %arg1: memref<16xi32, #tpu.memory_space<smem>>, %arg2: memref<16xi32, #tpu.memory_space<smem>>) -> (i32, i32) {
    %c0_i32 = arith.constant 0 : i32
    %c0_i32_0 = arith.constant 0 : i32
    %c0_i32_1 = arith.constant 0 : i32
    return %c0_i32, %c0_i32_0 : i32, i32
  }
  func.func @transform_1(%arg0: i32, %arg1: memref<16xi32, #tpu.memory_space<smem>>, %arg2: memref<16xi32, #tpu.memory_space<smem>>) -> (i32, i32) {
    %c0_i32 = arith.constant 0 : i32
    %c0_i32_0 = arith.constant 0 : i32
    %c0_i32_1 = arith.constant 0 : i32
    return %c0_i32, %c0_i32_0 : i32, i32
  }
  func.func @transform_2(%arg0: i32, %arg1: memref<16xi32, #tpu.memory_space<smem>>, %arg2: memref<16xi32, #tpu.memory_space<smem>>) -> (i32, i32, i32, i32) {
    %c0_i32 = arith.constant 0 : i32
    %c0_i32_0 = arith.constant 0 : i32
    %c0_i32_1 = arith.constant 0 : i32
    %c0_i32_2 = arith.constant 0 : i32
    %c0_i32_3 = arith.constant 0 : i32
    return %c0_i32, %c0_i32_0, %c0_i32_1, %c0_i32_2 : i32, i32, i32, i32
  }
  func.func @transform_3(%arg0: i32, %arg1: memref<16xi32, #tpu.memory_space<smem>>, %arg2: memref<16xi32, #tpu.memory_space<smem>>) -> (i32, i32, i32) {
    %c0_i32 = arith.constant 0 : i32
    %c0_i32_0 = arith.constant 0 : i32
    %c0_i32_1 = arith.constant 0 : i32
    %c0_i32_2 = arith.constant 0 : i32
    return %c0_i32, %c0_i32_0, %c0_i32_1 : i32, i32, i32
  }
  func.func @transform_4(%arg0: i32, %arg1: memref<16xi32, #tpu.memory_space<smem>>, %arg2: memref<16xi32, #tpu.memory_space<smem>>) -> (i32, i32) {
    %c0_i32 = arith.constant 0 : i32
    %c0_i32_0 = arith.constant 0 : i32
    %c0_i32_1 = arith.constant 0 : i32
    return %c0_i32, %c0_i32_0 : i32, i32
  }
  func.func @transform_5(%arg0: i32, %arg1: memref<16xi32, #tpu.memory_space<smem>>, %arg2: memref<16xi32, #tpu.memory_space<smem>>) -> (i32, i32) {
    %c0_i32 = arith.constant 0 : i32
    %c0_i32_0 = arith.constant 0 : i32
    %c0_i32_1 = arith.constant 0 : i32
    return %c0_i32, %c0_i32_0 : i32, i32
  }
  func.func @transform_6(%arg0: i32, %arg1: memref<16xi32, #tpu.memory_space<smem>>, %arg2: memref<16xi32, #tpu.memory_space<smem>>) -> (i32, i32) {
    %c0_i32 = arith.constant 0 : i32
    %c0_i32_0 = arith.constant 0 : i32
    %c0_i32_1 = arith.constant 0 : i32
    return %c0_i32, %c0_i32_0 : i32, i32
  }
  func.func @transform_7(%arg0: i32, %arg1: memref<16xi32, #tpu.memory_space<smem>>, %arg2: memref<16xi32, #tpu.memory_space<smem>>) -> (i32, i32) {
    %c0_i32 = arith.constant 0 : i32
    %c0_i32_0 = arith.constant 0 : i32
    %c0_i32_1 = arith.constant 0 : i32
    return %c0_i32, %c0_i32_0 : i32, i32
  }
  func.func @transform_8(%arg0: i32, %arg1: memref<16xi32, #tpu.memory_space<smem>>, %arg2: memref<16xi32, #tpu.memory_space<smem>>) -> (i32, i32) {
    %c0_i32 = arith.constant 0 : i32
    %c0_i32_0 = arith.constant 0 : i32
    %c0_i32_1 = arith.constant 0 : i32
    return %c0_i32, %c0_i32_0 : i32, i32
  }
}

</mosaic_0001>

<bundles_post_ra>
// kernel: forward.1
= control target key start
LH: loop header
LB: loop body
LE: loop exit
PB: predicated region body
PF: predicated region fallthrough
CT: control target
= control target key end

     0   :  { %s6625_s0 = inlined_call_operand.vmem [shape: s32[16], index: 0, kind: input, shape index: {}]   ;;  %s6626_s2 = inlined_call_operand.vmem [shape: f32[136,32], index: 2, kind: input, shape index: {}]   ;;  %s6627_s3 = inlined_call_operand.vmem [shape: f32[2,8], index: 3, kind: input, shape index: {}]   ;;  %s6628_s4 = inlined_call_operand.hbm [shape: bf16[2,8,32,32], index: 4, kind: input, shape index: {}]   ;;  %s6629_s5 = inlined_call_operand.vmem [shape: f32[2,11,32], index: 5, kind: input, shape index: {}]   ;;  %s6630_s6 = inlined_call_operand.vmem [shape: bf16[160,512], index: 6, kind: input, shape index: {}]   ;;  %s6631_s7 = inlined_call_operand.vmem [shape: f32[1,512], index: 7, kind: input, shape index: {}]   ;;  %s6632_s8 = inlined_call_operand.vmem [shape: bf16[128,2], index: 8, kind: input, shape index: {}]   ;;  %s6633_s9 = inlined_call_operand.vmem [shape: f32[1,2], index: 9, kind: input, shape index: {}]   ;;  %s6634_s10 = inlined_call_operand.hbm [shape: f32[2,2], index: 10, kind: output, shape index: {}]   ;;  %s6635_s1 = inlined_call_operand.vmem [shape: s32[16], index: 1, kind: input, shape index: {}]  }
   0x1   :  { %s15_s15 = sshll.u32 %s6625_s0, 4  ;;  %s19_s18 = sshll.u32 %s6635_s1, 4  ;;  %s16_s15 = int_to_ptr.vmem [resolvable:$true] %s15_s15  ;;  %s20_s18 = int_to_ptr.vmem [resolvable:$true] %s19_s18 }
   0x2   :  { %s5213_s19 = scalar_lea.vmem %s16_s15, 16  ;;  %p5218_p1 = scmp.lt.s32.totalorder %s16_s15, %s16_s15 }
   0x3   :  { %p5214_p0 = scmp.ne.s32.totalorder %s16_s15, %s5213_s19  ;;  %p5219_p2 = scmp.lt.s32.totalorder %s5213_s19, %s5213_s19 }
   0x5   :  { %p5220_p3 = por %p5219_p2, %p5218_p1 }
   0x7   :  { %p5221_p4 = pnand %p5220_p3, %p5214_p0 }
   0x9   :  { %5224 = shalt.err (!%p5221_p4)  }
   0xa   :  { %s5287_s20 = smov [#allocation3]   ;;  %s5225_s21 = scalar_lea.vmem %s20_s18, 16 }
   0xb   :  { %18 = dma.vmem_to_smem %s16_s15, 16, %s5287_s20, [#allocation2] }
   0xc   :  { %p5226_p5 = scmp.ne.s32.totalorder %s20_s18, %s5225_s21  ;;  %p5230_p6 = scmp.lt.s32.totalorder %s20_s18, %s20_s18 }
   0xd   :  { %p5231_p7 = scmp.lt.s32.totalorder %s5225_s21, %s5225_s21 }
   0xf   :  { %p5232_p8 = por %p5231_p7, %p5230_p6 }
  0x11   :  { %p5233_p9 = pnand %p5232_p8, %p5226_p5 }
  0x13   :  { %5236 = shalt.err (!%p5233_p9)  }
  0x14   :  { %s5288_s0 = smov [#allocation4]  }
  0x15   :  { %22 = dma.vmem_to_smem %s20_s18, 16, %s5288_s0, [#allocation2] }
  0x16   :  { %5281 = dma.done.wait [#allocation2], 32 }
  0x17   :  { %5282 = vsyncadd [#allocation2], 4294967264 }
  0x18   :  { %24 = sfence }
  0x19   :  { %25 = vsyncpa [#allocation6], 0 }
  0x1a   :  { %26 = vsyncpa [#allocation7], 0  ;;  %s5289_s1 = smov [#allocation5]   ;;  %s5237_s25 = scalar_lea.hbm %s6628_s4, 4096 }
  0x1b   :  { %s36_s22 = sshll.u32 %s5289_s1, 4  ;;  %p5238_p10 = scmp.ne.s32.totalorder %s6628_s4, %s5237_s25  ;;  %s37_s22 = int_to_ptr.vmem [resolvable:$true] %s36_s22 }
  0x1c   :  { %p5241_p11 = scmp.lt.u32.totalorder %s5237_s25, %s6628_s4 }
  0x1e   :  { %p5243_p12 = pnand %p5241_p11, %p5238_p10 }
  0x20   :  { %5246 = shalt.err (!%p5243_p12)
}
  0x21   :  { %s5247_s30 = scalar_lea.vmem %s37_s22, 4096  ;;  %p5252_p0 = scmp.lt.s32.totalorder %s37_s22, %s37_s22 }
  0x22   :  { %p5248_p13 = scmp.ne.s32.totalorder %s37_s22, %s5247_s30  ;;  %p5253_p1 = scmp.lt.s32.totalorder %s5247_s30, %s5247_s30 }
  0x24   :  { %p5254_p2 = por %p5253_p1, %p5252_p0 }
  0x26   :  { %p5255_p3 = pnand %p5254_p2, %p5248_p13 }
  0x28   :  { %5258 = shalt.err (!%p5255_p3)
}
  0x29   :  { %s5290_s11 = smov 64   ;;  %s5291_s12 = smov 4  }
  0x2a   :  { %42 = dma.hbm_to_vmem [thread:$0]  %s6628_s4, 4096, %s37_s22, [#allocation6], %s5290_s11, %s5290_s11, %s5291_s12  }
  0x2b   :  { %5283 = dma.done.wait [#allocation6], 4096  }
  0x2c   :  { %5284 = vsyncadd [#allocation6], 4294963200  ;;  %s57_s15 = sld [smem:[#allocation3]]  ;;  %s4319_s17 = sld [smem:[#allocation3 + $0x1]]  ;;  %vm251_vm0 = vcmask 1040384   ;;  %vm253_vm1 = vcmask 1041408  }
  0x2d   :  { %s58_s16 = sld [smem:[#allocation4]]  ;;  %s4320_s18 = sld [smem:[#allocation4 + $0x1]]  ;;  %v5389_v0 = vld [vmem:[%s6626_s2 + $0x64] sm:$0x1]  ;;  %v5397_v1 = vld [vmem:[%s6626_s2 + $0x65] sm:$0x1] }
  0x2e   :  { %s4322_s19 = sld [smem:[#allocation3 + $0x2]]  ;;  %s5371_s21 = sld [smem:[#allocation3 + $0x3]]  ;;  %vm255_vm2 = vcmask 1042432   ;;  %v5408_v4 = vld [vmem:[%s6626_s2 + $0x66] sm:$0x1]  ;;  %vm257_vm3 = vcmask 1043456  }
  0x2f   :  { %s4323_s20 = sld [smem:[#allocation4 + $0x2]]  ;;  %s5373_s0 = sld [smem:[#allocation4 + $0x3]]  ;;  %v5420_v8 = vld [vmem:[%s6626_s2 + $0x67] sm:$0x1]  ;;  %v5434_v12 = vld [vmem:[%s6626_s2 + $0x68] sm:$0x1] }
  0x30   :  { %s5375_s1 = sld [smem:[#allocation3 + $0x4]]  ;;  %s5379_s24 = sld [smem:[#allocation3 + $0x5]]  ;;  %v5448_v16 = vld [vmem:[%s6626_s2 + $0x69] sm:$0x1]  ;;  %vm259_vm4 = vcmask 1044480   ;;  %vm261_vm5 = vcmask 1045504  }
  0x31   :  { %s5377_s23 = sld [smem:[#allocation4 + $0x4]]  ;;  %s5381_s25 = sld [smem:[#allocation4 + $0x5]]  ;;  %v5474_v32 = vld [vmem:[%s6626_s2 + $0x6a] sm:$0x1]  ;;  %v5484_v35 = vld [vmem:[%s6626_s2 + $0x6b] sm:$0x1] }
  0x32   :  { %s59_s26 = scalar_lea.vmem %s6626_s2, %s57_s15  ;;  %s69_s4 = scalar_lea.vmem %s6626_s2, %s4319_s17  ;;  %vm263_vm6 = vcmask 1046528   ;;  %vm274_vm7 = vcmask 261120   ;;  %vm5293_vm8 = vmmov 0   ;;  %vm542_vm9 = vcmask 130048  }
  0x33   :  { %s4271_s11 = scalar_lea.vmem %s6626_s2, %s58_s16  ;;  %v60_v2 = vld [vmem:[%s59_s26] sm:$0x1]  ;;  %s4274_s28 = scalar_lea.vmem %s6626_s2, %s4320_s18  ;;  %vm592_vm10 = vcmask 64512   ;;  %vm4253_vm11 = vcmask 9216  }
  0x34   :  { %v4318_v3 = vld [vmem:[%s4271_s11 + $0x84] sm:$0x1]  ;;  %v62_v5 = vadd.f32 %v5389_v0, %v60_v2  ;;  %v70_v6 = vld [vmem:[%s69_s4] sm:$0x1]  ;;  %s79_s11 = scalar_lea.vmem %s6626_s2, %s4322_s19  ;;  %s89_s22 = scalar_lea.vmem %s6626_s2, %s5371_s21 }
  0x35   :  { %v4321_v7 = vld [vmem:[%s4274_s28 + $0x84] sm:$0x1]  ;;  %s4277_s13 = scalar_lea.vmem %s6626_s2, %s4323_s20  ;;  %v72_v9 = vadd.f32 %v5397_v1, %v70_v6  ;;  %v80_v10 = vld [vmem:[%s79_s11] sm:$0x1]  ;;  %s4280_s28 = scalar_lea.vmem %s6626_s2, %s5373_s0 }
  0x36   :  { %v4324_v11 = vld [vmem:[%s4277_s13 + $0x84] sm:$0x1]  ;;  %v82_v13 = vadd.f32 %v5408_v4, %v80_v10  ;;  %v90_v14 = vld [vmem:[%s89_s22] sm:$0x1]  ;;  %s99_s30 = scalar_lea.vmem %s6626_s2, %s5375_s1  ;;  %v66_v17 = vadd.f32 %v4318_v3, %v62_v5  ;;  %s109_s14 = scalar_lea.vmem %s6626_s2, %s5379_s24 }
  0x37   :  { %v4327_v15 = vld [vmem:[%s4280_s28 + $0x84] sm:$0x1]  ;;  %s4283_s21 = scalar_lea.vmem %s6626_s2, %s5377_s23  ;;  %v76_v18 = vadd.f32 %v4321_v7, %v72_v9  ;;  %v92_v19 = vadd.f32 %v5420_v8, %v90_v14  ;;  %v100_v20 = vld [vmem:[%s99_s30] sm:$0x1]  ;;  %s4286_s4 = scalar_lea.vmem %s6626_s2, %s5381_s25 }
  0x38   :  { %v4330_v21 = vld [vmem:[%s4283_s21 + $0x84] sm:$0x1]  ;;  %v86_v22 = vadd.f32 %v4324_v11, %v82_v13  ;;  %v102_v23 = vadd.f32 %v5434_v12, %v100_v20  ;;  %v110_v24 = vld [vmem:[%s109_s14] sm:$0x1]  ;;  %s5460_s23 = sld [smem:[#allocation3 + $0x6]]  ;;  %s5465_s19 = sld [smem:[#allocation3 + $0x7]] }
  0x39   :  { %v4333_v25 = vld [vmem:[%s4286_s4 + $0x84] sm:$0x1]  ;;  %v96_v26 = vadd.f32 %v4327_v15, %v92_v19  ;;  %v112_v27 = vadd.f32 %v5448_v16, %v110_v24  ;;  %s5463_s22 = sld [smem:[#allocation4 + $0x6]]  ;;  %v210_v28 = vrot.slane %v76_v18, 7  ;;  %s5467_s24 = sld [smem:[#allocation4 + $0x7]] }
  0x3a   :  { %v106_v29 = vadd.f32 %v4330_v21, %v102_v23  ;;  %v213_v30 = vrot.slane %v86_v22, 6  ;;  %s5469_s25 = sld [smem:[#allocation3 + $0x8]]  ;;  %s5479_s16 = sld [smem:[#allocation3 + $0x9]] }
  0x3b   :  { %v116_v31 = vadd.f32 %v4333_v25, %v112_v27  ;;  %v216_v33 = vrot.slane %v96_v26, 5  ;;  %v252_v34 = vsel %vm251_vm0, %v66_v17, %v210_v28  ;;  %s5477_s20 = sld [smem:[#allocation4 + $0x8]]  ;;  %s5487_s30 = sld [smem:[#allocation4 + $0x9]] }
  0x3c   :  { %v219_v36 = vrot.slane %v106_v29, 4  ;;  %v254_v37 = vsel %vm253_vm1, %v252_v34, %v213_v30  ;;  %s5489_s11 = sld [smem:[#allocation3 + $0xa]]  ;;  %s5494_s21 = sld [smem:[#allocation3 + $0xb]] }
  0x3d   :  { %v222_v38 = vrot.slane %v116_v31, 3  ;;  %v256_v39 = vsel %vm255_vm2, %v254_v37, %v216_v33  ;;  %s5492_s17 = sld [smem:[#allocation4 + $0xa]]  ;;  %s5500_s18 = sld [smem:[#allocation4 + $0xb]] }
  0x3e   :  { %s119_s0 = scalar_lea.vmem %s6626_s2, %s5460_s23  ;;  %s129_s28 = scalar_lea.vmem %s6626_s2, %s5465_s19  ;;  %v258_v44 = vsel %vm257_vm3, %v256_v39, %v219_v36 }
  0x3f   :  { %v120_v40 = vld [vmem:[%s119_s0] sm:$0x1]  ;;  %s4289_s15 = scalar_lea.vmem %s6626_s2, %s5463_s22  ;;  %s4292_s23 = scalar_lea.vmem %s6626_s2, %s5467_s24  ;;  %v260_v53 = vsel %vm259_vm4, %v258_v44, %v222_v38 }
  0x40   :  { %v122_v41 = vadd.f32 %v5474_v32, %v120_v40  ;;  %v4336_v42 = vld [vmem:[%s4289_s15 + $0x84] sm:$0x1]  ;;  %v130_v43 = vld [vmem:[%s129_s28] sm:$0x1]  ;;  %s139_s22 = scalar_lea.vmem %s6626_s2, %s5469_s25  ;;  %s148_s24 = scalar_lea.vmem %s6626_s2, %s5479_s16 }
  0x41   :  { %v132_v45 = vadd.f32 %v5484_v35, %v130_v43  ;;  %v4339_v46 = vld [vmem:[%s4292_s23 + $0x84] sm:$0x1]  ;;  %v140_v47 = vld [vmem:[%s139_s22] sm:$0x1]  ;;  %s4295_s14 = scalar_lea.vmem %s6626_s2, %s5477_s20  ;;  %s4298_s27 = scalar_lea.vmem %s6626_s2, %s5487_s30 }
  0x42   :  { %v126_v48 = vadd.f32 %v4336_v42, %v122_v41  ;;  %v141_v49 = vadd.f32 %v140_v47, %v5389_v0  ;;  %v4342_v50 = vld [vmem:[%s4295_s14 + $0x84] sm:$0x1]  ;;  %v149_v51 = vld [vmem:[%s148_s24] sm:$0x1]  ;;  %s157_s26 = scalar_lea.vmem %s6626_s2, %s5489_s11  ;;  %s166_s22 = scalar_lea.vmem %s6626_s2, %s5494_s21 }
  0x43   :  { %v136_v52 = vadd.f32 %v4339_v46, %v132_v45  ;;  %v150_v54 = vadd.f32 %v149_v51, %v5397_v1  ;;  %v4345_v55 = vld [vmem:[%s4298_s27 + $0x84] sm:$0x1]  ;;  %v158_v56 = vld [vmem:[%s157_s26] sm:$0x1]  ;;  %s4301_s23 = scalar_lea.vmem %s6626_s2, %s5492_s17  ;;  %s4304_s19 = scalar_lea.vmem %s6626_s2, %s5500_s18 }
  0x44   :  { %v225_v57 = vrot.slane %v126_v48, 2  ;;  %v159_v58 = vadd.f32 %v158_v56, %v5408_v4  ;;  %v4348_v59 = vld [vmem:[%s4301_s23 + $0x84] sm:$0x1]  ;;  %v167_v60 = vld [vmem:[%s166_s22] sm:$0x1]  ;;  %s4352_s0 = sld [smem:[#allocation3 + $0xc]]  ;;  %v145_v2 = vadd.f32 %v4342_v50, %v141_v49 }
  0x45   :  { %v228_v61 = vrot.slane %v136_v52, 1  ;;  %v154_v62 = vadd.f32 %v4345_v55, %v150_v54  ;;  %v168_v63 = vadd.f32 %v167_v60, %v5420_v8  ;;  %v4351_v0 = vld [vmem:[%s4304_s19 + $0x84] sm:$0x1]  ;;  %s4353_s17 = sld [smem:[#allocation4 + $0xc]]  ;;  %s4355_s21 = sld [smem:[#allocation3 + $0xd]]  ;;  %v5292_v49 = vmov 0.0  }
  0x46   :  { %v262_v1 = vsel %vm261_vm5, %v260_v53, %v225_v57  ;;  %v163_v3 = vadd.f32 %v4348_v59, %v159_v58  ;;  %s4356_s14 = sld [smem:[#allocation4 + $0xd]]  ;;  %s4358_s1 = sld [smem:[#allocation3 + $0xe]]  ;;  %v4885_v48 = vld [vmem:[#allocation5] sm:$0xff]   ;;  %4596 = vmatprep.subr.bf16.mxu1 %v5292_v49  ;;  %4626 = vmatprep.subr.bf16.mxu0 %v5292_v49  ;;  %v4886_v50 = vld [vmem:[#allocation5 + $0x8] sm:$0xff]  }
  0x47   :  { %v264_v4 = vsel %vm263_vm6, %v262_v1, %v228_v61  ;;  %v172_v5 = vadd.f32 %v4351_v0, %v168_v63  ;;  %v231_v6 = vrot.slane %v154_v62, 7  ;;  %s4359_s18 = sld [smem:[#allocation4 + $0xe]]  ;;  %s4361_s15 = sld [smem:[#allocation3 + $0xf]]  ;;  %4597 = vmatpush3.bf16.msra.mxu1 %v4885_v48  ;;  %4600 = vmatprep.mubr.msk.bf16.mxu1 %vm5293_vm8, %v5292_v49  ;;  %v4364_v59 = vld [vmem:[%s6626_s2 + $0x86] ss:$0 sm:$0xff] }
  0x48   :  { %v275_v7 = vsel %vm274_vm7, %v264_v4, 0.0  ;;  %v234_v9 = vrot.slane %v163_v3, 6  ;;  %s4362_s24 = sld [smem:[#allocation4 + $0xf]]  ;;  %4598 = vmatprep.subr.bf16.mxu1 %v5292_v49  ;;  %4628 = vmatprep.mubr.msk.bf16.mxu0 %vm5293_vm8, %v5292_v49  ;;  %v4365_v63 = vld [vmem:[%s6626_s2 + $0x87] ss:$0 sm:$0xff]  ;;  %v4887_v3 = vld [vmem:[#allocation5 + $0x10] sm:$0xff]  }
  0x49   :  { %276 = vadd.xlane.f32.xlu0 %v275_v7  ;;  %v237_v8 = vrot.slane %v172_v5, 5  ;;  %v265_v10 = vsel %vm251_vm0, %v145_v2, %v231_v6  ;;  %v4888_v5 = vld [vmem:[#allocation5 + $0x18] sm:$0xff]   ;;  %v4889_v6 = vld [vmem:[#allocation5 + $0x20] sm:$0xff]   ;;  %v4890_v7 = vld [vmem:[#allocation5 + $0x28] sm:$0xff]   ;;  %s5294_s20 = smov 112  }
  0x4a   :  { %s175_s27 = scalar_lea.vmem %s6626_s2, %s4352_s0  ;;  %v266_v17 = vsel %vm253_vm1, %v265_v10, %v234_v9  ;;  %v324_v9 = vlaneseq }
  0x4b   :  { %v176_v11 = vld [vmem:[%s175_s27] sm:$0x1]  ;;  %s4307_s26 = scalar_lea.vmem %s6626_s2, %s4353_s17  ;;  %s184_s23 = scalar_lea.vmem %s6626_s2, %s4355_s21  ;;  %v267_v26 = vsel %vm255_vm2, %v266_v17, %v237_v8  ;;  %4599 = vmatpush3.bf16.msra.mxu1 %v4886_v50 }
  0x4c   :  { %v177_v13 = vadd.f32 %v176_v11, %v5434_v12  ;;  %v4354_v14 = vld [vmem:[%s4307_s26 + $0x84] sm:$0x1]  ;;  %v185_v15 = vld [vmem:[%s184_s23] sm:$0x1]  ;;  %s4310_s22 = scalar_lea.vmem %s6626_s2, %s4356_s14  ;;  %s193_s19 = scalar_lea.vmem %s6626_s2, %s4358_s1  ;;  %4604 = vmatprep.subr.bf16.mxu1 %v5292_v49  ;;  %v5628_v8 = vshrl.u32 %v324_v9, 7 }
  0x4d   :  { %v186_v18 = vadd.f32 %v185_v15, %v5448_v16  ;;  %v4357_v19 = vld [vmem:[%s4310_s22 + $0x84] sm:$0x1]  ;;  %v194_v20 = vld [vmem:[%s193_s19] sm:$0x1]  ;;  %s4313_s21 = scalar_lea.vmem %s6626_s2, %s4359_s18  ;;  %s202_s27 = scalar_lea.vmem %s6626_s2, %s4361_s15 }
  0x4e   :  { %v181_v12 = vadd.f32 %v4354_v14, %v177_v13  ;;  %v195_v21 = vadd.f32 %v194_v20, %v5474_v32  ;;  %v4360_v22 = vld [vmem:[%s4313_s21 + $0x84] sm:$0x1]  ;;  %v203_v23 = vld [vmem:[%s202_s27] sm:$0x1]  ;;  %s4316_s28 = scalar_lea.vmem %s6626_s2, %s4362_s24  ;;  %v5631_v10 = vsub.s32 0, %v5628_v8  ;;  %s5297_s21 = smov [#allocation8]  }
  0x4f   :  { %v190_v16 = vadd.f32 %v4357_v19, %v186_v18  ;;  %v204_v24 = vadd.f32 %v203_v23, %v5484_v35  ;;  %v4363_v25 = vld [vmem:[%s4316_s28 + $0x84] sm:$0x1]  ;;  %v5641_v18 = vsub.s32 1, %v5628_v8 }
  0x50   :  { %v199_v27 = vadd.f32 %v4360_v22, %v195_v21  ;;  %v240_v28 = vrot.slane %v181_v12, 4  ;;  %v5636_v11 = vld [vmem:[%s6629_s5] sm:$0xff] }
  0x51   :  { %v208_v29 = vadd.f32 %v4363_v25, %v204_v24  ;;  %v243_v30 = vrot.slane %v190_v16, 3  ;;  %v327_v13 = vrot.slane %v5636_v11, %v5631_v10  ;;  %v392_v21 = vrot.slane %v5636_v11, %v5641_v18 }
  0x52   :  { %v246_v31 = vrot.slane %v199_v27, 2  ;;  %v268_v33 = vsel %vm257_vm3, %v267_v26, %v240_v28  ;;  %v5647_v25 = vsub.s32 2, %v5628_v8 }
  0x53   :  { %v249_v32 = vrot.slane %v208_v29, 1  ;;  %v269_v34 = vsel %vm259_vm4, %v268_v33, %v243_v30 }
  0x54   :  { %v270_v36 = vsel %vm261_vm5, %v269_v34, %v246_v31  ;;  %v454_v30 = vrot.slane %v5636_v11, %v5647_v25 }
  0x55   :  { %v271_v37 = vsel %vm263_vm6, %v270_v36, %v249_v32 }
  0x56   :  { %v278_v38 = vsel %vm274_vm7, %v271_v37, 0.0 }
  0x57   :  { %279 = vadd.xlane.f32.xlu0 %v278_v38 }
  0xd6   :  { %v277_v35 = vpop.xlane.xlu0 %276 }
  0xd7   :  { %v282_v39 = vmul.f32 0.03125, %v277_v35 }
  0xd9   :  { %v284_v40 = vsub.f32 %v264_v4, %v282_v39 }
  0xdb   :  { %v286_v41 = vmul.f32 %v284_v40, %v284_v40 }
  0xdd   :  { %v288_v42 = vsel %vm274_vm7, %v286_v41, 0.0 }
  0xde   :  { %289 = vadd.xlane.f32.xlu1 %v288_v42 }
  0xe4   :  { %v280_v43 = vpop.xlane.xlu0 %279 }
  0xe5   :  { %v283_v44 = vmul.f32 0.03125, %v280_v43 }
  0xe7   :  { %v285_v45 = vsub.f32 %v271_v37, %v283_v44 }
  0xe9   :  { %v287_v46 = vmul.f32 %v285_v45, %v285_v45 }
  0xeb   :  { %v291_v47 = vsel %vm274_vm7, %v287_v46, 0.0 }
  0xec   :  { %292 = vadd.xlane.f32.xlu1 %v291_v47 }
 0x16b   :  { %v290_v51 = vpop.xlane.xlu1 %289 }
 0x16c   :  { %v294_v52 = vmul.f32 0.03125, %v290_v51 }
 0x16e   :  { %v296_v53 = vadd.f32 1e-12, %v294_v52 }
 0x170   :  { %4985 = vrsqrt.f32 %v296_v53 }
 0x179   :  { %v293_v54 = vpop.xlane.xlu1 %292 }
 0x17a   :  { %v295_v55 = vmul.f32 0.03125, %v293_v54  ;;  %v4986_v57 = vpop.eup %4985 }
 0x17b   :  { %v300_v58 = vmul.f32 %v4986_v57, %v284_v40 }
 0x17c   :  { %v297_v56 = vadd.f32 1e-12, %v295_v55 }
 0x17d   :  { %v306_v62 = vmul.f32 %v4364_v59, %v300_v58 }
 0x17e   :  { %4987 = vrsqrt.f32 %v297_v56 }
 0x17f   :  { %v5609_v1 = vadd.f32 %v4365_v63, %v306_v62 }
 0x188   :  { %v4988_v60 = vpop.eup %4987 }
 0x189   :  { %v301_v61 = vmul.f32 %v4988_v60, %v285_v45 }
 0x18b   :  { %v307_v0 = vmul.f32 %v4364_v59, %v301_v61  ;;  %v314_v59 = vld [vmem:[%s6627_s3] sm:$0x3]  ;;  %s5295_s3 = smov 16  }
 0x18c   :  { %v315_v60 = vsub.f32 1.0, %v314_v59 }
 0x18d   :  { %v5611_v2 = vadd.f32 %v4365_v63, %v307_v0 }
 0x18e   :  { %v316_v61 = vmul.f32 -10000.0, %v315_v60 }
 0x18f   :  { %v323_v4 = vpack.c.bf16 %v5611_v2, %v5609_v1 }
 0x190   :  { %v5681_v62 = vrot.slane %v316_v61, %v5631_v10 }
 0x191   :  { %4601 = vmatmul.mubr.msk.bf16.vlgmr.msra.gmra.mrb[0].mxu1 %vm274_vm7, %v323_v4 }
 0x192   :  { %4605 = vmatpush3.bf16.msra.mxu1 %v4887_v3  ;;  %4608 = vmatprep.mubr.msk.bf16.mxu1 %vm5293_vm8, %v5292_v49 }
 0x193   :  { %4606 = vmatprep.subr.bf16.mxu1 %v5292_v49 }
 0x196   :  { %4607 = vmatpush3.bf16.msra.mxu1 %v4888_v5 }
 0x197   :  { %4612 = vmatprep.subr.bf16.mxu1 %v5292_v49 }
 0x199   :  { %4609 = vmatmul.mubr.msk.bf16.vlgmr.msra.gmra.mrb[4].mxu1 %vm274_vm7, %v323_v4 }
 0x19a   :  { %4613 = vmatpush3.bf16.msra.mxu1 %v4889_v6  ;;  %4616 = vmatprep.mubr.msk.bf16.mxu1 %vm5293_vm8, %v5292_v49 }
 0x19b   :  { %4614 = vmatprep.subr.bf16.mxu1 %v5292_v49 }
 0x19e   :  { %4615 = vmatpush3.bf16.msra.mxu1 %v4890_v7 }
 0x19f   :  { %4620 = vmatprep.subr.bf16.mxu1 %v5292_v49 }
 0x1a1   :  { %4617 = vmatmul.mubr.msk.bf16.vlgmr.msra.gmra.mrb[8].mxu1 %vm274_vm7, %v323_v4 }
 0x1a2   :  { %4622 = vmatprep.mubr.msk.bf16.mxu1 %vm5293_vm8, %v5292_v49 }
 0x264   :  { %v377_v14 = vpop.f32.mrb[0].mxu1 }
 0x265   :  { %v378_v15 = vadd.f32 %v377_v14, %v327_v13  ;;  %v4602_v17 = vpop.f32.mrb[1].mxu1 }
 0x266   :  { %v380_v19 = vpop.f32.mrb[2].mxu1 }
 0x267   :  { %v540_v20 = vpack.c.bf16 %v378_v15, %v378_v15  ;;  %v4603_v12 = vpop.f32.mrb[3].mxu1  ;;  %v381_v23 = vadd.f32 %v380_v19, %v327_v13 }
 0x268   :  { %v5688_v12 = vrot.slane %v316_v61, %v5641_v18 }
 0x269   :  { %690 = vrot.lane.b32.xlu1 %v540_v20, %s5294_s20  ;;  %v835_v29 = vpack.c.bf16 %v381_v23, %v381_v23 }
 0x26c   :  { %v439_v22 = vpop.f32.mrb[4].mxu1 }
 0x26d   :  { %v440_v16 = vadd.f32 %v439_v22, %v392_v21  ;;  %v4610_v24 = vpop.f32.mrb[5].mxu1 }
 0x26e   :  { %v442_v26 = vpop.f32.mrb[6].mxu1 }
 0x26f   :  { %v443_v27 = vadd.f32 %v442_v26, %v392_v21  ;;  %653 = vrot.lane.b32.xlu0 %v440_v16, %s5294_s20  ;;  %v4611_v28 = vpop.f32.mrb[7].mxu1 }
 0x271   :  { %946 = vrot.lane.b32.xlu1 %v443_v27, %s5294_s20 }
 0x273   :  { %983 = vrot.lane.b32.xlu0 %v835_v29, %s5294_s20 }
 0x274   :  { %v501_v31 = vpop.f32.mrb[8].mxu1 }
 0x275   :  { %v502_v33 = vadd.f32 %v501_v31, %v454_v30  ;;  %v4618_v32 = vpop.f32.mrb[9].mxu1 }
 0x276   :  { %v504_v34 = vpop.f32.mrb[10].mxu1 }
 0x277   :  { %v5654_v36 = vpack.c.bf16 %v502_v33, %v502_v33  ;;  %v5656_v37 = vadd.f32 %v504_v34, %v454_v30  ;;  %v4619_v38 = vpop.f32.mrb[11].mxu1 }
 0x279   :  { %v610_v35 = vsel %vm257_vm3, %v5654_v36, 0 }
 0x27a   :  { %4627 = vmatpush3.bf16.msra.mxu0 %v610_v35 }
 0x27b   :  { %4638 = vmatprep.subr.bf16.mxu0 %v5292_v49 }
 0x291   :  { %803 = vxpose.xlu0.b32.start.end [1/1] (short) (narrow) %v443_v27, 16 }
 0x2db   :  { %v691_v39 = vpop.permute.xlu1 %690 }
 0x2e1   :  { %v654_v40 = vpop.permute.xlu0 %653 }
 0x2e2   :  { %v4851_v41 = vpack.i.bf16 %v654_v40, %v440_v16 }
 0x2e3   :  { %v947_v42 = vpop.permute.xlu1 %946 }
 0x2e4   :  { %4852 = vxpose.xlu1.b32.start.end [1/1] (short) (narrow) %v4851_v41, 16  ;;  %949 = vxpose.xlu0.b32.start.end [1/1] (short) (narrow) %v947_v42, 16 }
 0x2e5   :  { %v984_v43 = vpop.permute.xlu0 %983 }
 0x311   :  { %v819_v46 = vpop.trf.xlu0 }
 0x315   :  { %v820_v53 = vpop.trf.xlu0 }
 0x316   :  { %v836_v56 = vpack.c.bf16 %v820_v53, %v819_v46 }
 0x364   :  { %v4853_v44 = vpop.trf.xlu1  ;;  %v965_v55 = vpop.trf.xlu0 }
 0x365   :  { %v4854_v47 = vunpack.i.l.bf16 %v4853_v44  ;;  %v4857_v52 = vunpack.i.h.bf16 %v4853_v44 }
 0x368   :  { %v4858_v45 = vpop.trf.xlu1  ;;  %v966_v57 = vpop.trf.xlu0 }
 0x369   :  { %v4859_v48 = vunpack.i.l.bf16 %v4858_v45  ;;  %v4862_v50 = vunpack.i.h.bf16 %v4858_v45  ;;  %v981_v58 = vpack.c.bf16 %v966_v57, %v965_v55 }
 0x36b   :  { %v541_v51 = vpack.c.bf16 %v4859_v48, %v4854_v47  ;;  %v688_v54 = vpack.c.bf16 %v4862_v50, %v4857_v52 }
 0x36d   :  { %4621 = vmatpush3.bf16.msra.mxu1 %v541_v51 }
 0x36e   :  { %4632 = vmatprep.subr.bf16.mxu1 %v5292_v49 }
 0x370   :  { %4623 = vmatmul.mubr.msk.bf16.vlgmr.msra.gmra.mrb[12].mxu1 %vm542_vm9, %v540_v20 }
 0x371   :  { %4633 = vmatpush3.bf16.msra.mxu1 %v688_v54  ;;  %4634 = vmatprep.mubr.msk.bf16.mxu1 %vm5293_vm8, %v5292_v49 }
 0x372   :  { %4644 = vmatprep.subr.bf16.mxu1 %v5292_v49 }
 0x378   :  { %4635 = vmatmul.mubr.msk.bf16.vlgmr.msra.gmra.mrb[16].mxu1 %vm542_vm9, %v691_v39 }
 0x379   :  { %4645 = vmatpush3.bf16.msra.mxu1 %v836_v56  ;;  %4646 = vmatprep.mubr.msk.bf16.mxu1 %vm5293_vm8, %v5292_v49 }
 0x37a   :  { %4656 = vmatprep.subr.bf16.mxu1 %v5292_v49 }
 0x380   :  { %4647 = vmatmul.mubr.msk.bf16.vlgmr.msra.gmra.mrb[20].mxu1 %vm542_vm9, %v835_v29 }
 0x381   :  { %4657 = vmatpush3.bf16.msra.mxu1 %v981_v58  ;;  %4658 = vmatprep.mubr.msk.bf16.mxu1 %vm5293_vm8, %v5292_v49  ;;  %v898_v58 = vpack.c.bf16 %v5656_v37, %v5656_v37 }
 0x382   :  { %4668 = vmatprep.subr.bf16.mxu1 %v5292_v49 }
 0x388   :  { %4659 = vmatmul.mubr.msk.bf16.vlgmr.msra.gmra.mrb[24].mxu1 %vm542_vm9, %v984_v43 }
 0x389   :  { %4672 = vmatprep.mubr.msk.bf16.mxu1 %vm5293_vm8, %v5292_v49 }
 0x443   :  { %v580_v63 = vpop.f32.mrb[12].mxu1 }
 0x444   :  { %v586_v0 = vmul.f32 0.25, %v580_v63  ;;  %v4624_v3 = vpop.f32.mrb[13].mxu1 }
 0x445   :  { %v583_v4 = vpop.f32.mrb[14].mxu1 }
 0x446   :  { %v4625_v5 = vpop.f32.mrb[15].mxu1  ;;  %v591_v6 = vadd.f32 %v5681_v62, %v586_v0 }
 0x448   :  { %v593_v7 = vsel %vm592_vm10, %v591_v6, -inf }
 0x449   :  { %594 = vmax.xlane.f32.xlu0 %v593_v7 }
 0x44b   :  { %v729_v9 = vpop.f32.mrb[16].mxu1 }
 0x44c   :  { %v735_v13 = vmul.f32 0.25, %v729_v9  ;;  %v4636_v14 = vpop.f32.mrb[17].mxu1  ;;  %v903_v9 = vsel %vm257_vm3, %v898_v58, 0 }
 0x44d   :  { %v732_v15 = vpop.f32.mrb[18].mxu1 }
 0x44e   :  { %v4637_v17 = vpop.f32.mrb[19].mxu1  ;;  %v736_v19 = vadd.f32 %v735_v13, %v5681_v62 }
 0x450   :  { %v737_v20 = vsel %vm592_vm10, %v736_v19, -inf }
 0x451   :  { %738 = vmax.xlane.f32.xlu1 %v737_v20 }
 0x453   :  { %v874_v21 = vpop.f32.mrb[20].mxu1 }
 0x454   :  { %v880_v22 = vmul.f32 0.25, %v874_v21  ;;  %v4648_v23 = vpop.f32.mrb[21].mxu1 }
 0x455   :  { %v877_v16 = vpop.f32.mrb[22].mxu1  ;;  %v4891_v23 = vld [vmem:[#allocation5 + $0x30] sm:$0xff]  }
 0x456   :  { %v4649_v24 = vpop.f32.mrb[23].mxu1  ;;  %v885_v26 = vadd.f32 %v5688_v12, %v880_v22  ;;  %4669 = vmatpush3.bf16.msra.mxu1 %v4891_v23 }
 0x457   :  { %4670 = vmatprep.subr.bf16.mxu1 %v5292_v49 }
 0x458   :  { %v886_v27 = vsel %vm592_vm10, %v885_v26, -inf }
 0x459   :  { %887 = vmax.xlane.f32.xlu1 %v886_v27 }
 0x45b   :  { %v1022_v28 = vpop.f32.mrb[24].mxu1 }
 0x45c   :  { %v1028_v29 = vmul.f32 0.25, %v1022_v28  ;;  %v4660_v30 = vpop.f32.mrb[25].mxu1 }
 0x45d   :  { %v1025_v31 = vpop.f32.mrb[26].mxu1 }
 0x45e   :  { %v4661_v33 = vpop.f32.mrb[27].mxu1  ;;  %v1029_v32 = vadd.f32 %v1028_v29, %v5688_v12 }
 0x45f   :  { %v4892_v33 = vld [vmem:[#allocation5 + $0x38] sm:$0xff]  }
 0x460   :  { %v1030_v34 = vsel %vm592_vm10, %v1029_v32, -inf  ;;  %4671 = vmatpush3.bf16.msra.mxu1 %v4892_v33 }
 0x461   :  { %1031 = vmax.xlane.f32.xlu1 %v1030_v34  ;;  %4684 = vmatprep.subr.bf16.mxu1 %v5292_v49 }
 0x4d6   :  { %v595_v38 = vpop.xlane.xlu0 %594 }
 0x4d7   :  { %v596_v35 = vsub.f32 %v591_v6, %v595_v38 }
 0x4d9   :  { %v597_v39 = vmul.f32 1.442695, %v596_v35 }
 0x4db   :  { %4989 = vpow2.f32 %v597_v39 }
 0x4de   :  { %v739_v40 = vpop.xlane.xlu1 %738 }
 0x4df   :  { %v740_v41 = vsub.f32 %v736_v19, %v739_v40 }
 0x4e1   :  { %v741_v42 = vmul.f32 1.442695, %v740_v41 }
 0x4e3   :  { %4991 = vpow2.f32 %v741_v42 }
 0x4e5   :  { %v4990_v43 = vpop.eup %4989 }
 0x4e6   :  { %v888_v44 = vpop.xlane.xlu1 %887  ;;  %v599_v45 = vsel %vm592_vm10, %v4990_v43, 0.0 }
 0x4e7   :  { %v889_v46 = vsub.f32 %v885_v26, %v888_v44  ;;  %600 = vadd.xlane.f32.xlu0 %v599_v45 }
 0x4e9   :  { %v890_v47 = vmul.f32 1.442695, %v889_v46 }
 0x4eb   :  { %4993 = vpow2.f32 %v890_v47 }
 0x4ed   :  { %v4992_v48 = vpop.eup %4991 }
 0x4ee   :  { %v1032_v50 = vpop.xlane.xlu1 %1031  ;;  %v743_v51 = vsel %vm592_vm10, %v4992_v48, 0.0 }
 0x4ef   :  { %v1033_v52 = vsub.f32 %v1029_v32, %v1032_v50  ;;  %744 = vadd.xlane.f32.xlu1 %v743_v51  ;;  %v5730_v51 = vsub.s32 3, %v5628_v8 }
 0x4f1   :  { %v1034_v53 = vmul.f32 1.442695, %v1033_v52  ;;  %v1105_v52 = vrot.slane %v5636_v11, %v5730_v51 }
 0x4f3   :  { %4995 = vpow2.f32 %v1034_v53 }
 0x4f5   :  { %v4994_v54 = vpop.eup %4993 }
 0x4f6   :  { %v892_v55 = vsel %vm592_vm10, %v4994_v54, 0.0 }
 0x4f7   :  { %893 = vadd.xlane.f32.xlu0 %v892_v55 }
 0x4fd   :  { %v4996_v56 = vpop.eup %4995 }
 0x4fe   :  { %v1036_v57 = vsel %vm592_vm10, %v4996_v56, 0.0 }
 0x4ff   :  { %1037 = vadd.xlane.f32.xlu1 %v1036_v57 }
 0x50d   :  { %750 = vrot.lane.b32.xlu0 %v5654_v36, %s5294_s20 }
 0x510   :  { %1043 = vrot.lane.b32.xlu1 %v898_v58, %s5294_s20 }
 0x574   :  { %v601_v59 = vpop.xlane.xlu0 %600 }
 0x575   :  { %4997 = vrcp.f32 %v601_v59 }
 0x57c   :  { %v745_v60 = vpop.xlane.xlu1 %744 }
 0x57d   :  { %4999 = vrcp.f32 %v745_v60 }
 0x57f   :  { %v4998_v61 = vpop.eup %4997 }
 0x580   :  { %v603_v63 = vmul.f32 %v4998_v61, %v4990_v43 }
 0x582   :  { %v604_v0 = vpack.c.bf16 %v603_v63, %v603_v63 }
 0x584   :  { %4629 = vmatmul.mubr.msk.bf16.vlgmr.msra.gmra.mrb[0].mxu0 %vm592_vm10, %v604_v0  ;;  %v894_v3 = vpop.xlane.xlu0 %893 }
 0x585   :  { %5001 = vrcp.f32 %v894_v3  ;;  %4640 = vmatprep.mubr.msk.bf16.mxu0 %vm5293_vm8, %v5292_v49 }
 0x587   :  { %v5000_v36 = vpop.eup %4999 }
 0x588   :  { %v747_v4 = vmul.f32 %v5000_v36, %v4992_v48  ;;  %v751_v5 = vpop.permute.xlu0 %750 }
 0x589   :  { %v756_v37 = vsel %vm257_vm3, %v751_v5, 0 }
 0x58a   :  { %4639 = vmatpush3.bf16.msra.mxu0 %v756_v37  ;;  %v748_v6 = vpack.c.bf16 %v747_v4, %v747_v4 }
 0x58b   :  { %4650 = vmatprep.subr.bf16.mxu0 %v5292_v49 }
 0x58c   :  { %v1038_v7 = vpop.xlane.xlu1 %1037 }
 0x58d   :  { %5003 = vrcp.f32 %v1038_v7  ;;  %4641 = vmatmul.mubr.msk.bf16.vlgmr.msra.gmra.mrb[4].mxu0 %vm592_vm10, %v748_v6 }
 0x58e   :  { %4651 = vmatpush3.bf16.msra.mxu0 %v903_v9  ;;  %4652 = vmatprep.mubr.msk.bf16.mxu0 %vm5293_vm8, %v5292_v49 }
 0x58f   :  { %v5002_v13 = vpop.eup %5001  ;;  %4662 = vmatprep.subr.bf16.mxu0 %v5292_v49 }
 0x590   :  { %v896_v14 = vmul.f32 %v5002_v13, %v4994_v54  ;;  %v1044_v15 = vpop.permute.xlu1 %1043  ;;  %v4893_v13 = vld [vmem:[#allocation5 + $0x40] sm:$0xff]  }
 0x591   :  { %v1049_v19 = vsel %vm257_vm3, %v1044_v15, 0  ;;  %v4896_v15 = vld [vmem:[#allocation5 + $0x58] sm:$0xff]  }
 0x592   :  { %v897_v17 = vpack.c.bf16 %v896_v14, %v896_v14  ;;  %v4895_v14 = vld [vmem:[#allocation5 + $0x48] sm:$0xff]  }
 0x595   :  { %4653 = vmatmul.mubr.msk.bf16.vlgmr.msra.gmra.mrb[8].mxu0 %vm592_vm10, %v897_v17 }
 0x596   :  { %4663 = vmatpush3.bf16.msra.mxu0 %v1049_v19  ;;  %4664 = vmatprep.mubr.msk.bf16.mxu0 %vm5293_vm8, %v5292_v49 }
 0x597   :  { %v5004_v20 = vpop.eup %5003  ;;  %4676 = vmatprep.subr.bf16.mxu0 %v5292_v49 }
 0x598   :  { %v1040_v21 = vmul.f32 %v5004_v20, %v4996_v56 }
 0x59a   :  { %v1041_v22 = vpack.c.bf16 %v1040_v21, %v1040_v21 }
 0x59d   :  { %4665 = vmatmul.mubr.msk.bf16.vlgmr.msra.gmra.mrb[12].mxu0 %vm592_vm10, %v1041_v22 }
 0x59e   :  { %4680 = vmatprep.mubr.msk.bf16.mxu0 %vm5293_vm8, %v5292_v49  ;;  %4677 = vmatpush3.bf16.msra.mxu0 %v4893_v13 }
 0x59f   :  { %4678 = vmatprep.subr.bf16.mxu0 %v5292_v49 }
 0x5a2   :  { %4679 = vmatpush3.bf16.msra.mxu0 %v4895_v14 }
 0x5a3   :  { %4692 = vmatprep.subr.bf16.mxu0 %v5292_v49 }
 0x657   :  { %v646_v16 = vpop.f32.mrb[0].mxu0 }
 0x658   :  { %v4630_v24 = vpop.f32.mrb[1].mxu0 }
 0x659   :  { %v649_v26 = vpop.f32.mrb[2].mxu0 }
 0x65a   :  { %v4631_v27 = vpop.f32.mrb[3].mxu0 }
 0x660   :  { %v792_v28 = vpop.f32.mrb[4].mxu0 }
 0x661   :  { %v4642_v29 = vpop.f32.mrb[5].mxu0 }
 0x662   :  { %v795_v30 = vpop.f32.mrb[6].mxu0 }
 0x663   :  { %v4643_v31 = vpop.f32.mrb[7].mxu0 }
 0x668   :  { %v939_v32 = vpop.f32.mrb[8].mxu0 }
 0x669   :  { %v4654_v34 = vpop.f32.mrb[9].mxu0 }
 0x66a   :  { %v942_v38 = vpop.f32.mrb[10].mxu0 }
 0x66b   :  { %v4655_v35 = vpop.f32.mrb[11].mxu0 }
 0x670   :  { %v1085_v39 = vpop.f32.mrb[12].mxu0 }
 0x671   :  { %v4863_v40 = vpack.i.bf16 %v1085_v39, %v792_v28  ;;  %v4666_v41 = vpop.f32.mrb[13].mxu0  ;;  %v1198_v28 = vsub.s32 5, %v5628_v8  ;;  %v4897_v39 = vld [vmem:[#allocation5 + $0x70] sm:$0xff]  }
 0x672   :  { %v1088_v42 = vpop.f32.mrb[14].mxu0  ;;  %v4899_v41 = vld [vmem:[#allocation5 + $0x78] sm:$0xff]  }
 0x673   :  { %4864 = vrot.lane.b32.xlu1 %v4863_v40, %s5295_s3  ;;  %v4667_v43 = vpop.f32.mrb[15].mxu0  ;;  %v1199_v33 = vrot.slane %v5636_v11, %v1198_v28  ;;  %v4898_v40 = vld [vmem:[#allocation5 + $0x60] sm:$0xff]   ;;  %v4900_v42 = vld [vmem:[#allocation5 + $0x68] sm:$0xff]  }
 0x674   :  { %v1210_v43 = vsub.s32 6, %v5628_v8 }
 0x6e5   :  { %v4865_v44 = vpop.permute.xlu1 %4864 }
 0x6e6   :  { %v4867_v45 = vunpack.i.h.bf16 %v4865_v44  ;;  %v4866_v46 = vunpack.i.l.bf16 %v4865_v44  ;;  %v1293_v44 = vsub.s32 7, %v5628_v8 }
 0x6e8   :  { %v1095_v47 = vsel %vm542_vm9, %v939_v32, %v4867_v45  ;;  %v802_v48 = vsel %vm542_vm9, %v646_v16, %v4866_v46  ;;  %v1192_v16 = vsub.s32 4, %v5628_v8  ;;  %v1211_v45 = vrot.slane %v5636_v11, %v1210_v43 }
 0x6e9   :  { %v1101_v50 = vpack.c.bf16 %v1095_v47, %v802_v48  ;;  %v1294_v46 = vrot.slane %v5636_v11, %v1293_v44 }
 0x6ea   :  { %v1193_v26 = vrot.slane %v5636_v11, %v1192_v16 }
 0x6eb   :  { %4673 = vmatmul.mubr.msk.bf16.vlgmr.msra.gmra.mrb[28].mxu1 %vm274_vm7, %v1101_v50 }
 0x6ec   :  { %4688 = vmatprep.mubr.msk.bf16.mxu1 %vm5293_vm8, %v5292_v49 }
 0x7be   :  { %v1155_v53 = vpop.f32.mrb[28].mxu1 }
 0x7bf   :  { %v1156_v54 = vadd.f32 %v1155_v53, %v1105_v52  ;;  %v4674_v55 = vpop.f32.mrb[29].mxu1 }
 0x7c0   :  { %v1158_v56 = vpop.f32.mrb[30].mxu1 }
 0x7c1   :  { %v1159_v57 = vadd.f32 %v1158_v56, %v1105_v52  ;;  %v4675_v58 = vpop.f32.mrb[31].mxu1  ;;  %v1162_v59 = vadd.f32 %v1156_v54, %v5609_v1 }
 0x7c3   :  { %v1164_v60 = vsel %vm274_vm7, %v1162_v59, 0.0  ;;  %v1163_v61 = vadd.f32 %v1159_v57, %v5611_v2  ;;  %v4894_v2 = vld [vmem:[#allocation5 + $0x50] sm:$0xff]  }
 0x7c4   :  { %1165 = vadd.xlane.f32.xlu0 %v1164_v60  ;;  %4685 = vmatpush3.bf16.msra.mxu1 %v4894_v2 }
 0x7c5   :  { %v1167_v63 = vsel %vm274_vm7, %v1163_v61, 0.0  ;;  %4686 = vmatprep.subr.bf16.mxu1 %v5292_v49 }
 0x7c6   :  { %1168 = vadd.xlane.f32.xlu1 %v1167_v63 }
 0x7c8   :  { %4687 = vmatpush3.bf16.msra.mxu1 %v4896_v15 }
 0x7c9   :  { %4700 = vmatprep.subr.bf16.mxu1 %v5292_v49 }
 0x851   :  { %v1166_v0 = vpop.xlane.xlu0 %1165 }
 0x852   :  { %v1170_v3 = vmul.f32 0.03125, %v1166_v0 }
 0x853   :  { %v1169_v36 = vpop.xlane.xlu1 %1168 }
 0x854   :  { %v1172_v4 = vsub.f32 %v1162_v59, %v1170_v3  ;;  %v1171_v5 = vmul.f32 0.03125, %v1169_v36 }
 0x856   :  { %v1173_v37 = vsub.f32 %v1163_v61, %v1171_v5  ;;  %v1174_v6 = vmul.f32 %v1172_v4, %v1172_v4 }
 0x858   :  { %v1176_v7 = vsel %vm274_vm7, %v1174_v6, 0.0  ;;  %v1175_v9 = vmul.f32 %v1173_v37, %v1173_v37 }
 0x859   :  { %1177 = vadd.xlane.f32.xlu0 %v1176_v7 }
 0x85a   :  { %v1179_v1 = vsel %vm274_vm7, %v1175_v9, 0.0 }
 0x85d   :  { %1180 = vadd.xlane.f32.xlu0 %v1179_v1 }
 0x8e6   :  { %v1178_v17 = vpop.xlane.xlu0 %1177 }
 0x8e7   :  { %v1182_v19 = vmul.f32 0.03125, %v1178_v17 }
 0x8e9   :  { %v1184_v20 = vadd.f32 1e-12, %v1182_v19 }
 0x8ea   :  { %v1181_v21 = vpop.xlane.xlu0 %1180 }
 0x8eb   :  { %5005 = vrsqrt.f32 %v1184_v20  ;;  %v1183_v22 = vmul.f32 0.03125, %v1181_v21 }
 0x8ed   :  { %v1185_v23 = vadd.f32 1e-12, %v1183_v22 }
 0x8ef   :  { %5007 = vrsqrt.f32 %v1185_v23 }
 0x8f5   :  { %v5006_v24 = vpop.eup %5005 }
 0x8f6   :  { %v1188_v27 = vmul.f32 %v5006_v24, %v1172_v4 }
 0x8f8   :  { %v1194_v30 = vmul.f32 %v1193_v26, %v1188_v27 }
 0x8f9   :  { %v5008_v29 = vpop.eup %5007 }
 0x8fa   :  { %v1189_v31 = vmul.f32 %v5008_v29, %v1173_v37  ;;  %v5752_v34 = vadd.f32 %v1199_v33, %v1194_v30 }
 0x8fc   :  { %v1195_v32 = vmul.f32 %v1193_v26, %v1189_v31 }
 0x8fe   :  { %v5754_v38 = vadd.f32 %v1199_v33, %v1195_v32 }
 0x900   :  { %v1207_v35 = vpack.c.bf16 %v5754_v38, %v5752_v34 }
 0x902   :  { %4681 = vmatmul.mubr.msk.bf16.vlgmr.msra.gmra.mrb[16].mxu0 %vm274_vm7, %v1207_v35  ;;  %4689 = vmatmul.mubr.msk.bf16.vlgmr.msra.gmra.mrb[32].mxu1 %vm274_vm7, %v1207_v35 }
 0x903   :  { %4696 = vmatprep.mubr.msk.bf16.mxu0 %vm5293_vm8, %v5292_v49  ;;  %4704 = vmatprep.mubr.msk.bf16.mxu1 %vm5293_vm8, %v5292_v49 }
 0x904   :  { %4693 = vmatpush3.bf16.msra.mxu0 %v4897_v39  ;;  %4701 = vmatpush3.bf16.msra.mxu1 %v4898_v40 }
 0x905   :  { %4694 = vmatprep.subr.bf16.mxu0 %v5292_v49  ;;  %4702 = vmatprep.subr.bf16.mxu1 %v5292_v49 }
 0x908   :  { %4695 = vmatpush3.bf16.msra.mxu0 %v4899_v41  ;;  %4703 = vmatpush3.bf16.msra.mxu1 %v4900_v42 }
 0x909   :  { %4708 = vmatprep.subr.bf16.mxu0 %v5292_v49  ;;  %4716 = vmatprep.subr.bf16.mxu1 %v5292_v49 }
 0x9d5   :  { %v1261_v47 = vpop.f32.mrb[16].mxu0  ;;  %v1341_v48 = vpop.f32.mrb[32].mxu1 }
 0x9d6   :  { %v1262_v50 = vadd.f32 %v1261_v47, %v1211_v45  ;;  %v1342_v52 = vadd.f32 %v1341_v48, %v1294_v46  ;;  %v4682_v53 = vpop.f32.mrb[17].mxu0  ;;  %v4690_v54 = vpop.f32.mrb[33].mxu1  ;;  %v318_v47 = vld [vmem:[%s6629_s5 + $0x8] sm:$0x7] }
 0x9d7   :  { %v1264_v55 = vpop.f32.mrb[18].mxu0  ;;  %v1344_v56 = vpop.f32.mrb[34].mxu1 }
 0x9d8   :  { %v1268_v57 = vmul.f32 %v1262_v50, %v1262_v50  ;;  %v1348_v58 = vmul.f32 %v1342_v52, %v1342_v52  ;;  %v1265_v59 = vadd.f32 %v1264_v55, %v1211_v45  ;;  %v1345_v60 = vadd.f32 %v1344_v56, %v1294_v46  ;;  %v4683_v61 = vpop.f32.mrb[19].mxu0  ;;  %v4691_v63 = vpop.f32.mrb[35].mxu1 }
 0x9da   :  { %v1270_v0 = vmul.f32 %v1268_v57, %v1262_v50  ;;  %v1350_v3 = vmul.f32 %v1348_v58, %v1342_v52  ;;  %v1269_v36 = vmul.f32 %v1265_v59, %v1265_v59  ;;  %v1349_v4 = vmul.f32 %v1345_v60, %v1345_v60 }
 0x9dc   :  { %v1272_v5 = vmul.f32 0.044715, %v1270_v0  ;;  %v1352_v11 = vmul.f32 0.044715, %v1350_v3  ;;  %v1271_v37 = vmul.f32 %v1269_v36, %v1265_v59  ;;  %v1351_v6 = vmul.f32 %v1349_v4, %v1345_v60 }
 0x9de   :  { %v1274_v7 = vadd.f32 %v1272_v5, %v1262_v50  ;;  %v1354_v9 = vadd.f32 %v1352_v11, %v1342_v52  ;;  %v1273_v1 = vmul.f32 0.044715, %v1271_v37  ;;  %v1353_v13 = vmul.f32 0.044715, %v1351_v6 }
 0x9e0   :  { %v1276_v2 = vmul.f32 0.7978846, %v1274_v7  ;;  %v1356_v14 = vmul.f32 0.7978846, %v1354_v9  ;;  %v1275_v15 = vadd.f32 %v1273_v1, %v1265_v59  ;;  %v1355_v17 = vadd.f32 %v1353_v13, %v1345_v60 }
 0x9e2   :  { %5009 = vtanh.f32 %v1276_v2  ;;  %v1277_v19 = vmul.f32 0.7978846, %v1275_v15  ;;  %v1357_v20 = vmul.f32 0.7978846, %v1355_v17  ;;  %v4903_v15 = vld [vmem:[#allocation5 + $0x88] sm:$0xff]   ;;  %v4904_v17 = vld [vmem:[#allocation5 + $0x98] sm:$0xff]  }
 0x9e3   :  { %5011 = vtanh.f32 %v1356_v14  ;;  %v4901_v14 = vld [vmem:[#allocation5 + $0x80] sm:$0xff]  }
 0x9e4   :  { %5013 = vtanh.f32 %v1277_v19 }
 0x9e5   :  { %5015 = vtanh.f32 %v1357_v20 }
 0x9ec   :  { %v5010_v21 = vpop.eup %5009 }
 0x9ed   :  { %v5012_v22 = vpop.eup %5011  ;;  %v1280_v23 = vadd.f32 1.0, %v5010_v21 }
 0x9ee   :  { %v5014_v24 = vpop.eup %5013  ;;  %v1360_v26 = vadd.f32 1.0, %v5012_v22 }
 0x9ef   :  { %v5016_v27 = vpop.eup %5015  ;;  %v1282_v29 = vmul.f32 0.5, %v1280_v23  ;;  %v1281_v30 = vadd.f32 1.0, %v5014_v24 }
 0x9f0   :  { %v1362_v31 = vmul.f32 0.5, %v1360_v26  ;;  %v1361_v33 = vadd.f32 1.0, %v5016_v27  ;;  %v1527_v26 = vrot.slane %v318_v47, %v5641_v18 }
 0x9f1   :  { %v1283_v32 = vmul.f32 0.5, %v1281_v30  ;;  %v1284_v39 = vmul.f32 %v1282_v29, %v1262_v50  ;;  %v1493_v50 = vrot.slane %v318_v47, %v5631_v10 }
 0x9f2   :  { %v1363_v35 = vmul.f32 0.5, %v1361_v33  ;;  %v1364_v41 = vmul.f32 %v1362_v31, %v1342_v52  ;;  %v1533_v31 = vrot.slane %v318_v47, %v5647_v25 }
 0x9f3   :  { %v1285_v40 = vmul.f32 %v1283_v32, %v1265_v59 }
 0x9f4   :  { %v1365_v42 = vmul.f32 %v1363_v35, %v1345_v60 }
 0x9f5   :  { %v1371_v45 = vpack.c.bf16 %v1285_v40, %v1284_v39 }
 0x9f6   :  { %v1377_v46 = vpack.c.bf16 %v1365_v42, %v1364_v41  ;;  %v4905_v41 = vld [vmem:[#allocation5 + $0xa0] sm:$0xff]  }
 0x9f7   :  { %4705 = vmatmul.mubr.msk.bf16.vlgmr.msra.gmra.mrb[36].mxu1 %vm274_vm7, %v1371_v45  ;;  %v4906_v45 = vld [vmem:[#allocation5 + $0xa8] sm:$0xff]  }
 0x9f8   :  { %4697 = vmatmul.mubr.msk.bf16.vlgmr.msra.gmra.mrb[20].mxu0 %vm274_vm7, %v1377_v46  ;;  %4720 = vmatprep.mubr.msk.bf16.mxu1 %vm5293_vm8, %v5292_v49  ;;  %v5818_v46 = vld [vmem:[%s6629_s5 + $0x10] sm:$0xff] }
 0x9f9   :  { %4712 = vmatprep.mubr.msk.bf16.mxu0 %vm5293_vm8, %v5292_v49  ;;  %4709 = vmatpush3.bf16.msra.mxu0 %v4901_v14  ;;  %v1548_v47 = vrot.slane %v5818_v46, %v5631_v10 }
 0x9fa   :  { %4710 = vmatprep.subr.bf16.mxu0 %v5292_v49 }
 0x9fd   :  { %4711 = vmatpush3.bf16.msra.mxu0 %v4903_v15 }
 0x9fe   :  { %4724 = vmatprep.subr.bf16.mxu0 %v5292_v49 }
 0xaca   :  { %v1483_v48 = vpop.f32.mrb[36].mxu1 }
 0xacb   :  { %v1427_v52 = vpop.f32.mrb[20].mxu0  ;;  %v4706_v53 = vpop.f32.mrb[37].mxu1 }
 0xacc   :  { %v1484_v54 = vadd.f32 %v1483_v48, %v1427_v52  ;;  %v4698_v55 = vpop.f32.mrb[21].mxu0  ;;  %v1486_v56 = vpop.f32.mrb[38].mxu1  ;;  %v1613_v48 = vrot.slane %v5818_v46, %v5641_v18 }
 0xacd   :  { %v1430_v57 = vpop.f32.mrb[22].mxu0  ;;  %v4707_v58 = vpop.f32.mrb[39].mxu1 }
 0xace   :  { %v1494_v59 = vadd.f32 %v1493_v50, %v1484_v54  ;;  %v1487_v60 = vadd.f32 %v1486_v56, %v1430_v57  ;;  %v4699_v61 = vpop.f32.mrb[23].mxu0 }
 0xad0   :  { %v1495_v63 = vadd.f32 %v1493_v50, %v1487_v60  ;;  %v1496_v0 = vadd.f32 %v1494_v59, %v5752_v34 }
 0xad2   :  { %v1498_v3 = vsel %vm274_vm7, %v1496_v0, 0.0  ;;  %v1497_v36 = vadd.f32 %v1495_v63, %v5754_v38  ;;  %v4902_v38 = vld [vmem:[#allocation5 + $0x90] sm:$0xff]  }
 0xad3   :  { %1499 = vadd.xlane.f32.xlu1 %v1498_v3  ;;  %4717 = vmatpush3.bf16.msra.mxu1 %v4902_v38  ;;  %v1675_v3 = vrot.slane %v5818_v46, %v5647_v25 }
 0xad4   :  { %v1501_v4 = vsel %vm274_vm7, %v1497_v36, 0.0  ;;  %4718 = vmatprep.subr.bf16.mxu1 %v5292_v49 }
 0xad5   :  { %1502 = vadd.xlane.f32.xlu0 %v1501_v4 }
 0xad7   :  { %4719 = vmatpush3.bf16.msra.mxu1 %v4904_v17 }
 0xad8   :  { %4732 = vmatprep.subr.bf16.mxu1 %v5292_v49 }
 0xb60   :  { %v1500_v5 = vpop.xlane.xlu1 %1499 }
 0xb61   :  { %v1504_v11 = vmul.f32 0.03125, %v1500_v5 }
 0xb62   :  { %v1503_v37 = vpop.xlane.xlu0 %1502 }
 0xb63   :  { %v1506_v6 = vsub.f32 %v1496_v0, %v1504_v11  ;;  %v1505_v7 = vmul.f32 0.03125, %v1503_v37 }
 0xb65   :  { %v1507_v9 = vsub.f32 %v1497_v36, %v1505_v7  ;;  %v1508_v1 = vmul.f32 %v1506_v6, %v1506_v6 }
 0xb67   :  { %v1510_v13 = vsel %vm274_vm7, %v1508_v1, 0.0  ;;  %v1509_v2 = vmul.f32 %v1507_v9, %v1507_v9 }
 0xb68   :  { %1511 = vadd.xlane.f32.xlu1 %v1510_v13 }
 0xb69   :  { %v1513_v34 = vsel %vm274_vm7, %v1509_v2, 0.0 }
 0xb6a   :  { %1514 = vadd.xlane.f32.xlu0 %v1513_v34 }
 0xbf5   :  { %v1512_v19 = vpop.xlane.xlu1 %1511 }
 0xbf6   :  { %v1516_v20 = vmul.f32 0.03125, %v1512_v19 }
 0xbf7   :  { %v1515_v21 = vpop.xlane.xlu0 %1514 }
 0xbf8   :  { %v1518_v22 = vadd.f32 1e-12, %v1516_v20  ;;  %v1517_v23 = vmul.f32 0.03125, %v1515_v21 }
 0xbfa   :  { %5017 = vrsqrt.f32 %v1518_v22  ;;  %v1519_v24 = vadd.f32 1e-12, %v1517_v23 }
 0xbfc   :  { %5019 = vrsqrt.f32 %v1519_v24 }
 0xc04   :  { %v5018_v27 = vpop.eup %5017 }
 0xc05   :  { %v1522_v29 = vmul.f32 %v5018_v27, %v1506_v6 }
 0xc06   :  { %v5020_v30 = vpop.eup %5019 }
 0xc07   :  { %v1528_v33 = vmul.f32 %v1527_v26, %v1522_v29  ;;  %v1523_v32 = vmul.f32 %v5020_v30, %v1507_v9 }
 0xc09   :  { %v1529_v35 = vmul.f32 %v1527_v26, %v1523_v32  ;;  %v5798_v39 = vadd.f32 %v1533_v31, %v1528_v33 }
 0xc0b   :  { %v5800_v40 = vadd.f32 %v1533_v31, %v1529_v35 }
 0xc0d   :  { %v1544_v42 = vpack.c.bf16 %v5800_v40, %v5798_v39 }
 0xc0f   :  { %4713 = vmatmul.mubr.msk.bf16.vlgmr.msra.gmra.mrb[24].mxu0 %vm274_vm7, %v1544_v42  ;;  %4721 = vmatmul.mubr.msk.bf16.vlgmr.msra.gmra.mrb[40].mxu1 %vm274_vm7, %v1544_v42 }
 0xc10   :  { %4725 = vmatpush3.bf16.msra.mxu0 %v4905_v41  ;;  %4728 = vmatprep.mubr.msk.bf16.mxu0 %vm5293_vm8, %v5292_v49 }
 0xc11   :  { %4726 = vmatprep.subr.bf16.mxu0 %v5292_v49  ;;  %4734 = vmatprep.mubr.msk.bf16.mxu1 %vm5293_vm8, %v5292_v49 }
 0xc14   :  { %4727 = vmatpush3.bf16.msra.mxu0 %v4906_v45 }
 0xc15   :  { %4738 = vmatprep.subr.bf16.mxu0 %v5292_v49 }
 0xc17   :  { %4729 = vmatmul.mubr.msk.bf16.vlgmr.msra.gmra.mrb[28].mxu0 %vm274_vm7, %v1544_v42 }
 0xc18   :  { %4740 = vmatprep.mubr.msk.bf16.mxu0 %vm5293_vm8, %v5292_v49 }
 0xce2   :  { %v1598_v50 = vpop.f32.mrb[24].mxu0  ;;  %v1660_v52 = vpop.f32.mrb[40].mxu1 }
 0xce3   :  { %v1599_v53 = vadd.f32 %v1598_v50, %v1548_v47  ;;  %v1661_v54 = vadd.f32 %v1660_v52, %v1613_v48  ;;  %v4714_v55 = vpop.f32.mrb[25].mxu0  ;;  %v4722_v56 = vpop.f32.mrb[41].mxu1 }
 0xce4   :  { %v1601_v57 = vpop.f32.mrb[26].mxu0  ;;  %v1663_v58 = vpop.f32.mrb[42].mxu1 }
 0xce5   :  { %v1602_v59 = vadd.f32 %v1601_v57, %v1548_v47  ;;  %v1664_v60 = vadd.f32 %v1663_v58, %v1613_v48  ;;  %v4715_v61 = vpop.f32.mrb[27].mxu0  ;;  %1868 = vrot.lane.b32.xlu1 %v1661_v54, %s5294_s20  ;;  %v4723_v63 = vpop.f32.mrb[43].mxu1  ;;  %v1761_v0 = vpack.c.bf16 %v1599_v53, %v1599_v53 }
 0xce7   :  { %2157 = vrot.lane.b32.xlu0 %v1664_v60, %s5294_s20  ;;  %v2050_v36 = vpack.c.bf16 %v1602_v59, %v1602_v59 }
 0xce9   :  { %1905 = vrot.lane.b32.xlu1 %v1761_v0, %s5294_s20 }
 0xcea   :  { %v1722_v4 = vpop.f32.mrb[28].mxu0 }
 0xceb   :  { %v1723_v5 = vadd.f32 %v1722_v4, %v1675_v3  ;;  %v4730_v11 = vpop.f32.mrb[29].mxu0  ;;  %2194 = vrot.lane.b32.xlu0 %v2050_v36, %s5294_s20 }
 0xcec   :  { %v1725_v37 = vpop.f32.mrb[30].mxu0 }
 0xced   :  { %v5830_v6 = vpack.c.bf16 %v1723_v5, %v1723_v5  ;;  %v5832_v7 = vadd.f32 %v1725_v37, %v1675_v3  ;;  %v4731_v9 = vpop.f32.mrb[31].mxu0 }
 0xcef   :  { %v1825_v1 = vsel %vm257_vm3, %v5830_v6, 0 }
 0xcf0   :  { %4739 = vmatpush3.bf16.msra.mxu0 %v1825_v1 }
 0xcf1   :  { %4750 = vmatprep.subr.bf16.mxu0 %v5292_v49 }
 0xd09   :  { %2018 = vxpose.xlu0.b32.start.end [1/1] (short) (narrow) %v1664_v60, 16 }
 0xd57   :  { %v1869_v13 = vpop.permute.xlu1 %1868 }
 0xd58   :  { %v4868_v2 = vpack.i.bf16 %v1869_v13, %v1661_v54 }
 0xd59   :  { %v2158_v34 = vpop.permute.xlu0 %2157 }
 0xd5a   :  { %4869 = vxpose.xlu1.b32.start.end [1/1] (short) (narrow) %v4868_v2, 16  ;;  %2160 = vxpose.xlu0.b32.start.end [1/1] (short) (narrow) %v2158_v34, 16 }
 0xd5b   :  { %v1906_v14 = vpop.permute.xlu1 %1905 }
 0xd5d   :  { %v2195_v38 = vpop.permute.xlu0 %2194 }
 0xd89   :  { %v2034_v19 = vpop.trf.xlu0 }
 0xd8d   :  { %v2035_v26 = vpop.trf.xlu0 }
 0xd8e   :  { %v2051_v30 = vpack.c.bf16 %v2035_v26, %v2034_v19 }
 0xdda   :  { %v4870_v15 = vpop.trf.xlu1  ;;  %v2176_v29 = vpop.trf.xlu0 }
 0xddb   :  { %v4871_v20 = vunpack.i.l.bf16 %v4870_v15  ;;  %v4874_v24 = vunpack.i.h.bf16 %v4870_v15 }
 0xdde   :  { %v4875_v17 = vpop.trf.xlu1  ;;  %v2177_v31 = vpop.trf.xlu0 }
 0xddf   :  { %v4876_v21 = vunpack.i.l.bf16 %v4875_v17  ;;  %v4879_v22 = vunpack.i.h.bf16 %v4875_v17  ;;  %v2192_v33 = vpack.c.bf16 %v2177_v31, %v2176_v29 }
 0xde1   :  { %v1762_v23 = vpack.c.bf16 %v4876_v21, %v4871_v20  ;;  %v1903_v27 = vpack.c.bf16 %v4879_v22, %v4874_v24 }
 0xde3   :  { %4733 = vmatpush3.bf16.msra.mxu1 %v1762_v23 }
 0xde4   :  { %4744 = vmatprep.subr.bf16.mxu1 %v5292_v49 }
 0xde6   :  { %4735 = vmatmul.mubr.msk.bf16.vlgmr.msra.gmra.mrb[44].mxu1 %vm542_vm9, %v1761_v0 }
 0xde7   :  { %4745 = vmatpush3.bf16.msra.mxu1 %v1903_v27  ;;  %4746 = vmatprep.mubr.msk.bf16.mxu1 %vm5293_vm8, %v5292_v49 }
 0xde8   :  { %4756 = vmatprep.subr.bf16.mxu1 %v5292_v49 }
 0xdee   :  { %4747 = vmatmul.mubr.msk.bf16.vlgmr.msra.gmra.mrb[48].mxu1 %vm542_vm9, %v1906_v14 }
 0xdef   :  { %4757 = vmatpush3.bf16.msra.mxu1 %v2051_v30  ;;  %4758 = vmatprep.mubr.msk.bf16.mxu1 %vm5293_vm8, %v5292_v49 }
 0xdf0   :  { %4768 = vmatprep.subr.bf16.mxu1 %v5292_v49 }
 0xdf6   :  { %4759 = vmatmul.mubr.msk.bf16.vlgmr.msra.gmra.mrb[52].mxu1 %vm542_vm9, %v2050_v36 }
 0xdf7   :  { %4769 = vmatpush3.bf16.msra.mxu1 %v2192_v33  ;;  %4770 = vmatprep.mubr.msk.bf16.mxu1 %vm5293_vm8, %v5292_v49  ;;  %v2109_v33 = vpack.c.bf16 %v5832_v7, %v5832_v7 }
 0xdf8   :  { %4780 = vmatprep.subr.bf16.mxu1 %v5292_v49 }
 0xdfe   :  { %4771 = vmatmul.mubr.msk.bf16.vlgmr.msra.gmra.mrb[56].mxu1 %vm542_vm9, %v2195_v38 }
 0xdff   :  { %4784 = vmatprep.mubr.msk.bf16.mxu1 %vm5293_vm8, %v5292_v49 }
 0xeb9   :  { %v1800_v32 = vpop.f32.mrb[44].mxu1 }
 0xeba   :  { %v1806_v35 = vmul.f32 0.25, %v1800_v32  ;;  %v4736_v41 = vpop.f32.mrb[45].mxu1 }
 0xebb   :  { %v1803_v42 = vpop.f32.mrb[46].mxu1 }
 0xebc   :  { %v4737_v45 = vpop.f32.mrb[47].mxu1  ;;  %v1807_v47 = vadd.f32 %v1806_v35, %v5681_v62 }
 0xebe   :  { %v1808_v48 = vsel %vm592_vm10, %v1807_v47, -inf }
 0xebf   :  { %1809 = vmax.xlane.f32.xlu0 %v1808_v48 }
 0xec1   :  { %v1944_v50 = vpop.f32.mrb[48].mxu1 }
 0xec2   :  { %v1950_v52 = vmul.f32 0.25, %v1944_v50  ;;  %v4748_v53 = vpop.f32.mrb[49].mxu1 }
 0xec3   :  { %v1947_v54 = vpop.f32.mrb[50].mxu1 }
 0xec4   :  { %v4749_v55 = vpop.f32.mrb[51].mxu1  ;;  %v1951_v56 = vadd.f32 %v1950_v52, %v5681_v62  ;;  %v2114_v54 = vsel %vm257_vm3, %v2109_v33, 0 }
 0xec6   :  { %v1952_v57 = vsel %vm592_vm10, %v1951_v56, -inf }
 0xec7   :  { %1953 = vmax.xlane.f32.xlu1 %v1952_v57 }
 0xec9   :  { %v2089_v58 = vpop.f32.mrb[52].mxu1 }
 0xeca   :  { %v2095_v59 = vmul.f32 0.25, %v2089_v58  ;;  %v4760_v60 = vpop.f32.mrb[53].mxu1 }
 0xecb   :  { %v2092_v61 = vpop.f32.mrb[54].mxu1 }
 0xecc   :  { %v4761_v63 = vpop.f32.mrb[55].mxu1  ;;  %v2096_v0 = vadd.f32 %v2095_v59, %v5688_v12 }
 0xece   :  { %v2097_v3 = vsel %vm592_vm10, %v2096_v0, -inf }
 0xecf   :  { %2098 = vmax.xlane.f32.xlu1 %v2097_v3 }
 0xed1   :  { %v2233_v36 = vpop.f32.mrb[56].mxu1 }
 0xed2   :  { %v2239_v4 = vmul.f32 0.25, %v2233_v36  ;;  %v4772_v5 = vpop.f32.mrb[57].mxu1 }
 0xed3   :  { %v2236_v11 = vpop.f32.mrb[58].mxu1 }
 0xed4   :  { %v4773_v37 = vpop.f32.mrb[59].mxu1  ;;  %v2240_v62 = vadd.f32 %v2239_v4, %v5688_v12 }
 0xed6   :  { %v2241_v9 = vsel %vm592_vm10, %v2240_v62, -inf }
 0xed7   :  { %2242 = vmax.xlane.f32.xlu1 %v2241_v9 }
 0xf4c   :  { %v1810_v1 = vpop.xlane.xlu0 %1809 }
 0xf4d   :  { %v1811_v13 = vsub.f32 %v1807_v47, %v1810_v1  ;;  %v4908_v1 = vld [vmem:[#allocation5 + $0xb8] sm:$0xff]  }
 0xf4f   :  { %v1812_v2 = vmul.f32 1.442695, %v1811_v13 }
 0xf51   :  { %5021 = vpow2.f32 %v1812_v2 }
 0xf54   :  { %v1954_v34 = vpop.xlane.xlu1 %1953 }
 0xf55   :  { %v1955_v14 = vsub.f32 %v1951_v56, %v1954_v34 }
 0xf57   :  { %v1956_v38 = vmul.f32 1.442695, %v1955_v14 }
 0xf59   :  { %5023 = vpow2.f32 %v1956_v38 }
 0xf5b   :  { %v5022_v15 = vpop.eup %5021 }
 0xf5c   :  { %v2099_v17 = vpop.xlane.xlu1 %2098  ;;  %v1814_v19 = vsel %vm592_vm10, %v5022_v15, 0.0 }
 0xf5d   :  { %v2100_v20 = vsub.f32 %v2096_v0, %v2099_v17  ;;  %1815 = vadd.xlane.f32.xlu0 %v1814_v19  ;;  %v4907_v0 = vld [vmem:[#allocation5 + $0xb0] sm:$0xff]  }
 0xf5e   :  { %4781 = vmatpush3.bf16.msra.mxu1 %v4907_v0 }
 0xf5f   :  { %v2101_v21 = vmul.f32 1.442695, %v2100_v20  ;;  %4782 = vmatprep.subr.bf16.mxu1 %v5292_v49 }
 0xf61   :  { %5025 = vpow2.f32 %v2101_v21 }
 0xf62   :  { %4783 = vmatpush3.bf16.msra.mxu1 %v4908_v1  ;;  %v2410_v1 = vrot.slane %v5818_v46, %v1198_v28  ;;  %v4914_v28 = vld [vmem:[#allocation5 + $0xe0] sm:$0xff]  }
 0xf63   :  { %v5024_v12 = vpop.eup %5023  ;;  %4796 = vmatprep.subr.bf16.mxu1 %v5292_v49 }
 0xf64   :  { %v2243_v22 = vpop.xlane.xlu1 %2242  ;;  %v1958_v23 = vsel %vm592_vm10, %v5024_v12, 0.0 }
 0xf65   :  { %v2244_v24 = vsub.f32 %v2240_v62, %v2243_v22  ;;  %1959 = vadd.xlane.f32.xlu1 %v1958_v23 }
 0xf67   :  { %v2245_v26 = vmul.f32 1.442695, %v2244_v24 }
 0xf69   :  { %5027 = vpow2.f32 %v2245_v26 }
 0xf6b   :  { %v5026_v27 = vpop.eup %5025 }
 0xf6c   :  { %v2103_v29 = vsel %vm592_vm10, %v5026_v27, 0.0 }
 0xf6d   :  { %2104 = vadd.xlane.f32.xlu0 %v2103_v29 }
 0xf73   :  { %v5028_v30 = vpop.eup %5027 }
 0xf74   :  { %v2247_v31 = vsel %vm592_vm10, %v5028_v30, 0.0 }
 0xf75   :  { %2248 = vadd.xlane.f32.xlu1 %v2247_v31 }
 0xf83   :  { %1965 = vrot.lane.b32.xlu0 %v5830_v6, %s5294_s20 }
 0xf86   :  { %2254 = vrot.lane.b32.xlu1 %v2109_v33, %s5294_s20 }
 0xfea   :  { %v1816_v32 = vpop.xlane.xlu0 %1815 }
 0xfeb   :  { %5029 = vrcp.f32 %v1816_v32 }
 0xff2   :  { %v1960_v35 = vpop.xlane.xlu1 %1959 }
 0xff3   :  { %5031 = vrcp.f32 %v1960_v35 }
 0xff5   :  { %v5030_v41 = vpop.eup %5029 }
 0xff6   :  { %v1818_v42 = vmul.f32 %v5030_v41, %v5022_v15 }
 0xff8   :  { %v1819_v45 = vpack.c.bf16 %v1818_v42, %v1818_v42 }
 0xffa   :  { %4741 = vmatmul.mubr.msk.bf16.vlgmr.msra.gmra.mrb[32].mxu0 %vm592_vm10, %v1819_v45  ;;  %v2105_v47 = vpop.xlane.xlu0 %2104 }
 0xffb   :  { %5033 = vrcp.f32 %v2105_v47  ;;  %4752 = vmatprep.mubr.msk.bf16.mxu0 %vm5293_vm8, %v5292_v49 }
 0xffd   :  { %v5032_v6 = vpop.eup %5031 }
 0xffe   :  { %v1962_v48 = vmul.f32 %v5032_v6, %v5024_v12  ;;  %v1966_v50 = vpop.permute.xlu0 %1965 }
 0xfff   :  { %v1971_v7 = vsel %vm257_vm3, %v1966_v50, 0 }
0x1000   :  { %4751 = vmatpush3.bf16.msra.mxu0 %v1971_v7  ;;  %v1963_v52 = vpack.c.bf16 %v1962_v48, %v1962_v48 }
0x1001   :  { %4762 = vmatprep.subr.bf16.mxu0 %v5292_v49 }
0x1002   :  { %v2249_v53 = vpop.xlane.xlu1 %2248 }
0x1003   :  { %5035 = vrcp.f32 %v2249_v53  ;;  %4753 = vmatmul.mubr.msk.bf16.vlgmr.msra.gmra.mrb[36].mxu0 %vm592_vm10, %v1963_v52 }
0x1004   :  { %4763 = vmatpush3.bf16.msra.mxu0 %v2114_v54  ;;  %4764 = vmatprep.mubr.msk.bf16.mxu0 %vm5293_vm8, %v5292_v49 }
0x1005   :  { %v5034_v55 = vpop.eup %5033  ;;  %4774 = vmatprep.subr.bf16.mxu0 %v5292_v49 }
0x1006   :  { %v2107_v56 = vmul.f32 %v5034_v55, %v5026_v27  ;;  %v2255_v57 = vpop.permute.xlu1 %2254  ;;  %v2316_v27 = vrot.slane %v5818_v46, %v5730_v51 }
0x1007   :  { %v2260_v59 = vsel %vm257_vm3, %v2255_v57, 0  ;;  %v4909_v57 = vld [vmem:[#allocation5 + $0xc0] sm:$0xff]  }
0x1008   :  { %v2108_v58 = vpack.c.bf16 %v2107_v56, %v2107_v56 }
0x100b   :  { %4765 = vmatmul.mubr.msk.bf16.vlgmr.msra.gmra.mrb[40].mxu0 %vm592_vm10, %v2108_v58  ;;  %v4911_v58 = vld [vmem:[#allocation5 + $0xc8] sm:$0xff]  }
0x100c   :  { %4775 = vmatpush3.bf16.msra.mxu0 %v2260_v59  ;;  %4776 = vmatprep.mubr.msk.bf16.mxu0 %vm5293_vm8, %v5292_v49  ;;  %v4912_v59 = vld [vmem:[#allocation5 + $0xd8] sm:$0xff]  }
0x100d   :  { %v5036_v60 = vpop.eup %5035  ;;  %4788 = vmatprep.subr.bf16.mxu0 %v5292_v49 }
0x100e   :  { %v2251_v61 = vmul.f32 %v5036_v60, %v5028_v30 }
0x1010   :  { %v2252_v63 = vpack.c.bf16 %v2251_v61, %v2251_v61 }
0x1013   :  { %4777 = vmatmul.mubr.msk.bf16.vlgmr.msra.gmra.mrb[44].mxu0 %vm592_vm10, %v2252_v63 }
0x1014   :  { %4792 = vmatprep.mubr.msk.bf16.mxu0 %vm5293_vm8, %v5292_v49  ;;  %4789 = vmatpush3.bf16.msra.mxu0 %v4909_v57 }
0x1015   :  { %4790 = vmatprep.subr.bf16.mxu0 %v5292_v49 }
0x1018   :  { %4791 = vmatpush3.bf16.msra.mxu0 %v4911_v58 }
0x1019   :  { %4804 = vmatprep.subr.bf16.mxu0 %v5292_v49 }
0x10cd   :  { %v1861_v3 = vpop.f32.mrb[32].mxu0 }
0x10ce   :  { %v4742_v36 = vpop.f32.mrb[33].mxu0 }
0x10cf   :  { %v1864_v4 = vpop.f32.mrb[34].mxu0 }
0x10d0   :  { %v4743_v5 = vpop.f32.mrb[35].mxu0 }
0x10d1   :  { %v2404_v5 = vrot.slane %v5818_v46, %v1192_v16  ;;  %v4913_v16 = vld [vmem:[#allocation5 + $0xf0] sm:$0xff]  }
0x10d6   :  { %v2007_v11 = vpop.f32.mrb[36].mxu0 }
0x10d7   :  { %v4754_v37 = vpop.f32.mrb[37].mxu0 }
0x10d8   :  { %v2010_v62 = vpop.f32.mrb[38].mxu0 }
0x10d9   :  { %v4755_v9 = vpop.f32.mrb[39].mxu0 }
0x10de   :  { %v2150_v13 = vpop.f32.mrb[40].mxu0 }
0x10df   :  { %v4766_v2 = vpop.f32.mrb[41].mxu0 }
0x10e0   :  { %v2153_v34 = vpop.f32.mrb[42].mxu0 }
0x10e1   :  { %v4767_v14 = vpop.f32.mrb[43].mxu0 }
0x10e6   :  { %v2296_v38 = vpop.f32.mrb[44].mxu0 }
0x10e7   :  { %v4880_v15 = vpack.i.bf16 %v2296_v38, %v2007_v11  ;;  %v4778_v17 = vpop.f32.mrb[45].mxu0  ;;  %v4915_v38 = vld [vmem:[#allocation5 + $0xf8] sm:$0xff]  }
0x10e8   :  { %v2299_v19 = vpop.f32.mrb[46].mxu0  ;;  %v2422_v17 = vrot.slane %v5818_v46, %v1210_v43 }
0x10e9   :  { %4881 = vrot.lane.b32.xlu1 %v4880_v15, %s5295_s3  ;;  %v4779_v20 = vpop.f32.mrb[47].mxu0  ;;  %v4916_v15 = vld [vmem:[#allocation5 + $0xe8] sm:$0xff]   ;;  %v2505_v19 = vrot.slane %v5818_v46, %v1293_v44 }
0x115b   :  { %v4882_v21 = vpop.permute.xlu1 %4881 }
0x115c   :  { %v4884_v12 = vunpack.i.h.bf16 %v4882_v21  ;;  %v4883_v22 = vunpack.i.l.bf16 %v4882_v21 }
0x115e   :  { %v2306_v23 = vsel %vm542_vm9, %v2150_v13, %v4884_v12  ;;  %v2017_v24 = vsel %vm542_vm9, %v1861_v3, %v4883_v22 }
0x115f   :  { %v2312_v26 = vpack.c.bf16 %v2306_v23, %v2017_v24 }
0x1161   :  { %4785 = vmatmul.mubr.msk.bf16.vlgmr.msra.gmra.mrb[60].mxu1 %vm274_vm7, %v2312_v26 }
0x1162   :  { %4800 = vmatprep.mubr.msk.bf16.mxu1 %vm5293_vm8, %v5292_v49 }
0x1234   :  { %v2366_v29 = vpop.f32.mrb[60].mxu1 }
0x1235   :  { %v2367_v30 = vadd.f32 %v2366_v29, %v2316_v27  ;;  %v4786_v31 = vpop.f32.mrb[61].mxu1 }
0x1236   :  { %v2369_v33 = vpop.f32.mrb[62].mxu1 }
0x1237   :  { %v2370_v32 = vadd.f32 %v2369_v33, %v2316_v27  ;;  %v4787_v35 = vpop.f32.mrb[63].mxu1  ;;  %v2373_v41 = vadd.f32 %v2367_v30, %v5798_v39 }
0x1239   :  { %v2375_v42 = vsel %vm274_vm7, %v2373_v41, 0.0  ;;  %v2374_v45 = vadd.f32 %v2370_v32, %v5800_v40  ;;  %v4910_v40 = vld [vmem:[#allocation5 + $0xd0] sm:$0xff]  }
0x123a   :  { %2376 = vadd.xlane.f32.xlu0 %v2375_v42  ;;  %4797 = vmatpush3.bf16.msra.mxu1 %v4910_v40 }
0x123b   :  { %v2378_v47 = vsel %vm274_vm7, %v2374_v45, 0.0  ;;  %4798 = vmatprep.subr.bf16.mxu1 %v5292_v49 }
0x123c   :  { %2379 = vadd.xlane.f32.xlu1 %v2378_v47 }
0x123e   :  { %4799 = vmatpush3.bf16.msra.mxu1 %v4912_v59 }
0x123f   :  { %4812 = vmatprep.subr.bf16.mxu1 %v5292_v49 }
0x12c7   :  { %v2377_v6 = vpop.xlane.xlu0 %2376 }
0x12c8   :  { %v2381_v48 = vmul.f32 0.03125, %v2377_v6 }
0x12c9   :  { %v2380_v50 = vpop.xlane.xlu1 %2379 }
0x12ca   :  { %v2383_v7 = vsub.f32 %v2373_v41, %v2381_v48  ;;  %v2382_v52 = vmul.f32 0.03125, %v2380_v50 }
0x12cc   :  { %v2384_v53 = vsub.f32 %v2374_v45, %v2382_v52  ;;  %v2385_v54 = vmul.f32 %v2383_v7, %v2383_v7 }
0x12ce   :  { %v2387_v55 = vsel %vm274_vm7, %v2385_v54, 0.0  ;;  %v2386_v56 = vmul.f32 %v2384_v53, %v2384_v53 }
0x12cf   :  { %2388 = vadd.xlane.f32.xlu0 %v2387_v55 }
0x12d0   :  { %v2390_v39 = vsel %vm274_vm7, %v2386_v56, 0.0 }
0x12d3   :  { %2391 = vadd.xlane.f32.xlu0 %v2390_v39 }
0x135c   :  { %v2389_v60 = vpop.xlane.xlu0 %2388 }
0x135d   :  { %v2393_v61 = vmul.f32 0.03125, %v2389_v60 }
0x135f   :  { %v2395_v63 = vadd.f32 1e-12, %v2393_v61 }
0x1360   :  { %v2392_v0 = vpop.xlane.xlu0 %2391 }
0x1361   :  { %5037 = vrsqrt.f32 %v2395_v63  ;;  %v2394_v3 = vmul.f32 0.03125, %v2392_v0 }
0x1363   :  { %v2396_v36 = vadd.f32 1e-12, %v2394_v3 }
0x1365   :  { %5039 = vrsqrt.f32 %v2396_v36 }
0x136b   :  { %v5038_v4 = vpop.eup %5037 }
0x136c   :  { %v2399_v11 = vmul.f32 %v5038_v4, %v2383_v7 }
0x136e   :  { %v2405_v62 = vmul.f32 %v2404_v5, %v2399_v11 }
0x136f   :  { %v5040_v37 = vpop.eup %5039 }
0x1370   :  { %v2400_v9 = vmul.f32 %v5040_v37, %v2384_v53  ;;  %v5914_v2 = vadd.f32 %v2410_v1, %v2405_v62 }
0x1372   :  { %v2406_v13 = vmul.f32 %v2404_v5, %v2400_v9 }
0x1374   :  { %v5916_v34 = vadd.f32 %v2410_v1, %v2406_v13 }
0x1376   :  { %v2418_v14 = vpack.c.bf16 %v5916_v34, %v5914_v2 }
0x1378   :  { %4793 = vmatmul.mubr.msk.bf16.vlgmr.msra.gmra.mrb[48].mxu0 %vm274_vm7, %v2418_v14  ;;  %4801 = vmatmul.mubr.msk.bf16.vlgmr.msra.gmra.mrb[64].mxu1 %vm274_vm7, %v2418_v14  ;;  %v5939_v14 = vld [vmem:[%s6629_s5 + $0x18] sm:$0x7] }
0x1379   :  { %4808 = vmatprep.mubr.msk.bf16.mxu0 %vm5293_vm8, %v5292_v49  ;;  %4816 = vmatprep.mubr.msk.bf16.mxu1 %vm5293_vm8, %v5292_v49 }
0x137a   :  { %4805 = vmatpush3.bf16.msra.mxu0 %v4913_v16  ;;  %4813 = vmatpush3.bf16.msra.mxu1 %v4914_v28  ;;  %v2704_v28 = vrot.slane %v5939_v14, %v5631_v10 }
0x137b   :  { %4806 = vmatprep.subr.bf16.mxu0 %v5292_v49  ;;  %4814 = vmatprep.subr.bf16.mxu1 %v5292_v49 }
0x137e   :  { %4807 = vmatpush3.bf16.msra.mxu0 %v4915_v38  ;;  %4815 = vmatpush3.bf16.msra.mxu1 %v4916_v15 }
0x144b   :  { %v2472_v20 = vpop.f32.mrb[48].mxu0  ;;  %v2552_v21 = vpop.f32.mrb[64].mxu1 }
0x144c   :  { %v2473_v12 = vadd.f32 %v2472_v20, %v2422_v17  ;;  %v2553_v22 = vadd.f32 %v2552_v21, %v2505_v19  ;;  %v4794_v23 = vpop.f32.mrb[49].mxu0  ;;  %v4802_v24 = vpop.f32.mrb[65].mxu1 }
0x144d   :  { %v2475_v26 = vpop.f32.mrb[50].mxu0  ;;  %v2555_v27 = vpop.f32.mrb[66].mxu1 }
0x144e   :  { %v2479_v29 = vmul.f32 %v2473_v12, %v2473_v12  ;;  %v2559_v30 = vmul.f32 %v2553_v22, %v2553_v22  ;;  %v2476_v31 = vadd.f32 %v2475_v26, %v2422_v17  ;;  %v2556_v33 = vadd.f32 %v2555_v27, %v2505_v19  ;;  %v4795_v32 = vpop.f32.mrb[51].mxu0  ;;  %v4803_v35 = vpop.f32.mrb[67].mxu1 }
0x1450   :  { %v2481_v41 = vmul.f32 %v2479_v29, %v2473_v12  ;;  %v2561_v43 = vmul.f32 %v2559_v30, %v2553_v22  ;;  %v2480_v42 = vmul.f32 %v2476_v31, %v2476_v31  ;;  %v2560_v8 = vmul.f32 %v2556_v33, %v2556_v33 }
0x1452   :  { %v2483_v45 = vmul.f32 0.044715, %v2481_v41  ;;  %v2563_v44 = vmul.f32 0.044715, %v2561_v43  ;;  %v2482_v46 = vmul.f32 %v2480_v42, %v2476_v31  ;;  %v2562_v47 = vmul.f32 %v2560_v8, %v2556_v33 }
0x1454   :  { %v2485_v6 = vadd.f32 %v2483_v45, %v2473_v12  ;;  %v2565_v48 = vadd.f32 %v2563_v44, %v2553_v22  ;;  %v2484_v50 = vmul.f32 0.044715, %v2482_v46  ;;  %v2564_v7 = vmul.f32 0.044715, %v2562_v47  ;;  %v4919_v46 = vld [vmem:[%s6630_s6 + $0x4] ss:$16 sps:$4 sm:$0xff]  }
0x1455   :  { %v4920_v47 = vld [vmem:[%s6630_s6 + $0x8] ss:$16 sps:$4 sm:$0xff]   ;;  %2897 = vmatprep.subr.bf16.mxu0 %v4919_v46  ;;  %v6032_v46 = vld [vmem:[%s6630_s6 + $0x60] ss:$16 sps:$4 sm:$0xff]  }
0x1456   :  { %v2487_v52 = vmul.f32 0.7978846, %v2485_v6  ;;  %v2567_v53 = vmul.f32 0.7978846, %v2565_v48  ;;  %v2486_v54 = vadd.f32 %v2484_v50, %v2476_v31  ;;  %v2566_v55 = vadd.f32 %v2564_v7, %v2556_v33  ;;  %v4922_v6 = vld [vmem:[%s6630_s6 + $0xc] ss:$16 sps:$4 sm:$0xff]  }
0x1457   :  { %v4925_v48 = vld [vmem:[%s6630_s6 + $0x24] ss:$16 sps:$4 sm:$0xff]   ;;  %v4928_v50 = vld [vmem:[%s6630_s6 + $0x2c] ss:$16 sps:$4 sm:$0xff]   ;;  %2940 = vmatprep.subr.bf16.mxu1 %v4922_v6  ;;  %v4923_v7 = vld [vmem:[%s6630_s6 + $0x20] ss:$16 sps:$4 sm:$0xff]  }
0x1458   :  { %5041 = vtanh.f32 %v2487_v52  ;;  %v2488_v56 = vmul.f32 0.7978846, %v2486_v54  ;;  %v2568_v39 = vmul.f32 0.7978846, %v2566_v55  ;;  %v4926_v52 = vld [vmem:[%s6630_s6 + $0x28] ss:$16 sps:$4 sm:$0xff]  }
0x1459   :  { %5043 = vtanh.f32 %v2567_v53  ;;  %v5976_v53 = vld [vmem:[%s6630_s6 + $0x44] ss:$16 sps:$4 sm:$0xff]   ;;  %v5296_v54 = vmov 0   ;;  %v5982_v55 = vld [vmem:[%s6630_s6 + $0x4c] ss:$16 sps:$4 sm:$0xff]  }
0x145a   :  { %5045 = vtanh.f32 %v2488_v56  ;;  %v6044_v6 = vld [vmem:[%s6630_s6 + $0x84] ss:$16 sps:$4 sm:$0xff]  }
0x145b   :  { %5047 = vtanh.f32 %v2568_v39 }
0x1462   :  { %v5042_v57 = vpop.eup %5041 }
0x1463   :  { %v5044_v40 = vpop.eup %5043  ;;  %v2491_v58 = vadd.f32 1.0, %v5042_v57 }
0x1464   :  { %v5046_v59 = vpop.eup %5045  ;;  %v2571_v60 = vadd.f32 1.0, %v5044_v40 }
0x1465   :  { %v5048_v61 = vpop.eup %5047  ;;  %v2493_v63 = vmul.f32 0.5, %v2491_v58  ;;  %v2492_v0 = vadd.f32 1.0, %v5046_v59 }
0x1466   :  { %v2573_v3 = vmul.f32 0.5, %v2571_v60  ;;  %v2572_v36 = vadd.f32 1.0, %v5048_v61  ;;  %v2738_v60 = vrot.slane %v5939_v14, %v5641_v18 }
0x1467   :  { %v2494_v4 = vmul.f32 0.5, %v2492_v0  ;;  %v2495_v11 = vmul.f32 %v2493_v63, %v2473_v12 }
0x1468   :  { %v2574_v5 = vmul.f32 0.5, %v2572_v36  ;;  %v2575_v62 = vmul.f32 %v2573_v3, %v2553_v22  ;;  %v2744_v3 = vrot.slane %v5939_v14, %v5647_v25 }
0x1469   :  { %v2496_v37 = vmul.f32 %v2494_v4, %v2476_v31 }
0x146a   :  { %v2576_v9 = vmul.f32 %v2574_v5, %v2556_v33 }
0x146b   :  { %v2582_v1 = vpack.c.bf16 %v2496_v37, %v2495_v11 }
0x146c   :  { %v2588_v13 = vpack.c.bf16 %v2576_v9, %v2575_v62 }
0x146d   :  { %4817 = vmatmul.mubr.msk.bf16.vlgmr.msra.gmra.mrb[68].mxu1 %vm274_vm7, %v2582_v1 }
0x146e   :  { %4809 = vmatmul.mubr.msk.bf16.vlgmr.msra.gmra.mrb[52].mxu0 %vm274_vm7, %v2588_v13  ;;  %2941 = vmatpush1.bf16.msra.mxu1 %v4920_v47  ;;  %v6037_v47 = vld [vmem:[%s6630_s6 + $0x68] ss:$16 sps:$4 sm:$0xff]  }
0x146f   :  { %2942 = vmatprep.subr.bf16.mxu1 %v4928_v50  ;;  %2929 = vmatprep.mubr.bf16.mxu0 %v5296_v54  ;;  %v6058_v50 = vld [vmem:[%s6630_s6 + $0x80] ss:$16 sps:$4 sm:$0xff]  }
0x1470   :  { %2972 = vmatprep.mubr.bf16.mxu1 %v5296_v54 }
0x1472   :  { %2943 = vmatpush1.bf16.msra.mxu1 %v4926_v52  ;;  %v6070_v52 = vld [vmem:[%s6630_s6 + $0xa4] ss:$16 sps:$4 sm:$0xff]  }
0x1473   :  { %3184 = vmatprep.subr.bf16.mxu1 %v5982_v55 }
0x1540   :  { %v2694_v16 = vpop.f32.mrb[68].mxu1 }
0x1541   :  { %v2638_v38 = vpop.f32.mrb[52].mxu0  ;;  %v4818_v15 = vpop.f32.mrb[69].mxu1 }
0x1542   :  { %v2695_v17 = vadd.f32 %v2694_v16, %v2638_v38  ;;  %v4810_v19 = vpop.f32.mrb[53].mxu0  ;;  %v2697_v20 = vpop.f32.mrb[70].mxu1 }
0x1543   :  { %v2641_v21 = vpop.f32.mrb[54].mxu0  ;;  %v4819_v12 = vpop.f32.mrb[71].mxu1 }
0x1544   :  { %v2705_v22 = vadd.f32 %v2704_v28, %v2695_v17  ;;  %v2698_v23 = vadd.f32 %v2697_v20, %v2641_v21  ;;  %v4811_v24 = vpop.f32.mrb[55].mxu0 }
0x1546   :  { %v2706_v26 = vadd.f32 %v2704_v28, %v2698_v23  ;;  %v2707_v27 = vadd.f32 %v2705_v22, %v5914_v2 }
0x1548   :  { %v2709_v29 = vsel %vm274_vm7, %v2707_v27, 0.0  ;;  %v2708_v30 = vadd.f32 %v2706_v26, %v5916_v34  ;;  %v4917_v34 = vld [vmem:[%s6630_s6] ss:$16 sps:$4 sm:$0xff]  }
0x1549   :  { %2710 = vadd.xlane.f32.xlu1 %v2709_v29  ;;  %2898 = vmatpush1.bf16.msra.mxu0 %v4917_v34  ;;  %v6023_v34 = vld [vmem:[%s6630_s6 + $0x6c] ss:$16 sps:$4 sm:$0xff]  }
0x154a   :  { %v2712_v31 = vsel %vm274_vm7, %v2708_v30, 0.0  ;;  %2899 = vmatprep.subr.bf16.mxu0 %v4925_v48  ;;  %v6049_v48 = vld [vmem:[%s6630_s6 + $0x8c] ss:$16 sps:$4 sm:$0xff]  }
0x154b   :  { %2713 = vadd.xlane.f32.xlu0 %v2712_v31 }
0x154d   :  { %2900 = vmatpush1.bf16.msra.mxu0 %v4923_v7  ;;  %v6063_v7 = vld [vmem:[%s6630_s6 + $0x88] ss:$16 sps:$4 sm:$0xff]  }
0x154e   :  { %3143 = vmatprep.subr.bf16.mxu0 %v5976_v53 }
0x15d6   :  { %v2711_v33 = vpop.xlane.xlu1 %2710 }
0x15d7   :  { %v2715_v32 = vmul.f32 0.03125, %v2711_v33 }
0x15d8   :  { %v2714_v35 = vpop.xlane.xlu0 %2713 }
0x15d9   :  { %v2717_v41 = vsub.f32 %v2707_v27, %v2715_v32  ;;  %v2716_v43 = vmul.f32 0.03125, %v2714_v35 }
0x15db   :  { %v2718_v42 = vsub.f32 %v2708_v30, %v2716_v43  ;;  %v2719_v8 = vmul.f32 %v2717_v41, %v2717_v41 }
0x15dd   :  { %v2721_v45 = vsel %vm274_vm7, %v2719_v8, 0.0  ;;  %v2720_v44 = vmul.f32 %v2718_v42, %v2718_v42  ;;  %v6008_v8 = vld [vmem:[%s6630_s6 + $0x40] ss:$16 sps:$4 sm:$0xff]  }
0x15de   :  { %2722 = vadd.xlane.f32.xlu1 %v2721_v45  ;;  %v6013_v45 = vld [vmem:[%s6630_s6 + $0x48] ss:$16 sps:$4 sm:$0xff]  }
0x15df   :  { %v2724_v2 = vsel %vm274_vm7, %v2720_v44, 0.0 }
0x15e0   :  { %2725 = vadd.xlane.f32.xlu0 %v2724_v2  ;;  %v6018_v2 = vld [vmem:[%s6630_s6 + $0x64] ss:$16 sps:$4 sm:$0xff]  }
0x166b   :  { %v2723_v56 = vpop.xlane.xlu1 %2722 }
0x166c   :  { %v2727_v39 = vmul.f32 0.03125, %v2723_v56  ;;  %v6075_v56 = vld [vmem:[%s6630_s6 + $0xac] ss:$16 sps:$4 sm:$0xff]  }
0x166d   :  { %v2726_v57 = vpop.xlane.xlu0 %2725 }
0x166e   :  { %v2729_v40 = vadd.f32 1e-12, %v2727_v39  ;;  %v2728_v58 = vmul.f32 0.03125, %v2726_v57  ;;  %v6082_v39 = vld [vmem:[%s6630_s6 + $0xa0] ss:$16 sps:$4 sm:$0xff]  }
0x166f   :  { %v6087_v57 = vld [vmem:[%s6630_s6 + $0xa8] ss:$16 sps:$4 sm:$0xff]  }
0x1670   :  { %5049 = vrsqrt.f32 %v2729_v40  ;;  %v2730_v59 = vadd.f32 1e-12, %v2728_v58  ;;  %v6094_v40 = vld [vmem:[%s6630_s6 + $0xc4] ss:$16 sps:$4 sm:$0xff]   ;;  %v6099_v58 = vld [vmem:[%s6630_s6 + $0xcc] ss:$16 sps:$4 sm:$0xff]  }
0x1672   :  { %5051 = vrsqrt.f32 %v2730_v59  ;;  %v6106_v59 = vld [vmem:[%s6630_s6 + $0xc0] ss:$16 sps:$4 sm:$0xff]  }
0x167a   :  { %v5050_v61 = vpop.eup %5049 }
0x167b   :  { %v2733_v63 = vmul.f32 %v5050_v61, %v2717_v41  ;;  %v6118_v61 = vld [vmem:[%s6630_s6 + $0xe4] ss:$16 sps:$4 sm:$0xff]  }
0x167c   :  { %v5052_v0 = vpop.eup %5051 }
0x167d   :  { %v2739_v36 = vmul.f32 %v2738_v60, %v2733_v63  ;;  %v2734_v4 = vmul.f32 %v5052_v0, %v2718_v42  ;;  %v6123_v63 = vld [vmem:[%s6630_s6 + $0xec] ss:$16 sps:$4 sm:$0xff]   ;;  %v6130_v0 = vld [vmem:[%s6630_s6 + $0xe0] ss:$16 sps:$4 sm:$0xff]  }
0x167f   :  { %v2740_v5 = vmul.f32 %v2738_v60, %v2734_v4  ;;  %v2745_v11 = vadd.f32 %v2744_v3, %v2739_v36  ;;  %v6111_v60 = vld [vmem:[%s6630_s6 + $0xc8] ss:$16 sps:$4 sm:$0xff]   ;;  %v6142_v36 = vld [vmem:[%s6630_s6 + $0x104] ss:$16 sps:$4 sm:$0xff]   ;;  %v6147_v4 = vld [vmem:[%s6630_s6 + $0x10c] ss:$16 sps:$4 sm:$0xff]  }
0x1681   :  { %v2746_v37 = vadd.f32 %v2744_v3, %v2740_v5  ;;  %v2751_v9 = vrot.slane %v2745_v11, 7  ;;  %v2763_v1 = vrot.slane %v2745_v11, 4  ;;  %v2767_v28 = vrot.slane %v2745_v11, 3  ;;  %v6135_v3 = vld [vmem:[%s6630_s6 + $0xe8] ss:$16 sps:$4 sm:$0xff]  }
0x1682   :  { %v2755_v15 = vrot.slane %v2745_v11, 6  ;;  %v2771_v21 = vrot.slane %v2745_v11, 2  ;;  %v2759_v23 = vrot.slane %v2745_v11, 5  ;;  %v2775_v30 = vrot.slane %v2745_v11, 1  ;;  %v6154_v5 = vld [vmem:[%s6630_s6 + $0x100] ss:$16 sps:$4 sm:$0xff]  }
0x1683   :  { %v2748_v62 = vrot.slane %v2746_v37, 7  ;;  %v2765_v13 = vrot.slane %v2746_v37, 3  ;;  %v2753_v16 = vrot.slane %v2746_v37, 6  ;;  %v2769_v17 = vrot.slane %v2746_v37, 2 }
0x1684   :  { %v2757_v14 = vrot.slane %v2746_v37, 5  ;;  %v2773_v24 = vrot.slane %v2746_v37, 1  ;;  %v2761_v29 = vrot.slane %v2746_v37, 4 }
0x1685   :  { %v2777_v38 = vsel %vm251_vm0, %v2745_v11, %v2748_v62  ;;  %v2784_v20 = vsel %vm251_vm0, %v2763_v1, %v2765_v13  ;;  %v6159_v11 = vld [vmem:[%s6630_s6 + $0x108] ss:$16 sps:$4 sm:$0xff]   ;;  %v6171_v62 = vld [vmem:[%s6630_s6 + $0x12c] ss:$16 sps:$4 sm:$0xff]   ;;  %v2832_v13 = vld [vmem:[%s6631_s7] sm:$0xf] }
0x1686   :  { %v2778_v19 = vsel %vm253_vm1, %v2777_v38, %v2751_v9  ;;  %v2785_v22 = vsel %vm253_vm1, %v2784_v20, %v2767_v28  ;;  %v6178_v9 = vld [vmem:[%s6630_s6 + $0x120] ss:$16 sps:$4 sm:$0xff]   ;;  %v6183_v1 = vld [vmem:[%s6630_s6 + $0x128] ss:$16 sps:$4 sm:$0xff]   ;;  %v2837_v38 = vrot.slane %v2832_v13, %v5631_v10  ;;  %v2841_v20 = vrot.slane %v2832_v13, %v5641_v18  ;;  %s4261_s7 = sshll.u32 %s5297_s21, 4  ;;  %s4262_s7 = int_to_ptr.vmem [resolvable:$true] %s4261_s7 }
0x1687   :  { %v2779_v12 = vsel %vm255_vm2, %v2778_v19, %v2753_v16  ;;  %v2786_v27 = vsel %vm255_vm2, %v2785_v22, %v2769_v17  ;;  %s5259_s25 = scalar_lea.vmem %s4262_s7, 32  ;;  %p5264_p5 = scmp.lt.s32.totalorder %s4262_s7, %s4262_s7 }
0x1688   :  { %v2780_v26 = vsel %vm257_vm3, %v2779_v12, %v2755_v15  ;;  %v2787_v33 = vsel %vm257_vm3, %v2786_v27, %v2771_v21  ;;  %v2845_v15 = vrot.slane %v2832_v13, %v5647_v25  ;;  %p5260_p4 = scmp.ne.s32.totalorder %s4262_s7, %s5259_s25  ;;  %p5265_p6 = scmp.lt.s32.totalorder %s5259_s25, %s5259_s25 }
0x1689   :  { %v2781_v31 = vsel %vm259_vm4, %v2780_v26, %v2757_v14  ;;  %v2788_v35 = vsel %vm259_vm4, %v2787_v33, %v2773_v24  ;;  %v2849_v14 = vrot.slane %v2832_v13, %v5730_v51 }
0x168a   :  { %v2782_v32 = vsel %vm261_vm5, %v2781_v31, %v2759_v23  ;;  %v2789_v43 = vsel %vm261_vm5, %v2788_v35, %v2775_v30  ;;  %p5266_p7 = por %p5265_p6, %p5264_p5 }
0x168b   :  { %v2783_v41 = vsel %vm263_vm6, %v2782_v32, %v2761_v29  ;;  %v2790_v42 = vsel %vm263_vm6, %v2789_v43, %v2746_v37  ;;  %v6166_v37 = vld [vmem:[%s6630_s6 + $0x124] ss:$16 sps:$4 sm:$0xff]  }
0x168c   :  { %v2831_v44 = vpack.c.bf16 %v2790_v42, %v2783_v41  ;;  %p5267_p8 = pnand %p5266_p7, %p5260_p4 }
0x168e   :  { %4440 = vmatmul.mubr.msk.bf16.vlgmr.msra.gmra.mrb[56].mxu0 %vm274_vm7, %v2831_v44  ;;  %4441 = vmatmul.mubr.msk.bf16.vlgmr.msra.gmra.mrb[72].mxu1 %vm274_vm7, %v2831_v44 }
0x168f   :  { %3144 = vmatpush1.bf16.msra.mxu0 %v6008_v8  ;;  %3185 = vmatpush1.bf16.msra.mxu1 %v6013_v45 }
0x1690   :  { %3145 = vmatprep.subr.bf16.mxu0 %v6018_v2  ;;  %3186 = vmatprep.subr.bf16.mxu1 %v6023_v34 }
0x1691   :  { %3175 = vmatprep.mubr.bf16.mxu0 %v5296_v54  ;;  %3216 = vmatprep.mubr.bf16.mxu1 %v5296_v54 }
0x1693   :  { %3146 = vmatpush1.bf16.msra.mxu0 %v6032_v46  ;;  %3187 = vmatpush1.bf16.msra.mxu1 %v6037_v47 }
0x1694   :  { %3147 = vmatprep.subr.bf16.mxu0 %v6044_v6  ;;  %3188 = vmatprep.subr.bf16.mxu1 %v6049_v48 }
0x1697   :  { %3148 = vmatpush1.bf16.msra.mxu0 %v6058_v50  ;;  %3189 = vmatpush1.bf16.msra.mxu1 %v6063_v7 }
0x1698   :  { %3149 = vmatprep.subr.bf16.mxu0 %v6070_v52  ;;  %3190 = vmatprep.subr.bf16.mxu1 %v6075_v56 }
0x169b   :  { %3150 = vmatpush1.bf16.msra.mxu0 %v6082_v39  ;;  %3191 = vmatpush1.bf16.msra.mxu1 %v6087_v57 }
0x169c   :  { %3151 = vmatprep.subr.bf16.mxu0 %v6094_v40  ;;  %3192 = vmatprep.subr.bf16.mxu1 %v6099_v58 }
0x169f   :  { %3152 = vmatpush1.bf16.msra.mxu0 %v6106_v59  ;;  %3193 = vmatpush1.bf16.msra.mxu1 %v6111_v60 }
0x16a0   :  { %3153 = vmatprep.subr.bf16.mxu0 %v6118_v61  ;;  %3194 = vmatprep.subr.bf16.mxu1 %v6123_v63 }
0x16a3   :  { %3154 = vmatpush1.bf16.msra.mxu0 %v6130_v0  ;;  %3195 = vmatpush1.bf16.msra.mxu1 %v6135_v3 }
0x16a4   :  { %3155 = vmatprep.subr.bf16.mxu0 %v6142_v36  ;;  %3196 = vmatprep.subr.bf16.mxu1 %v6147_v4 }
0x16a7   :  { %3156 = vmatpush1.bf16.msra.mxu0 %v6154_v5  ;;  %3197 = vmatpush1.bf16.msra.mxu1 %v6159_v11 }
0x16a8   :  { %3157 = vmatprep.subr.bf16.mxu0 %v6166_v37  ;;  %3198 = vmatprep.subr.bf16.mxu1 %v6171_v62 }
0x16ab   :  { %3158 = vmatpush1.bf16.msra.mxu0 %v6178_v9  ;;  %3199 = vmatpush1.bf16.msra.mxu1 %v6183_v1 }
0x16ac   :  { %3254 = vmatprep.subr.bf16.mxu0 %v5976_v53  ;;  %3295 = vmatprep.subr.bf16.mxu1 %v5982_v55 }
0x16ae   :  { %3176 = vmatmul.mubr.bf16.vlgmr.msra.gmra.mrb[60].mxu0 %v5296_v54  ;;  %3217 = vmatmul.mubr.bf16.vlgmr.msra.gmra.mrb[76].mxu1 %v5296_v54 }
0x16af   :  { %3255 = vmatpush1.bf16.msra.mxu0 %v6008_v8  ;;  %3296 = vmatpush1.bf16.msra.mxu1 %v6013_v45 }
0x16b0   :  { %3256 = vmatprep.subr.bf16.mxu0 %v6018_v2  ;;  %3297 = vmatprep.subr.bf16.mxu1 %v6023_v34 }
0x16b1   :  { %3286 = vmatprep.mubr.bf16.mxu0 %v5296_v54  ;;  %3327 = vmatprep.mubr.bf16.mxu1 %v5296_v54 }
0x16b3   :  { %3257 = vmatpush1.bf16.msra.mxu0 %v6032_v46  ;;  %3298 = vmatpush1.bf16.msra.mxu1 %v6037_v47 }
0x16b4   :  { %3258 = vmatprep.subr.bf16.mxu0 %v6044_v6  ;;  %3299 = vmatprep.subr.bf16.mxu1 %v6049_v48 }
0x16b7   :  { %3259 = vmatpush1.bf16.msra.mxu0 %v6058_v50  ;;  %3300 = vmatpush1.bf16.msra.mxu1 %v6063_v7 }
0x16b8   :  { %3260 = vmatprep.subr.bf16.mxu0 %v6070_v52  ;;  %3301 = vmatprep.subr.bf16.mxu1 %v6075_v56 }
0x16bb   :  { %3261 = vmatpush1.bf16.msra.mxu0 %v6082_v39  ;;  %3302 = vmatpush1.bf16.msra.mxu1 %v6087_v57 }
0x16bc   :  { %3262 = vmatprep.subr.bf16.mxu0 %v6094_v40  ;;  %3303 = vmatprep.subr.bf16.mxu1 %v6099_v58 }
0x16bf   :  { %3263 = vmatpush1.bf16.msra.mxu0 %v6106_v59  ;;  %3304 = vmatpush1.bf16.msra.mxu1 %v6111_v60 }
0x16c0   :  { %3264 = vmatprep.subr.bf16.mxu0 %v6118_v61  ;;  %3305 = vmatprep.subr.bf16.mxu1 %v6123_v63 }
0x16c3   :  { %3265 = vmatpush1.bf16.msra.mxu0 %v6130_v0  ;;  %3306 = vmatpush1.bf16.msra.mxu1 %v6135_v3 }
0x16c4   :  { %3266 = vmatprep.subr.bf16.mxu0 %v6142_v36  ;;  %3307 = vmatprep.subr.bf16.mxu1 %v6147_v4 }
0x16c7   :  { %3267 = vmatpush1.bf16.msra.mxu0 %v6154_v5  ;;  %3308 = vmatpush1.bf16.msra.mxu1 %v6159_v11 }
0x16c8   :  { %3268 = vmatprep.subr.bf16.mxu0 %v6166_v37  ;;  %3309 = vmatprep.subr.bf16.mxu1 %v6171_v62 }
0x16cb   :  { %3269 = vmatpush1.bf16.msra.mxu0 %v6178_v9  ;;  %3310 = vmatpush1.bf16.msra.mxu1 %v6183_v1 }
0x16cc   :  { %3383 = vmatprep.subr.bf16.mxu0 %v5976_v53  ;;  %3424 = vmatprep.subr.bf16.mxu1 %v5982_v55 }
0x1761   :  { %v2931_v16 = vpop.f32.mrb[56].mxu0  ;;  %v2974_v28 = vpop.f32.mrb[72].mxu1 }
0x1762   :  { %v2933_v17 = vpop.f32.mrb[57].mxu0  ;;  %v2976_v19 = vpop.f32.mrb[73].mxu1  ;;  %v6242_v10 = vadd.f32 %v2931_v16, %v2837_v38 }
0x1763   :  { %v2935_v21 = vpop.f32.mrb[58].mxu0  ;;  %v2978_v12 = vpop.f32.mrb[74].mxu1  ;;  %v6244_v25 = vadd.f32 %v2933_v17, %v2841_v20 }
0x1764   :  { %v6234_v22 = vadd.f32 %v2935_v21, %v2837_v38  ;;  %v6236_v23 = vadd.f32 %v2978_v12, %v2845_v15  ;;  %v2937_v24 = vpop.f32.mrb[59].mxu0  ;;  %v2980_v26 = vpop.f32.mrb[75].mxu1  ;;  %v6248_v21 = vadd.f32 %v2976_v19, %v2849_v14  ;;  %v6251_v38 = vadd.f32 %v2974_v28, %v2845_v15 }
0x1765   :  { %v6238_v27 = vadd.f32 %v2937_v24, %v2841_v20  ;;  %v6240_v29 = vadd.f32 %v2980_v26, %v2849_v14 }
0x1781   :  { %v3177_v30 = vpop.f32.mrb[60].mxu0  ;;  %v3218_v18 = vpop.f32.mrb[76].mxu1 }
0x1782   :  { %v3225_v51 = vadd.f32 %v3177_v30, %v6242_v10  ;;  %v3179_v31 = vpop.f32.mrb[61].mxu0  ;;  %v3220_v33 = vpop.f32.mrb[77].mxu1  ;;  %v3227_v20 = vadd.f32 %v3218_v18, %v6251_v38 }
0x1783   :  { %v3226_v32 = vadd.f32 %v3179_v31, %v6244_v25  ;;  %v3181_v35 = vpop.f32.mrb[62].mxu0  ;;  %v3222_v41 = vpop.f32.mrb[78].mxu1  ;;  %v3228_v16 = vadd.f32 %v3220_v33, %v6248_v21 }
0x1784   :  { %v4474_v43 = vmul.f32 -1.442695, %v3225_v51  ;;  %v3182_v42 = vpop.f32.mrb[63].mxu0  ;;  %v3223_v44 = vpop.f32.mrb[79].mxu1 }
0x1785   :  { %v4475_v13 = vmul.f32 -1.442695, %v3226_v32  ;;  %v4476_v17 = vmul.f32 -1.442695, %v3228_v16 }
0x1786   :  { %5053 = vpow2.f32 %v4474_v43 }
0x1787   :  { %5055 = vpow2.f32 %v4475_v13 }
0x1788   :  { %5057 = vpow2.f32 %v4476_v17 }
0x1789   :  { %5059 = vtanh.f32 %v3227_v20 }
0x1790   :  { %v5054_v12 = vpop.eup %5053 }
0x1791   :  { %v5056_v24 = vpop.eup %5055  ;;  %v3232_v26 = vadd.f32 1.0, %v5054_v12 }
0x1792   :  { %v3238_v30 = vadd.f32 1.0, %v5056_v24  ;;  %v5058_v51 = vpop.eup %5057 }
0x1793   :  { %5061 = vrcp.f32 %v3232_v26  ;;  %v5060_v31 = vpop.eup %5059  ;;  %v3245_v35 = vadd.f32 1.0, %v5058_v51 }
0x1794   :  { %5063 = vrcp.f32 %v3238_v30 }
0x1795   :  { %5065 = vrcp.f32 %v3245_v35 }
0x179d   :  { %v5062_v19 = vpop.eup %5061 }
0x179e   :  { %v5064_v14 = vpop.eup %5063  ;;  %v3249_v32 = vmul.f32 %v5062_v19, %v5060_v31 }
0x179f   :  { %v3248_v33 = vmul.f32 0.0, %v5064_v14  ;;  %v5066_v15 = vpop.eup %5065 }
0x17a1   :  { %v6254_v28 = vadd.f32 %v3249_v32, %v3248_v33 }
0x17a3   :  { %5067 = vtanh.f32 %v6254_v28 }
0x17ad   :  { %v5068_v18 = vpop.eup %5067 }
0x17ae   :  { %v3252_v41 = vmul.f32 %v5068_v18, %v5066_v15 }
0x17b0   :  { %v3253_v43 = vpack.c.bf16 %v3252_v41, %v3252_v41 }
0x17b2   :  { %3287 = vmatmul.mubr.bf16.vlgmr.msra.gmra.mrb[64].mxu0 %v3253_v43  ;;  %3328 = vmatmul.mubr.bf16.vlgmr.msra.gmra.mrb[80].mxu1 %v3253_v43 }
0x17b3   :  { %3384 = vmatpush1.bf16.msra.mxu0 %v6008_v8  ;;  %3425 = vmatpush1.bf16.msra.mxu1 %v6013_v45 }
0x17b4   :  { %3385 = vmatprep.subr.bf16.mxu0 %v6018_v2  ;;  %3426 = vmatprep.subr.bf16.mxu1 %v6023_v34 }
0x17b5   :  { %3415 = vmatprep.mubr.bf16.mxu0 %v5296_v54  ;;  %3456 = vmatprep.mubr.bf16.mxu1 %v5296_v54 }
0x17b7   :  { %3386 = vmatpush1.bf16.msra.mxu0 %v6032_v46  ;;  %3427 = vmatpush1.bf16.msra.mxu1 %v6037_v47 }
0x17b8   :  { %3387 = vmatprep.subr.bf16.mxu0 %v6044_v6  ;;  %3428 = vmatprep.subr.bf16.mxu1 %v6049_v48 }
0x17bb   :  { %3388 = vmatpush1.bf16.msra.mxu0 %v6058_v50  ;;  %3429 = vmatpush1.bf16.msra.mxu1 %v6063_v7 }
0x17bc   :  { %3389 = vmatprep.subr.bf16.mxu0 %v6070_v52  ;;  %3430 = vmatprep.subr.bf16.mxu1 %v6075_v56 }
0x17bf   :  { %3390 = vmatpush1.bf16.msra.mxu0 %v6082_v39  ;;  %3431 = vmatpush1.bf16.msra.mxu1 %v6087_v57 }
0x17c0   :  { %3391 = vmatprep.subr.bf16.mxu0 %v6094_v40  ;;  %3432 = vmatprep.subr.bf16.mxu1 %v6099_v58 }
0x17c3   :  { %3392 = vmatpush1.bf16.msra.mxu0 %v6106_v59  ;;  %3433 = vmatpush1.bf16.msra.mxu1 %v6111_v60 }
0x17c4   :  { %3393 = vmatprep.subr.bf16.mxu0 %v6118_v61  ;;  %3434 = vmatprep.subr.bf16.mxu1 %v6123_v63 }
0x17c7   :  { %3394 = vmatpush1.bf16.msra.mxu0 %v6130_v0  ;;  %3435 = vmatpush1.bf16.msra.mxu1 %v6135_v3 }
0x17c8   :  { %3395 = vmatprep.subr.bf16.mxu0 %v6142_v36  ;;  %3436 = vmatprep.subr.bf16.mxu1 %v6147_v4 }
0x17cb   :  { %3396 = vmatpush1.bf16.msra.mxu0 %v6154_v5  ;;  %3437 = vmatpush1.bf16.msra.mxu1 %v6159_v11 }
0x17cc   :  { %3397 = vmatprep.subr.bf16.mxu0 %v6166_v37  ;;  %3438 = vmatprep.subr.bf16.mxu1 %v6171_v62 }
0x17cf   :  { %3398 = vmatpush1.bf16.msra.mxu0 %v6178_v9  ;;  %3439 = vmatpush1.bf16.msra.mxu1 %v6183_v1 }
0x17d0   :  { %3512 = vmatprep.subr.bf16.mxu0 %v5976_v53  ;;  %3553 = vmatprep.subr.bf16.mxu1 %v5982_v55 }
0x1885   :  { %v3288_v42 = vpop.f32.mrb[64].mxu0  ;;  %v3329_v44 = vpop.f32.mrb[80].mxu1 }
0x1886   :  { %v3340_v13 = vrot.slane %v3288_v42, 6  ;;  %v3290_v16 = vpop.f32.mrb[65].mxu0  ;;  %v3331_v17 = vpop.f32.mrb[81].mxu1  ;;  %v3342_v33 = vrot.slane %v3329_v44, 6 }
0x1887   :  { %v3341_v20 = vrot.slane %v3290_v16, 6  ;;  %v3292_v12 = vpop.f32.mrb[66].mxu0  ;;  %v3333_v24 = vpop.f32.mrb[82].mxu1  ;;  %v3343_v32 = vrot.slane %v3331_v17, 6  ;;  %v3372_v17 = vrot.slane %v6254_v28, 6 }
0x1888   :  { %v3348_v26 = vadd.f32 %v3340_v13, %v6242_v10  ;;  %v3293_v30 = vpop.f32.mrb[67].mxu0  ;;  %v3334_v51 = vpop.f32.mrb[83].mxu1  ;;  %v3350_v18 = vadd.f32 %v3342_v33, %v6251_v38 }
0x1889   :  { %v3349_v31 = vadd.f32 %v3341_v20, %v6244_v25  ;;  %v3351_v35 = vadd.f32 %v3343_v32, %v6248_v21 }
0x188a   :  { %v4477_v19 = vmul.f32 -1.442695, %v3348_v26 }
0x188b   :  { %v4478_v14 = vmul.f32 -1.442695, %v3349_v31  ;;  %v4479_v15 = vmul.f32 -1.442695, %v3351_v35 }
0x188c   :  { %5069 = vpow2.f32 %v4477_v19 }
0x188d   :  { %5071 = vpow2.f32 %v4478_v14 }
0x188e   :  { %5073 = vpow2.f32 %v4479_v15 }
0x188f   :  { %5075 = vtanh.f32 %v3350_v18 }
0x1896   :  { %v5070_v41 = vpop.eup %5069 }
0x1897   :  { %v5072_v43 = vpop.eup %5071  ;;  %v3355_v42 = vadd.f32 1.0, %v5070_v41 }
0x1898   :  { %v3361_v13 = vadd.f32 1.0, %v5072_v43  ;;  %v5074_v16 = vpop.eup %5073 }
0x1899   :  { %5077 = vrcp.f32 %v3355_v42  ;;  %v5076_v20 = vpop.eup %5075  ;;  %v3368_v30 = vadd.f32 1.0, %v5074_v16 }
0x189a   :  { %5079 = vrcp.f32 %v3361_v13 }
0x189b   :  { %5081 = vrcp.f32 %v3368_v30 }
0x18a3   :  { %v5078_v12 = vpop.eup %5077 }
0x18a4   :  { %v5080_v24 = vpop.eup %5079  ;;  %v3375_v26 = vmul.f32 %v5078_v12, %v5076_v20 }
0x18a5   :  { %v3374_v44 = vmul.f32 %v5080_v24, %v3372_v17  ;;  %v5082_v31 = vpop.eup %5081 }
0x18a7   :  { %v6296_v51 = vadd.f32 %v3375_v26, %v3374_v44 }
0x18a9   :  { %5083 = vtanh.f32 %v6296_v51 }
0x18b3   :  { %v5084_v19 = vpop.eup %5083 }
0x18b4   :  { %v3378_v14 = vmul.f32 %v5084_v19, %v5082_v31 }
0x18b6   :  { %v3379_v32 = vpack.c.bf16 %v3378_v14, %v3378_v14 }
0x18b8   :  { %v3381_v35 = vrot.slane %v3379_v32, 1 }
0x18ba   :  { %3416 = vmatmul.mubr.bf16.vlgmr.msra.gmra.mrb[68].mxu0 %v3381_v35  ;;  %3457 = vmatmul.mubr.bf16.vlgmr.msra.gmra.mrb[84].mxu1 %v3381_v35 }
0x18bb   :  { %3513 = vmatpush1.bf16.msra.mxu0 %v6008_v8  ;;  %3554 = vmatpush1.bf16.msra.mxu1 %v6013_v45 }
0x18bc   :  { %3514 = vmatprep.subr.bf16.mxu0 %v6018_v2  ;;  %3555 = vmatprep.subr.bf16.mxu1 %v6023_v34 }
0x18bd   :  { %3544 = vmatprep.mubr.bf16.mxu0 %v5296_v54  ;;  %3585 = vmatprep.mubr.bf16.mxu1 %v5296_v54 }
0x18bf   :  { %3515 = vmatpush1.bf16.msra.mxu0 %v6032_v46  ;;  %3556 = vmatpush1.bf16.msra.mxu1 %v6037_v47 }
0x18c0   :  { %3516 = vmatprep.subr.bf16.mxu0 %v6044_v6  ;;  %3557 = vmatprep.subr.bf16.mxu1 %v6049_v48 }
0x18c3   :  { %3517 = vmatpush1.bf16.msra.mxu0 %v6058_v50  ;;  %3558 = vmatpush1.bf16.msra.mxu1 %v6063_v7 }
0x18c4   :  { %3518 = vmatprep.subr.bf16.mxu0 %v6070_v52  ;;  %3559 = vmatprep.subr.bf16.mxu1 %v6075_v56 }
0x18c7   :  { %3519 = vmatpush1.bf16.msra.mxu0 %v6082_v39  ;;  %3560 = vmatpush1.bf16.msra.mxu1 %v6087_v57 }
0x18c8   :  { %3520 = vmatprep.subr.bf16.mxu0 %v6094_v40  ;;  %3561 = vmatprep.subr.bf16.mxu1 %v6099_v58 }
0x18cb   :  { %3521 = vmatpush1.bf16.msra.mxu0 %v6106_v59  ;;  %3562 = vmatpush1.bf16.msra.mxu1 %v6111_v60 }
0x18cc   :  { %3522 = vmatprep.subr.bf16.mxu0 %v6118_v61  ;;  %3563 = vmatprep.subr.bf16.mxu1 %v6123_v63 }
0x18cf   :  { %3523 = vmatpush1.bf16.msra.mxu0 %v6130_v0  ;;  %3564 = vmatpush1.bf16.msra.mxu1 %v6135_v3 }
0x18d0   :  { %3524 = vmatprep.subr.bf16.mxu0 %v6142_v36  ;;  %3565 = vmatprep.subr.bf16.mxu1 %v6147_v4 }
0x18d3   :  { %3525 = vmatpush1.bf16.msra.mxu0 %v6154_v5  ;;  %3566 = vmatpush1.bf16.msra.mxu1 %v6159_v11 }
0x18d4   :  { %3526 = vmatprep.subr.bf16.mxu0 %v6166_v37  ;;  %3567 = vmatprep.subr.bf16.mxu1 %v6171_v62 }
0x18d7   :  { %3527 = vmatpush1.bf16.msra.mxu0 %v6178_v9  ;;  %3568 = vmatpush1.bf16.msra.mxu1 %v6183_v1 }
0x18d8   :  { %3641 = vmatprep.subr.bf16.mxu0 %v5976_v53  ;;  %3682 = vmatprep.subr.bf16.mxu1 %v5982_v55 }
0x198d   :  { %v3417_v28 = vpop.f32.mrb[68].mxu0  ;;  %v3458_v33 = vpop.f32.mrb[84].mxu1 }
0x198e   :  { %v3469_v15 = vrot.slane %v3417_v28, 4  ;;  %v3419_v18 = vpop.f32.mrb[69].mxu0  ;;  %v3460_v41 = vpop.f32.mrb[85].mxu1  ;;  %v3471_v31 = vrot.slane %v3458_v33, 4 }
0x198f   :  { %v3470_v43 = vrot.slane %v3419_v18, 4  ;;  %v3421_v42 = vpop.f32.mrb[70].mxu0  ;;  %v3462_v13 = vpop.f32.mrb[86].mxu1  ;;  %v3472_v30 = vrot.slane %v3460_v41, 4  ;;  %v3501_v41 = vrot.slane %v6296_v51, 6 }
0x1990   :  { %v3477_v16 = vadd.f32 %v3469_v15, %v6242_v10  ;;  %v3422_v20 = vpop.f32.mrb[71].mxu0  ;;  %v3463_v12 = vpop.f32.mrb[87].mxu1  ;;  %v3479_v14 = vadd.f32 %v3471_v31, %v6251_v38 }
0x1991   :  { %v3478_v17 = vadd.f32 %v3470_v43, %v6244_v25  ;;  %v3480_v44 = vadd.f32 %v3472_v30, %v6248_v21 }
0x1992   :  { %v4480_v24 = vmul.f32 -1.442695, %v3477_v16 }
0x1993   :  { %v4481_v26 = vmul.f32 -1.442695, %v3478_v17  ;;  %v4482_v19 = vmul.f32 -1.442695, %v3480_v44 }
0x1994   :  { %5085 = vpow2.f32 %v4480_v24 }
0x1995   :  { %5087 = vpow2.f32 %v4481_v26 }
0x1996   :  { %5089 = vpow2.f32 %v4482_v19 }
0x1997   :  { %5091 = vtanh.f32 %v3479_v14 }
0x199e   :  { %v5086_v32 = vpop.eup %5085 }
0x199f   :  { %v5088_v35 = vpop.eup %5087  ;;  %v3484_v28 = vadd.f32 1.0, %v5086_v32 }
0x19a0   :  { %v3490_v15 = vadd.f32 1.0, %v5088_v35  ;;  %v5090_v18 = vpop.eup %5089 }
0x19a1   :  { %5093 = vrcp.f32 %v3484_v28  ;;  %v5092_v43 = vpop.eup %5091  ;;  %v3497_v20 = vadd.f32 1.0, %v5090_v18 }
0x19a2   :  { %5095 = vrcp.f32 %v3490_v15 }
0x19a3   :  { %5097 = vrcp.f32 %v3497_v20 }
0x19ab   :  { %v5094_v42 = vpop.eup %5093 }
0x19ac   :  { %v5096_v13 = vpop.eup %5095  ;;  %v3504_v16 = vmul.f32 %v5094_v42, %v5092_v43 }
0x19ad   :  { %v3503_v33 = vmul.f32 %v5096_v13, %v3501_v41  ;;  %v5098_v17 = vpop.eup %5097 }
0x19af   :  { %v6338_v12 = vadd.f32 %v3504_v16, %v3503_v33 }
0x19b1   :  { %5099 = vtanh.f32 %v6338_v12 }
0x19bb   :  { %v5100_v24 = vpop.eup %5099 }
0x19bc   :  { %v3507_v26 = vmul.f32 %v5100_v24, %v5098_v17 }
0x19be   :  { %v3508_v30 = vpack.c.bf16 %v3507_v26, %v3507_v26 }
0x19c0   :  { %v3510_v44 = vrot.slane %v3508_v30, 2 }
0x19c2   :  { %3545 = vmatmul.mubr.bf16.vlgmr.msra.gmra.mrb[72].mxu0 %v3510_v44  ;;  %3586 = vmatmul.mubr.bf16.vlgmr.msra.gmra.mrb[88].mxu1 %v3510_v44 }
0x19c3   :  { %3642 = vmatpush1.bf16.msra.mxu0 %v6008_v8  ;;  %3683 = vmatpush1.bf16.msra.mxu1 %v6013_v45 }
0x19c4   :  { %3643 = vmatprep.subr.bf16.mxu0 %v6018_v2  ;;  %3684 = vmatprep.subr.bf16.mxu1 %v6023_v34 }
0x19c5   :  { %3673 = vmatprep.mubr.bf16.mxu0 %v5296_v54  ;;  %3714 = vmatprep.mubr.bf16.mxu1 %v5296_v54 }
0x19c7   :  { %3644 = vmatpush1.bf16.msra.mxu0 %v6032_v46  ;;  %3685 = vmatpush1.bf16.msra.mxu1 %v6037_v47 }
0x19c8   :  { %3645 = vmatprep.subr.bf16.mxu0 %v6044_v6  ;;  %3686 = vmatprep.subr.bf16.mxu1 %v6049_v48 }
0x19cb   :  { %3646 = vmatpush1.bf16.msra.mxu0 %v6058_v50  ;;  %3687 = vmatpush1.bf16.msra.mxu1 %v6063_v7 }
0x19cc   :  { %3647 = vmatprep.subr.bf16.mxu0 %v6070_v52  ;;  %3688 = vmatprep.subr.bf16.mxu1 %v6075_v56 }
0x19cf   :  { %3648 = vmatpush1.bf16.msra.mxu0 %v6082_v39  ;;  %3689 = vmatpush1.bf16.msra.mxu1 %v6087_v57 }
0x19d0   :  { %3649 = vmatprep.subr.bf16.mxu0 %v6094_v40  ;;  %3690 = vmatprep.subr.bf16.mxu1 %v6099_v58 }
0x19d3   :  { %3650 = vmatpush1.bf16.msra.mxu0 %v6106_v59  ;;  %3691 = vmatpush1.bf16.msra.mxu1 %v6111_v60 }
0x19d4   :  { %3651 = vmatprep.subr.bf16.mxu0 %v6118_v61  ;;  %3692 = vmatprep.subr.bf16.mxu1 %v6123_v63 }
0x19d7   :  { %3652 = vmatpush1.bf16.msra.mxu0 %v6130_v0  ;;  %3693 = vmatpush1.bf16.msra.mxu1 %v6135_v3 }
0x19d8   :  { %3653 = vmatprep.subr.bf16.mxu0 %v6142_v36  ;;  %3694 = vmatprep.subr.bf16.mxu1 %v6147_v4 }
0x19db   :  { %3654 = vmatpush1.bf16.msra.mxu0 %v6154_v5  ;;  %3695 = vmatpush1.bf16.msra.mxu1 %v6159_v11 }
0x19dc   :  { %3655 = vmatprep.subr.bf16.mxu0 %v6166_v37  ;;  %3696 = vmatprep.subr.bf16.mxu1 %v6171_v62 }
0x19df   :  { %3656 = vmatpush1.bf16.msra.mxu0 %v6178_v9  ;;  %3697 = vmatpush1.bf16.msra.mxu1 %v6183_v1 }
0x19e0   :  { %3755 = vmatprep.subr.bf16.mxu0 %v5976_v53  ;;  %3796 = vmatprep.subr.bf16.mxu1 %v5982_v55 }
0x1a95   :  { %v3546_v51 = vpop.f32.mrb[72].mxu0  ;;  %v3587_v31 = vpop.f32.mrb[88].mxu1 }
0x1a96   :  { %v3598_v19 = vrot.slane %v3546_v51, 2  ;;  %v3548_v14 = vpop.f32.mrb[73].mxu0  ;;  %v3589_v32 = vpop.f32.mrb[89].mxu1  ;;  %v3600_v17 = vrot.slane %v3587_v31, 2 }
0x1a97   :  { %v3599_v35 = vrot.slane %v3548_v14, 2  ;;  %v3550_v28 = vpop.f32.mrb[74].mxu0  ;;  %v3591_v15 = vpop.f32.mrb[90].mxu1  ;;  %v3601_v20 = vrot.slane %v3589_v32, 2  ;;  %v3630_v32 = vrot.slane %v6338_v12, 6 }
0x1a98   :  { %v3606_v18 = vadd.f32 %v3598_v19, %v6242_v10  ;;  %v3551_v43 = vpop.f32.mrb[75].mxu0  ;;  %v3592_v42 = vpop.f32.mrb[91].mxu1  ;;  %v3608_v26 = vadd.f32 %v3600_v17, %v6251_v38 }
0x1a99   :  { %v3607_v41 = vadd.f32 %v3599_v35, %v6244_v25  ;;  %v3609_v33 = vadd.f32 %v3601_v20, %v6248_v21 }
0x1a9a   :  { %v4483_v13 = vmul.f32 -1.442695, %v3606_v18 }
0x1a9b   :  { %v4484_v16 = vmul.f32 -1.442695, %v3607_v41  ;;  %v4485_v24 = vmul.f32 -1.442695, %v3609_v33 }
0x1a9c   :  { %5101 = vpow2.f32 %v4483_v13 }
0x1a9d   :  { %5103 = vpow2.f32 %v4484_v16 }
0x1a9e   :  { %5105 = vpow2.f32 %v4485_v24 }
0x1a9f   :  { %5107 = vtanh.f32 %v3608_v26 }
0x1aa6   :  { %v5102_v30 = vpop.eup %5101 }
0x1aa7   :  { %v5104_v44 = vpop.eup %5103  ;;  %v3613_v51 = vadd.f32 1.0, %v5102_v30 }
0x1aa8   :  { %v3619_v10 = vadd.f32 1.0, %v5104_v44  ;;  %v5106_v25 = vpop.eup %5105 }
0x1aa9   :  { %5109 = vrcp.f32 %v3613_v51  ;;  %v5108_v19 = vpop.eup %5107  ;;  %v3626_v21 = vadd.f32 1.0, %v5106_v25 }
0x1aaa   :  { %5111 = vrcp.f32 %v3619_v10 }
0x1aab   :  { %5113 = vrcp.f32 %v3626_v21 }
0x1ab3   :  { %v5110_v14 = vpop.eup %5109 }
0x1ab4   :  { %v5112_v35 = vpop.eup %5111  ;;  %v3633_v28 = vmul.f32 %v5110_v14, %v5108_v19 }
0x1ab5   :  { %v3632_v31 = vmul.f32 %v5112_v35, %v3630_v32  ;;  %v5114_v38 = vpop.eup %5113 }
0x1ab7   :  { %v6380_v15 = vadd.f32 %v3633_v28, %v3632_v31 }
0x1ab9   :  { %5115 = vtanh.f32 %v6380_v15 }
0x1ac3   :  { %v5116_v18 = vpop.eup %5115 }
0x1ac4   :  { %v3636_v43 = vmul.f32 %v5116_v18, %v5114_v38  ;;  %v3747_v38 = vrot.slane %v6380_v15, 6 }
0x1ac6   :  { %v3637_v42 = vpack.c.bf16 %v3636_v43, %v3636_v43 }
0x1ac8   :  { %v3639_v41 = vrot.slane %v3637_v42, 3 }
0x1aca   :  { %3674 = vmatmul.mubr.bf16.vlgmr.msra.gmra.mrb[76].mxu0 %v3639_v41  ;;  %3715 = vmatmul.mubr.bf16.vlgmr.msra.gmra.mrb[92].mxu1 %v3639_v41 }
0x1acb   :  { %3756 = vmatpush1.bf16.msra.mxu0 %v6008_v8  ;;  %3797 = vmatpush1.bf16.msra.mxu1 %v6013_v45 }
0x1acc   :  { %3757 = vmatprep.subr.bf16.mxu0 %v6018_v2  ;;  %3798 = vmatprep.subr.bf16.mxu1 %v6023_v34 }
0x1acd   :  { %3787 = vmatprep.mubr.bf16.mxu0 %v5296_v54  ;;  %3828 = vmatprep.mubr.bf16.mxu1 %v5296_v54 }
0x1acf   :  { %3758 = vmatpush1.bf16.msra.mxu0 %v6032_v46  ;;  %3799 = vmatpush1.bf16.msra.mxu1 %v6037_v47 }
0x1ad0   :  { %3759 = vmatprep.subr.bf16.mxu0 %v6044_v6  ;;  %3800 = vmatprep.subr.bf16.mxu1 %v6049_v48 }
0x1ad3   :  { %3760 = vmatpush1.bf16.msra.mxu0 %v6058_v50  ;;  %3801 = vmatpush1.bf16.msra.mxu1 %v6063_v7 }
0x1ad4   :  { %3761 = vmatprep.subr.bf16.mxu0 %v6070_v52  ;;  %3802 = vmatprep.subr.bf16.mxu1 %v6075_v56 }
0x1ad7   :  { %3762 = vmatpush1.bf16.msra.mxu0 %v6082_v39  ;;  %3803 = vmatpush1.bf16.msra.mxu1 %v6087_v57 }
0x1ad8   :  { %3763 = vmatprep.subr.bf16.mxu0 %v6094_v40  ;;  %3804 = vmatprep.subr.bf16.mxu1 %v6099_v58 }
0x1adb   :  { %3764 = vmatpush1.bf16.msra.mxu0 %v6106_v59  ;;  %3805 = vmatpush1.bf16.msra.mxu1 %v6111_v60 }
0x1adc   :  { %3765 = vmatprep.subr.bf16.mxu0 %v6118_v61  ;;  %3806 = vmatprep.subr.bf16.mxu1 %v6123_v63 }
0x1adf   :  { %3766 = vmatpush1.bf16.msra.mxu0 %v6130_v0  ;;  %3807 = vmatpush1.bf16.msra.mxu1 %v6135_v3 }
0x1ae0   :  { %3767 = vmatprep.subr.bf16.mxu0 %v6142_v36  ;;  %3808 = vmatprep.subr.bf16.mxu1 %v6147_v4 }
0x1ae3   :  { %3768 = vmatpush1.bf16.msra.mxu0 %v6154_v5  ;;  %3809 = vmatpush1.bf16.msra.mxu1 %v6159_v11 }
0x1ae4   :  { %3769 = vmatprep.subr.bf16.mxu0 %v6166_v37  ;;  %3810 = vmatprep.subr.bf16.mxu1 %v6171_v62 }
0x1ae7   :  { %3770 = vmatpush1.bf16.msra.mxu0 %v6178_v9  ;;  %3811 = vmatpush1.bf16.msra.mxu1 %v6183_v1 }
0x1ae8   :  { %3884 = vmatprep.subr.bf16.mxu0 %v5976_v53  ;;  %3925 = vmatprep.subr.bf16.mxu1 %v5982_v55 }
0x1b9d   :  { %v3675_v12 = vpop.f32.mrb[76].mxu0  ;;  %v3716_v13 = vpop.f32.mrb[92].mxu1 }
0x1b9e   :  { %v3723_v16 = vadd.f32 %v3675_v12, %v6234_v22  ;;  %v3677_v20 = vpop.f32.mrb[77].mxu0  ;;  %v3718_v33 = vpop.f32.mrb[93].mxu1  ;;  %v3725_v55 = vadd.f32 %v3716_v13, %v6236_v23 }
0x1b9f   :  { %v3724_v17 = vadd.f32 %v3677_v20, %v6238_v27  ;;  %v3679_v24 = vpop.f32.mrb[78].mxu0  ;;  %v3720_v26 = vpop.f32.mrb[94].mxu1  ;;  %v3726_v53 = vadd.f32 %v3718_v33, %v6240_v29 }
0x1ba0   :  { %v4486_v30 = vmul.f32 -1.442695, %v3723_v16  ;;  %v3680_v44 = vpop.f32.mrb[79].mxu0  ;;  %v3721_v51 = vpop.f32.mrb[95].mxu1 }
0x1ba1   :  { %v4487_v10 = vmul.f32 -1.442695, %v3724_v17  ;;  %v4488_v25 = vmul.f32 -1.442695, %v3726_v53 }
0x1ba2   :  { %5117 = vpow2.f32 %v4486_v30 }
0x1ba3   :  { %5119 = vpow2.f32 %v4487_v10 }
0x1ba4   :  { %5121 = vpow2.f32 %v4488_v25  ;;  %v5183_v25 = vld [vmem:[%s6630_s6 + $0x40] ss:$16 sps:$4 sm:$0xff]  }
0x1ba5   :  { %5123 = vtanh.f32 %v3725_v55  ;;  %v5184_v55 = vld [vmem:[%s6630_s6 + $0x48] ss:$16 sps:$4 sm:$0xff]  }
0x1bac   :  { %v5118_v19 = vpop.eup %5117 }
0x1bad   :  { %v5120_v14 = vpop.eup %5119  ;;  %v3730_v32 = vadd.f32 1.0, %v5118_v19  ;;  %v5185_v19 = vld [vmem:[%s6630_s6 + $0x64] ss:$16 sps:$4 sm:$0xff]  }
0x1bae   :  { %v3736_v35 = vadd.f32 1.0, %v5120_v14  ;;  %v5122_v28 = vpop.eup %5121  ;;  %v5186_v14 = vld [vmem:[%s6630_s6 + $0x6c] ss:$16 sps:$4 sm:$0xff]  }
0x1baf   :  { %5125 = vrcp.f32 %v3730_v32  ;;  %v5124_v21 = vpop.eup %5123  ;;  %v3743_v42 = vadd.f32 1.0, %v5122_v28  ;;  %v5187_v32 = vld [vmem:[%s6630_s6 + $0x60] ss:$16 sps:$4 sm:$0xff]   ;;  %v5189_v28 = vld [vmem:[%s6630_s6 + $0x84] ss:$16 sps:$4 sm:$0xff]  }
0x1bb0   :  { %5127 = vrcp.f32 %v3736_v35  ;;  %v5188_v35 = vld [vmem:[%s6630_s6 + $0x68] ss:$16 sps:$4 sm:$0xff]  }
0x1bb1   :  { %5129 = vrcp.f32 %v3743_v42  ;;  %v5196_v42 = vld [vmem:[%s6630_s6 + $0xa8] ss:$16 sps:$4 sm:$0xff]  }
0x1bb9   :  { %v5126_v31 = vpop.eup %5125 }
0x1bba   :  { %v5128_v18 = vpop.eup %5127  ;;  %v3750_v43 = vmul.f32 %v5126_v31, %v5124_v21  ;;  %v5190_v21 = vld [vmem:[%s6630_s6 + $0x8c] ss:$16 sps:$4 sm:$0xff]   ;;  %v5192_v31 = vld [vmem:[%s6630_s6 + $0x88] ss:$16 sps:$4 sm:$0xff]  }
0x1bbb   :  { %v3749_v41 = vmul.f32 %v5128_v18, %v3747_v38  ;;  %v5130_v13 = vpop.eup %5129  ;;  %v5193_v38 = vld [vmem:[%s6630_s6 + $0xa4] ss:$16 sps:$4 sm:$0xff]   ;;  %v5194_v18 = vld [vmem:[%s6630_s6 + $0xac] ss:$16 sps:$4 sm:$0xff]  }
0x1bbd   :  { %v6422_v12 = vadd.f32 %v3750_v43, %v3749_v41  ;;  %v5195_v43 = vld [vmem:[%s6630_s6 + $0xa0] ss:$16 sps:$4 sm:$0xff]   ;;  %v5197_v41 = vld [vmem:[%s6630_s6 + $0xc4] ss:$16 sps:$4 sm:$0xff]  }
0x1bbf   :  { %5131 = vtanh.f32 %v6422_v12 }
0x1bc9   :  { %v5132_v16 = vpop.eup %5131 }
0x1bca   :  { %v3753_v20 = vmul.f32 %v5132_v16, %v5130_v13  ;;  %v5199_v13 = vld [vmem:[%s6630_s6 + $0xc0] ss:$16 sps:$4 sm:$0xff]   ;;  %v5200_v16 = vld [vmem:[%s6630_s6 + $0xc8] ss:$16 sps:$4 sm:$0xff]  }
0x1bcc   :  { %v3754_v33 = vpack.c.bf16 %v3753_v20, %v3753_v20  ;;  %v5201_v20 = vld [vmem:[%s6630_s6 + $0xe4] ss:$16 sps:$4 sm:$0xff]  }
0x1bce   :  { %3788 = vmatmul.mubr.bf16.vlgmr.msra.gmra.mrb[80].mxu0 %v3754_v33  ;;  %3829 = vmatmul.mubr.bf16.vlgmr.msra.gmra.mrb[96].mxu1 %v3754_v33  ;;  %v5202_v33 = vld [vmem:[%s6630_s6 + $0xec] ss:$16 sps:$4 sm:$0xff]  }
0x1bcf   :  { %3885 = vmatpush1.bf16.msra.mxu0 %v6008_v8  ;;  %3926 = vmatpush1.bf16.msra.mxu1 %v6013_v45  ;;  %v5181_v8 = vld [vmem:[%s6630_s6 + $0x44] ss:$16 sps:$4 sm:$0xff]   ;;  %v5182_v45 = vld [vmem:[%s6630_s6 + $0x4c] ss:$16 sps:$4 sm:$0xff]  }
0x1bd0   :  { %3886 = vmatprep.subr.bf16.mxu0 %v6018_v2  ;;  %3927 = vmatprep.subr.bf16.mxu1 %v6023_v34 }
0x1bd1   :  { %3916 = vmatprep.mubr.bf16.mxu0 %v5296_v54  ;;  %3957 = vmatprep.mubr.bf16.mxu1 %v5296_v54 }
0x1bd3   :  { %3887 = vmatpush1.bf16.msra.mxu0 %v6032_v46  ;;  %3928 = vmatpush1.bf16.msra.mxu1 %v6037_v47 }
0x1bd4   :  { %3888 = vmatprep.subr.bf16.mxu0 %v6044_v6  ;;  %3929 = vmatprep.subr.bf16.mxu1 %v6049_v48 }
0x1bd7   :  { %3889 = vmatpush1.bf16.msra.mxu0 %v6058_v50  ;;  %3930 = vmatpush1.bf16.msra.mxu1 %v6063_v7 }
0x1bd8   :  { %3890 = vmatprep.subr.bf16.mxu0 %v6070_v52  ;;  %3931 = vmatprep.subr.bf16.mxu1 %v6075_v56 }
0x1bdb   :  { %3891 = vmatpush1.bf16.msra.mxu0 %v6082_v39  ;;  %3932 = vmatpush1.bf16.msra.mxu1 %v6087_v57 }
0x1bdc   :  { %3892 = vmatprep.subr.bf16.mxu0 %v6094_v40  ;;  %3933 = vmatprep.subr.bf16.mxu1 %v6099_v58 }
0x1bdf   :  { %3893 = vmatpush1.bf16.msra.mxu0 %v6106_v59  ;;  %3934 = vmatpush1.bf16.msra.mxu1 %v6111_v60 }
0x1be0   :  { %3894 = vmatprep.subr.bf16.mxu0 %v6118_v61  ;;  %3935 = vmatprep.subr.bf16.mxu1 %v6123_v63 }
0x1be3   :  { %3895 = vmatpush1.bf16.msra.mxu0 %v6130_v0  ;;  %3936 = vmatpush1.bf16.msra.mxu1 %v6135_v3 }
0x1be4   :  { %3896 = vmatprep.subr.bf16.mxu0 %v6142_v36  ;;  %3937 = vmatprep.subr.bf16.mxu1 %v6147_v4 }
0x1be7   :  { %3897 = vmatpush1.bf16.msra.mxu0 %v6154_v5  ;;  %3938 = vmatpush1.bf16.msra.mxu1 %v6159_v11 }
0x1be8   :  { %3898 = vmatprep.subr.bf16.mxu0 %v6166_v37  ;;  %3939 = vmatprep.subr.bf16.mxu1 %v6171_v62 }
0x1beb   :  { %3899 = vmatpush1.bf16.msra.mxu0 %v6178_v9  ;;  %3940 = vmatpush1.bf16.msra.mxu1 %v6183_v1  ;;  %v3873_v9 = vrot.slane %v6422_v12, 6  ;;  %v5198_v12 = vld [vmem:[%s6630_s6 + $0xcc] ss:$16 sps:$4 sm:$0xff]  }
0x1bec   :  { %4013 = vmatprep.subr.bf16.mxu0 %v5181_v8  ;;  %4054 = vmatprep.subr.bf16.mxu1 %v5182_v45  ;;  %v5203_v8 = vld [vmem:[%s6630_s6 + $0xe0] ss:$16 sps:$4 sm:$0xff]   ;;  %v5204_v45 = vld [vmem:[%s6630_s6 + $0xe8] ss:$16 sps:$4 sm:$0xff]  }
0x1ca1   :  { %v3789_v2 = vpop.f32.mrb[80].mxu0  ;;  %v3830_v34 = vpop.f32.mrb[96].mxu1 }
0x1ca2   :  { %v3841_v46 = vrot.slane %v3789_v2, 6  ;;  %v3791_v47 = vpop.f32.mrb[81].mxu0  ;;  %v3832_v6 = vpop.f32.mrb[97].mxu1  ;;  %v3843_v61 = vrot.slane %v3830_v34, 6  ;;  %v5205_v2 = vld [vmem:[%s6630_s6 + $0x104] ss:$16 sps:$4 sm:$0xff]  }
0x1ca3   :  { %v3842_v48 = vrot.slane %v3791_v47, 6  ;;  %v3793_v50 = vpop.f32.mrb[82].mxu0  ;;  %v3834_v7 = vpop.f32.mrb[98].mxu1  ;;  %v3844_v59 = vrot.slane %v3832_v6, 6  ;;  %v5206_v34 = vld [vmem:[%s6630_s6 + $0x10c] ss:$16 sps:$4 sm:$0xff]  }
0x1ca4   :  { %v3849_v52 = vadd.f32 %v3841_v46, %v6234_v22  ;;  %v3794_v56 = vpop.f32.mrb[83].mxu0  ;;  %v3835_v39 = vpop.f32.mrb[99].mxu1  ;;  %v3851_v0 = vadd.f32 %v3843_v61, %v6236_v23  ;;  %v5207_v46 = vld [vmem:[%s6630_s6 + $0x100] ss:$16 sps:$4 sm:$0xff]   ;;  %v5208_v47 = vld [vmem:[%s6630_s6 + $0x108] ss:$16 sps:$4 sm:$0xff]  }
0x1ca5   :  { %v3850_v57 = vadd.f32 %v3842_v48, %v6238_v27  ;;  %v3852_v60 = vadd.f32 %v3844_v59, %v6240_v29  ;;  %v5209_v6 = vld [vmem:[%s6630_s6 + $0x124] ss:$16 sps:$4 sm:$0xff]   ;;  %v5210_v48 = vld [vmem:[%s6630_s6 + $0x12c] ss:$16 sps:$4 sm:$0xff]   ;;  %v5211_v50 = vld [vmem:[%s6630_s6 + $0x120] ss:$16 sps:$4 sm:$0xff]  }
0x1ca6   :  { %v4489_v40 = vmul.f32 -1.442695, %v3849_v52  ;;  %v5212_v7 = vld [vmem:[%s6630_s6 + $0x128] ss:$16 sps:$4 sm:$0xff]  }
0x1ca7   :  { %v4490_v58 = vmul.f32 -1.442695, %v3850_v57  ;;  %v4491_v63 = vmul.f32 -1.442695, %v3852_v60 }
0x1ca8   :  { %5133 = vpow2.f32 %v4489_v40 }
0x1ca9   :  { %5135 = vpow2.f32 %v4490_v58 }
0x1caa   :  { %5137 = vpow2.f32 %v4491_v63 }
0x1cab   :  { %5139 = vtanh.f32 %v3851_v0 }
0x1cb2   :  { %v5134_v3 = vpop.eup %5133 }
0x1cb3   :  { %v5136_v36 = vpop.eup %5135  ;;  %v3856_v4 = vadd.f32 1.0, %v5134_v3 }
0x1cb4   :  { %v3862_v5 = vadd.f32 1.0, %v5136_v36  ;;  %v5138_v11 = vpop.eup %5137 }
0x1cb5   :  { %5141 = vrcp.f32 %v3856_v4  ;;  %v5140_v37 = vpop.eup %5139  ;;  %v3869_v17 = vadd.f32 1.0, %v5138_v11 }
0x1cb6   :  { %5143 = vrcp.f32 %v3862_v5 }
0x1cb7   :  { %5145 = vrcp.f32 %v3869_v17 }
0x1cbf   :  { %v5142_v62 = vpop.eup %5141 }
0x1cc0   :  { %v5144_v1 = vpop.eup %5143  ;;  %v3876_v15 = vmul.f32 %v5142_v62, %v5140_v37 }
0x1cc1   :  { %v3875_v24 = vmul.f32 %v5144_v1, %v3873_v9  ;;  %v5146_v30 = vpop.eup %5145 }
0x1cc3   :  { %v6468_v26 = vadd.f32 %v3876_v15, %v3875_v24 }
0x1cc5   :  { %5147 = vtanh.f32 %v6468_v26 }
0x1ccf   :  { %v5148_v44 = vpop.eup %5147 }
0x1cd0   :  { %v3879_v51 = vmul.f32 %v5148_v44, %v5146_v30 }
0x1cd2   :  { %v3880_v10 = vpack.c.bf16 %v3879_v51, %v3879_v51 }
0x1cd4   :  { %v3882_v53 = vrot.slane %v3880_v10, 1  ;;  %v4002_v10 = vrot.slane %v6468_v26, 6  ;;  %v4977_v26 = vld [vmem:[%s6632_s8] sm:$0xff]  }
0x1cd6   :  { %3917 = vmatmul.mubr.bf16.vlgmr.msra.gmra.mrb[84].mxu0 %v3882_v53  ;;  %3958 = vmatmul.mubr.bf16.vlgmr.msra.gmra.mrb[100].mxu1 %v3882_v53 }
0x1cd7   :  { %4014 = vmatpush1.bf16.msra.mxu0 %v5183_v25  ;;  %4055 = vmatpush1.bf16.msra.mxu1 %v5184_v55 }
0x1cd8   :  { %4015 = vmatprep.subr.bf16.mxu0 %v5185_v19  ;;  %4056 = vmatprep.subr.bf16.mxu1 %v5186_v14 }
0x1cd9   :  { %4045 = vmatprep.mubr.bf16.mxu0 %v5296_v54  ;;  %4086 = vmatprep.mubr.bf16.mxu1 %v5296_v54  ;;  %v5191_v54 = vld [vmem:[%s6630_s6 + $0x80] ss:$16 sps:$4 sm:$0xff]  }
0x1cdb   :  { %4016 = vmatpush1.bf16.msra.mxu0 %v5187_v32  ;;  %4057 = vmatpush1.bf16.msra.mxu1 %v5188_v35 }
0x1cdc   :  { %4017 = vmatprep.subr.bf16.mxu0 %v5189_v28  ;;  %4058 = vmatprep.subr.bf16.mxu1 %v5190_v21 }
0x1cdf   :  { %4018 = vmatpush1.bf16.msra.mxu0 %v5191_v54  ;;  %4059 = vmatpush1.bf16.msra.mxu1 %v5192_v31  ;;  %v4978_v31 = vld [vmem:[%s6632_s8 + $0x8] sm:$0xff]  }
0x1ce0   :  { %4019 = vmatprep.subr.bf16.mxu0 %v5193_v38  ;;  %4060 = vmatprep.subr.bf16.mxu1 %v5194_v18  ;;  %v4979_v38 = vld [vmem:[%s6632_s8 + $0x10] sm:$0xff]   ;;  %v4980_v18 = vld [vmem:[%s6632_s8 + $0x18] sm:$0xff]  }
0x1ce3   :  { %4020 = vmatpush1.bf16.msra.mxu0 %v5195_v43  ;;  %4061 = vmatpush1.bf16.msra.mxu1 %v5196_v42  ;;  %v4981_v43 = vld [vmem:[%s6632_s8 + $0x20] sm:$0xff]   ;;  %v4982_v42 = vld [vmem:[%s6632_s8 + $0x28] sm:$0xff]  }
0x1ce4   :  { %4021 = vmatprep.subr.bf16.mxu0 %v5197_v41  ;;  %4062 = vmatprep.subr.bf16.mxu1 %v5198_v12  ;;  %v4983_v41 = vld [vmem:[%s6632_s8 + $0x30] sm:$0xff]   ;;  %v4984_v12 = vld [vmem:[%s6632_s8 + $0x38] sm:$0xff]  }
0x1ce7   :  { %4022 = vmatpush1.bf16.msra.mxu0 %v5199_v13  ;;  %4063 = vmatpush1.bf16.msra.mxu1 %v5200_v16 }
0x1ce8   :  { %4023 = vmatprep.subr.bf16.mxu0 %v5201_v20  ;;  %4064 = vmatprep.subr.bf16.mxu1 %v5202_v33 }
0x1ceb   :  { %4024 = vmatpush1.bf16.msra.mxu0 %v5203_v8  ;;  %4065 = vmatpush1.bf16.msra.mxu1 %v5204_v45 }
0x1cec   :  { %4025 = vmatprep.subr.bf16.mxu0 %v5205_v2  ;;  %4066 = vmatprep.subr.bf16.mxu1 %v5206_v34 }
0x1cef   :  { %4026 = vmatpush1.bf16.msra.mxu0 %v5207_v46  ;;  %4067 = vmatpush1.bf16.msra.mxu1 %v5208_v47 }
0x1cf0   :  { %4027 = vmatprep.subr.bf16.mxu0 %v5209_v6  ;;  %4068 = vmatprep.subr.bf16.mxu1 %v5210_v48 }
0x1cf3   :  { %4028 = vmatpush1.bf16.msra.mxu0 %v5211_v50  ;;  %4069 = vmatpush1.bf16.msra.mxu1 %v5212_v7 }
0x1cf4   :  { %4820 = vmatprep.subr.bf16.mxu0 %v5292_v49 }
0x1da9   :  { %v3918_v52 = vpop.f32.mrb[84].mxu0  ;;  %v3959_v56 = vpop.f32.mrb[100].mxu1 }
0x1daa   :  { %v3970_v39 = vrot.slane %v3918_v52, 4  ;;  %v3920_v57 = vpop.f32.mrb[85].mxu0  ;;  %v3961_v40 = vpop.f32.mrb[101].mxu1  ;;  %v3972_v37 = vrot.slane %v3959_v56, 4 }
0x1dab   :  { %v3971_v58 = vrot.slane %v3920_v57, 4  ;;  %v3922_v59 = vpop.f32.mrb[86].mxu0  ;;  %v3963_v60 = vpop.f32.mrb[102].mxu1  ;;  %v3973_v5 = vrot.slane %v3961_v40, 4 }
0x1dac   :  { %v3978_v61 = vadd.f32 %v3970_v39, %v6234_v22  ;;  %v3923_v63 = vpop.f32.mrb[87].mxu0  ;;  %v3964_v0 = vpop.f32.mrb[103].mxu1  ;;  %v3980_v9 = vadd.f32 %v3972_v37, %v6236_v23 }
0x1dad   :  { %v3979_v3 = vadd.f32 %v3971_v58, %v6238_v27  ;;  %v3981_v11 = vadd.f32 %v3973_v5, %v6240_v29 }
0x1dae   :  { %v4492_v36 = vmul.f32 -1.442695, %v3978_v61 }
0x1daf   :  { %v4493_v4 = vmul.f32 -1.442695, %v3979_v3  ;;  %v4494_v62 = vmul.f32 -1.442695, %v3981_v11 }
0x1db0   :  { %5149 = vpow2.f32 %v4492_v36 }
0x1db1   :  { %5151 = vpow2.f32 %v4493_v4 }
0x1db2   :  { %5153 = vpow2.f32 %v4494_v62 }
0x1db3   :  { %5155 = vtanh.f32 %v3980_v9  ;;  %v4498_v9 = vld [vmem:[%s6633_s9] ss:$0 sm:$0xff] }
0x1dba   :  { %v5150_v1 = vpop.eup %5149 }
0x1dbb   :  { %v5152_v15 = vpop.eup %5151  ;;  %v3985_v17 = vadd.f32 1.0, %v5150_v1 }
0x1dbc   :  { %v3991_v24 = vadd.f32 1.0, %v5152_v15  ;;  %v5154_v30 = vpop.eup %5153 }
0x1dbd   :  { %5157 = vrcp.f32 %v3985_v17  ;;  %v5156_v44 = vpop.eup %5155  ;;  %v3998_v55 = vadd.f32 1.0, %v5154_v30 }
0x1dbe   :  { %5159 = vrcp.f32 %v3991_v24 }
0x1dbf   :  { %5161 = vrcp.f32 %v3998_v55 }
0x1dc7   :  { %v5158_v51 = vpop.eup %5157 }
0x1dc8   :  { %v5160_v53 = vpop.eup %5159  ;;  %v4005_v25 = vmul.f32 %v5158_v51, %v5156_v44 }
0x1dc9   :  { %v4004_v19 = vmul.f32 %v5160_v53, %v4002_v10  ;;  %v5162_v32 = vpop.eup %5161 }
0x1dcb   :  { %v6569_v14 = vadd.f32 %v4005_v25, %v4004_v19 }
0x1dcd   :  { %5163 = vtanh.f32 %v6569_v14  ;;  %v4131_v63 = vrot.slane %v6569_v14, 6 }
0x1dd7   :  { %v5164_v35 = vpop.eup %5163 }
0x1dd8   :  { %v4008_v28 = vmul.f32 %v5164_v35, %v5162_v32 }
0x1dda   :  { %v4009_v21 = vpack.c.bf16 %v4008_v28, %v4008_v28 }
0x1ddc   :  { %v4011_v54 = vrot.slane %v4009_v21, 2 }
0x1dde   :  { %4046 = vmatmul.mubr.bf16.vlgmr.msra.gmra.mrb[88].mxu0 %v4011_v54  ;;  %4087 = vmatmul.mubr.bf16.vlgmr.msra.gmra.mrb[104].mxu1 %v4011_v54 }
0x1ddf   :  { %4836 = vmatprep.mubr.msk.bf16.mxu0 %vm5293_vm8, %v5292_v49  ;;  %4821 = vmatpush3.bf16.msra.mxu0 %v4977_v26 }
0x1de0   :  { %4822 = vmatprep.subr.bf16.mxu0 %v5292_v49 }
0x1de3   :  { %4823 = vmatpush3.bf16.msra.mxu0 %v4978_v31 }
0x1de4   :  { %4824 = vmatprep.subr.bf16.mxu0 %v5292_v49 }
0x1de7   :  { %4825 = vmatpush3.bf16.msra.mxu0 %v4979_v38 }
0x1de8   :  { %4826 = vmatprep.subr.bf16.mxu0 %v5292_v49 }
0x1deb   :  { %4827 = vmatpush3.bf16.msra.mxu0 %v4980_v18 }
0x1dec   :  { %4828 = vmatprep.subr.bf16.mxu0 %v5292_v49 }
0x1def   :  { %4829 = vmatpush3.bf16.msra.mxu0 %v4981_v43 }
0x1df0   :  { %4830 = vmatprep.subr.bf16.mxu0 %v5292_v49 }
0x1df3   :  { %4831 = vmatpush3.bf16.msra.mxu0 %v4982_v42 }
0x1df4   :  { %4832 = vmatprep.subr.bf16.mxu0 %v5292_v49 }
0x1df7   :  { %4833 = vmatpush3.bf16.msra.mxu0 %v4983_v41 }
0x1df8   :  { %4834 = vmatprep.subr.bf16.mxu0 %v5292_v49 }
0x1dfb   :  { %4835 = vmatpush3.bf16.msra.mxu0 %v4984_v12 }
0x1eb1   :  { %v4047_v13 = vpop.f32.mrb[88].mxu0  ;;  %v4088_v16 = vpop.f32.mrb[104].mxu1 }
0x1eb2   :  { %v4099_v20 = vrot.slane %v4047_v13, 2  ;;  %v4049_v33 = vpop.f32.mrb[89].mxu0  ;;  %v4090_v8 = vpop.f32.mrb[105].mxu1  ;;  %v4101_v56 = vrot.slane %v4088_v16, 2 }
0x1eb3   :  { %v4100_v45 = vrot.slane %v4049_v33, 2  ;;  %v4051_v2 = vpop.f32.mrb[90].mxu0  ;;  %v4092_v34 = vpop.f32.mrb[106].mxu1  ;;  %v4102_v52 = vrot.slane %v4090_v8, 2 }
0x1eb4   :  { %v4107_v46 = vadd.f32 %v4099_v20, %v6234_v22  ;;  %v4052_v47 = vpop.f32.mrb[91].mxu0  ;;  %v4093_v6 = vpop.f32.mrb[107].mxu1  ;;  %v4109_v57 = vadd.f32 %v4101_v56, %v6236_v23 }
0x1eb5   :  { %v4108_v48 = vadd.f32 %v4100_v45, %v6238_v27  ;;  %v4110_v49 = vadd.f32 %v4102_v52, %v6240_v29 }
0x1eb6   :  { %v4495_v50 = vmul.f32 -1.442695, %v4107_v46 }
0x1eb7   :  { %v4496_v7 = vmul.f32 -1.442695, %v4108_v48  ;;  %v4497_v39 = vmul.f32 -1.442695, %v4110_v49 }
0x1eb8   :  { %5165 = vpow2.f32 %v4495_v50 }
0x1eb9   :  { %5167 = vpow2.f32 %v4496_v7 }
0x1eba   :  { %5169 = vpow2.f32 %v4497_v39 }
0x1ebb   :  { %5171 = vtanh.f32 %v4109_v57 }
0x1ec2   :  { %v5166_v40 = vpop.eup %5165 }
0x1ec3   :  { %v5168_v58 = vpop.eup %5167  ;;  %v4114_v59 = vadd.f32 1.0, %v5166_v40 }
0x1ec4   :  { %v4120_v22 = vadd.f32 1.0, %v5168_v58  ;;  %v5170_v27 = vpop.eup %5169 }
0x1ec5   :  { %5173 = vrcp.f32 %v4114_v59  ;;  %v5172_v60 = vpop.eup %5171  ;;  %v4127_v29 = vadd.f32 1.0, %v5170_v27 }
0x1ec6   :  { %5175 = vrcp.f32 %v4120_v22 }
0x1ec7   :  { %5177 = vrcp.f32 %v4127_v29 }
0x1ecf   :  { %v5174_v61 = vpop.eup %5173 }
0x1ed0   :  { %v5176_v0 = vpop.eup %5175  ;;  %v4134_v3 = vmul.f32 %v5174_v61, %v5172_v60 }
0x1ed1   :  { %v4133_v36 = vmul.f32 %v5176_v0, %v4131_v63  ;;  %v5178_v23 = vpop.eup %5177 }
0x1ed3   :  { %v4135_v4 = vadd.f32 %v4134_v3, %v4133_v36 }
0x1ed5   :  { %5179 = vtanh.f32 %v4135_v4 }
0x1edf   :  { %v5180_v5 = vpop.eup %5179 }
0x1ee0   :  { %v4137_v11 = vmul.f32 %v5180_v5, %v5178_v23 }
0x1ee2   :  { %v4154_v37 = vpack.c.bf16 %v4137_v11, %v4137_v11 }
0x1ee4   :  { %v4163_v62 = vrot.slane %v4154_v37, 3 }
0x1ee6   :  { %4837 = vmatmul.mubr.bf16.vlgmr.msra.gmra.mrb[92].mxu0 %v4163_v62 }
0x1fb9   :  { %v4247_v1 = vpop.f32.mrb[92].mxu0 }
0x1fba   :  { %v4248_v15 = vadd.f32 %v4498_v9, %v4247_v1  ;;  %v4838_v17 = vpop.f32.mrb[93].mxu0 }
0x1fbb   :  { %v4250_v24 = vpop.f32.mrb[94].mxu0 }
0x1fbc   :  { %v4839_v30 = vpop.f32.mrb[95].mxu0  ;;  %4254 = vst.msk [vmem:[#allocation8] sm:$0x3] %vm4253_vm11, %v4248_v15 }
0x1fbd   :  { %5270 = shalt.err (!%p5267_p8)
}
0x1fbe   :  { %s5271_s9 = scalar_lea.hbm %s6634_s10, 32 }
0x1fbf   :  { %p5272_p9 = scmp.ne.s32.totalorder %s6634_s10, %s5271_s9  ;;  %p5275_p10 = scmp.lt.u32.totalorder %s5271_s9, %s6634_s10 }
0x1fc1   :  { %p5277_p11 = pnand %p5275_p10, %p5272_p9 }
0x1fc3   :  { %5280 = shalt.err (!%p5277_p11)
}
0x1fc4   :  { %4264 = dma.vmem_to_hbm [thread:$0]  %s4262_s7, 32, %s6634_s10, [#allocation7]  }
0x1fc5   :  { %5285 = dma.done.wait [#allocation7], 32  }
0x1fc6   :  { %5286 = vsyncadd [#allocation7], 4294967264 }
0x1fc7   :  { %4268 = vsyncpa [#allocation6], 1 }
0x1fc8   :  { %4269 = vsyncpa [#allocation7], 1 }

</bundles_post_ra>
